<compile_context>
chip_gen: v6e
topology: v6e:2x2x1
jax: 0.10.0
libtpu: 0.0.40
codegen_flags: <defaults>
</compile_context>

<pallas_src>
import functools

import jax
import jax.numpy as jnp
from jax import lax
from jax.experimental import pallas as pl
from jax.experimental.pallas import tpu as pltpu


def _resblock_kernel(x_ref, w1_ref, b1_ref, a1_ref, w2_ref, b2_ref, a2_ref,
                     mask_ref, o_ref, h_ref, r_ref, *,
                     soffs, Mp, xbase, hbase, C):
    """Fused conv3d+PReLU -> conv3d+PReLU for one batch element.

    x_ref:    (C, Lx)        guarded, 'same'-padded, flattened input
    w*_ref:   (C, K^3*C)     packed weights (tap-major columns)
    b*_ref:   (C, 1)         bias
    a*_ref:   (C, 1)         PReLU per-channel slope
    mask_ref: (1, Mp)        1.0 at centred-valid grid positions, else 0.0
    o_ref:    (C, Mp)        output on the padded grid (halo junk cropped by wrapper)
    h_ref:    (C, Lh)        VMEM scratch: guarded intermediate activation
    r_ref:    (K^3*C, Mp)    VMEM scratch: im2col patch matrix
    """
    n_taps = len(soffs)

    def conv_prelu(read_window, w_ref, b_ref, a_ref):
        # im2col staging: pair taps so each store writes 2*C = 8 contiguous,
        # 8-aligned rows (a full f32 sublane tile) instead of two masked
        # 4-sublane stores.  Row order stays t*C + ci, matching the packed
        # weight columns.
        for p in range(n_taps // 2):
            lo = read_window(soffs[2 * p])
            hi = read_window(soffs[2 * p + 1])
            r_ref[2 * p * C:(2 * p + 2) * C, :] = jnp.concatenate([lo, hi],
                                                                  axis=0)
        if n_taps % 2:
            t = n_taps - 1
            r_ref[t * C:(t + 1) * C, :] = read_window(soffs[t])

        acc = jnp.dot(w_ref[...], r_ref[...],
                      preferred_element_type=jnp.float32)        # (C, Mp)
        acc = acc + b_ref[...]                                    # bias (C, 1)
        return jnp.where(acc >= 0.0, acc, a_ref[...] * acc)       # PReLU

    # ---- conv1 + PReLU: windows read straight from the guarded input block.
    y1 = conv_prelu(lambda s: x_ref[:, xbase + s: xbase + s + Mp],
                    w1_ref, b1_ref, a1_ref)
    # Zero the halo positions -> exact 'same' zero padding for conv2.
    y1 = y1 * mask_ref[...]

    # ---- stage the intermediate in VMEM (never written back to HBM).
    # Only the guard bands need zeroing; the interior is fully overwritten.
    h_ref[:, :hbase] = jnp.zeros((C, hbase), jnp.float32)
    h_ref[:, hbase + Mp:hbase + Mp + hbase] = jnp.zeros((C, hbase), jnp.float32)
    h_ref[:, hbase:hbase + Mp] = y1                    # 128-aligned store

    # ---- conv2 + PReLU.
    y2 = conv_prelu(lambda s: h_ref[:, hbase + s: hbase + s + Mp],
                    w2_ref, b2_ref, a2_ref)
    o_ref[...] = y2.astype(o_ref.dtype)


def _pick_vmem_limit(working_set_bytes):
    """Generation-aware scoped-VMEM limit (bytes)."""
    try:
        phys = int(pltpu.get_tpu_info().vmem_capacity_bytes)
    except Exception:
        phys = 64 * 1024 * 1024          # conservative: v7x per-TC physical
    want = max(32 * 1024 * 1024, 4 * int(working_set_bytes))
    return int(min(want, int(phys * 0.75)))


def resblock_forward(x, params, kernel_size):
    """x: (N, C, D, H, W) f32. params: PyTorch-layout (w1,b1,a1,w2,b2,a2) with
    w: (Cout, Cin, K, K, K), b/alpha: (C,). Matches ResBlock.forward (no
    residual add in the reference module)."""
    w1, b1, a1, w2, b2, a2 = params
    N, C, D, H, W = x.shape
    K = kernel_size
    K3 = K * K * K
    P = (K - 1) // 2
    Dp, Hp, Wp = D + 2 * P, H + 2 * P, W + 2 * P
    Mp = Dp * Hp * Wp                                   # flattened padded grid

    # Centred flat offsets of the K^3 taps on the (Dp, Hp, Wp) grid.
    soffs = tuple((kd - P) * Hp * Wp + (kh - P) * Wp + (kw - P)
                  for kd in range(K) for kh in range(K) for kw in range(K))
    max_soff = P * (Hp * Wp + Wp + 1)

    # Guard planes (extra zero D-planes) so every shifted flat window is a
    # contiguous in-bounds slice.
    Gd = -(-max_soff // (Hp * Wp)) if P > 0 else 0      # ceil div
    xbase = Gd * Hp * Wp                                # grid origin in x block
    Lx = (Dp + 2 * Gd) * Hp * Wp
    hbase = -(-max_soff // 128) * 128                   # 128-aligned guard
    Lh = Mp + 2 * hbase

    # ---- layout glue (plain XLA, HBM): 'same' pad + guard planes, flatten.
    xg = jnp.pad(x, ((0, 0), (0, 0), (P + Gd, P + Gd), (P, P), (P, P)))
    xg = xg.reshape(N, C, Lx)

    # Pack weights as (Cout, K^3*Cin) with tap-major columns matching the
    # im2col row order (t*C + ci).
    def pack_w(w):
        return jnp.transpose(w, (0, 2, 3, 4, 1)).reshape(C, K3 * C)

    w1p, w2p = pack_w(w1), pack_w(w2)
    b1c, a1c = b1.reshape(C, 1), a1.reshape(C, 1)
    b2c, a2c = b2.reshape(C, 1), a2.reshape(C, 1)

    # Mask of centred-valid positions on the (Dp, Hp, Wp) grid.
    md = (jnp.arange(Dp) >= P) & (jnp.arange(Dp) < P + D)
    mh = (jnp.arange(Hp) >= P) & (jnp.arange(Hp) < P + H)
    mw = (jnp.arange(Wp) >= P) & (jnp.arange(Wp) < P + W)
    mask = (md[:, None, None] & mh[None, :, None] & mw[None, None, :])
    mask = mask.reshape(1, Mp).astype(jnp.float32)

    kernel = functools.partial(_resblock_kernel, soffs=soffs, Mp=Mp,
                               xbase=xbase, hbase=hbase, C=C)

    # Per-step VMEM working set: im2col scratch + guarded intermediate +
    # double-buffered x / out blocks + (constant) weights/bias/alpha/mask.
    working_set = 4 * (K3 * C * Mp + C * Lh
                       + 2 * C * Lx + 2 * C * Mp
                       + 2 * (C * K3 * C + 2 * C) + Mp)

    grid_spec = pltpu.PrefetchScalarGridSpec(
        num_scalar_prefetch=0,
        grid=(N,),
        in_specs=[
            pl.BlockSpec((None, C, Lx), lambda n: (n, 0, 0)),     # x (guarded, flat)
            pl.BlockSpec((C, K3 * C), lambda n: (0, 0)),          # w1 packed
            pl.BlockSpec((C, 1), lambda n: (0, 0)),               # b1
            pl.BlockSpec((C, 1), lambda n: (0, 0)),               # alpha1
            pl.BlockSpec((C, K3 * C), lambda n: (0, 0)),          # w2 packed
            pl.BlockSpec((C, 1), lambda n: (0, 0)),               # b2
            pl.BlockSpec((C, 1), lambda n: (0, 0)),               # alpha2
            pl.BlockSpec((1, Mp), lambda n: (0, 0)),              # valid mask
        ],
        out_specs=pl.BlockSpec((None, C, Mp), lambda n: (n, 0, 0)),  # lane-dense out
        scratch_shapes=[
            pltpu.VMEM((C, Lh), jnp.float32),        # guarded intermediate
            pltpu.VMEM((K3 * C, Mp), jnp.float32),   # im2col patch matrix
        ],
    )

    out_flat = pl.pallas_call(
        kernel,
        grid_spec=grid_spec,
        out_shape=jax.ShapeDtypeStruct((N, C, Mp), jnp.float32),
        compiler_params=pltpu.CompilerParams(
            dimension_semantics=("parallel",),
            vmem_limit_bytes=_pick_vmem_limit(working_set)),
    )(xg, w1p, b1c, a1c, w2p, b2c, a2c, mask)

    # Drop the halo (junk) positions of the padded output grid (XLA slice).
    out = out_flat.reshape(N, C, Dp, Hp, Wp)[:, :, P:P + D, P:P + H, P:P + W]
    return out


# ----------------------------- pure-JAX reference -----------------------------
def resblock_ref(x, params, kernel_size):
    w1, b1, a1, w2, b2, a2 = params
    C = x.shape[1]
    dn = lax.conv_dimension_numbers(x.shape, w1.shape, ("NCDHW", "OIDHW", "NCDHW"))

    def stage(y, w, b, a):
        y = lax.conv_general_dilated(y, w, (1, 1, 1), "SAME",
                                     dimension_numbers=dn)
        y = y + b.reshape(1, C, 1, 1, 1)
        return jnp.where(y >= 0, y, a.reshape(1, C, 1, 1, 1) * y)

    return stage(stage(x, w1, b1, a1), w2, b2, a2)


if __name__ == "__main__":
    # small shapes consistent with the module (Conv3d -> 5D NCDHW input)
    N, C, D, H, W = 2, 4, 8, 8, 8
    K = 3

    key = jax.random.PRNGKey(0)
    kx, kw1, kb1, kw2, kb2 = jax.random.split(key, 5)

    x = jax.random.normal(kx, (N, C, D, H, W), jnp.float32)

    # PyTorch Conv3d default init: U(-1/sqrt(fan_in), 1/sqrt(fan_in))
    fan_in = C * K ** 3
    bound = 1.0 / (fan_in ** 0.5)
    w1 = jax.random.uniform(kw1, (C, C, K, K, K), jnp.float32, -bound, bound)
    b1 = jax.random.uniform(kb1, (C,), jnp.float32, -bound, bound)
    w2 = jax.random.uniform(kw2, (C, C, K, K, K), jnp.float32, -bound, bound)
    b2 = jax.random.uniform(kb2, (C,), jnp.float32, -bound, bound)
    a1 = jnp.full((C,), 0.25, jnp.float32)   # nn.PReLU default init
    a2 = jnp.full((C,), 0.25, jnp.float32)
    params = (w1, b1, a1, w2, b2, a2)

    out = jax.block_until_ready(resblock_forward(x, params, K))

    ref = resblock_ref(x, params, K)
    assert out.shape == ref.shape == (N, C, D, H, W)
    max_err = float(jnp.max(jnp.abs(out - ref)))
    assert max_err < 1e-4, f"max abs error {max_err}"

    print("KERNEL_OK")
</pallas_src>

<mosaic_0001>
module attributes {stable_mosaic.version = 11 : i64} {
  func.func @_resblock_kernel(%arg0: i32, %arg1: memref<1x4x1400xf32, #tpu.memory_space<vmem>>, %arg2: memref<4x108xf32, #tpu.memory_space<vmem>>, %arg3: memref<4x1xf32, #tpu.memory_space<vmem>>, %arg4: memref<4x1xf32, #tpu.memory_space<vmem>>, %arg5: memref<4x108xf32, #tpu.memory_space<vmem>>, %arg6: memref<4x1xf32, #tpu.memory_space<vmem>>, %arg7: memref<4x1xf32, #tpu.memory_space<vmem>>, %arg8: memref<1x1000xf32, #tpu.memory_space<vmem>>, %arg9: memref<1x4x1000xf32, #tpu.memory_space<vmem>>, %arg10: memref<4x1256xf32, #tpu.memory_space<vmem>>, %arg11: memref<108x1000xf32, #tpu.memory_space<vmem>>) attributes {dimension_semantics = [#tpu.dimension_semantics<parallel>], iteration_bounds = array<i64: 2>, scalar_prefetch = 0 : i64, scratch_operands = 2 : i64, tpu.core_type = #tpu.core_type<tc>, window_params = [{transform_indices = @transform_0, window_bounds = array<i64: 1, 4, 1400>}, {pipeline_mode = #tpu.pipeline_mode<synchronous>, transform_indices = @transform_1, window_bounds = array<i64: 4, 108>}, {pipeline_mode = #tpu.pipeline_mode<synchronous>, transform_indices = @transform_2, window_bounds = array<i64: 4, 1>}, {pipeline_mode = #tpu.pipeline_mode<synchronous>, transform_indices = @transform_3, window_bounds = array<i64: 4, 1>}, {pipeline_mode = #tpu.pipeline_mode<synchronous>, transform_indices = @transform_4, window_bounds = array<i64: 4, 108>}, {pipeline_mode = #tpu.pipeline_mode<synchronous>, transform_indices = @transform_5, window_bounds = array<i64: 4, 1>}, {pipeline_mode = #tpu.pipeline_mode<synchronous>, transform_indices = @transform_6, window_bounds = array<i64: 4, 1>}, {pipeline_mode = #tpu.pipeline_mode<synchronous>, transform_indices = @transform_7, window_bounds = array<i64: 1, 1000>}, {transform_indices = @transform_8, window_bounds = array<i64: 1, 4, 1000>}]} {
    %c0 = arith.constant 0 : index
    %c0_0 = arith.constant 0 : index
    %c89 = arith.constant 89 : index
    %0 = vector.load %arg1[%c0, %c0_0, %c89] : memref<1x4x1400xf32, #tpu.memory_space<vmem>>, vector<1x4x1000xf32>
    %1 = vector.shape_cast %0 : vector<1x4x1000xf32> to vector<4x1000xf32>
    %c0_1 = arith.constant 0 : index
    %c0_2 = arith.constant 0 : index
    %c90 = arith.constant 90 : index
    %2 = vector.load %arg1[%c0_1, %c0_2, %c90] : memref<1x4x1400xf32, #tpu.memory_space<vmem>>, vector<1x4x1000xf32>
    %3 = vector.shape_cast %2 : vector<1x4x1000xf32> to vector<4x1000xf32>
    %4 = tpu.concatenate %1, %3 in 0 : vector<4x1000xf32>, vector<4x1000xf32> -> vector<8x1000xf32>
    %c0_3 = arith.constant 0 : index
    %c0_4 = arith.constant 0 : index
    %5 = vector.load %arg11[%c0_3, %c0_4] : memref<108x1000xf32, #tpu.memory_space<vmem>>, vector<8x1000xf32>
    tpu.vector_store %arg11[%c0_3, %c0_4], %4 {strides = array<i32>} : memref<108x1000xf32, #tpu.memory_space<vmem>>, vector<8x1000xf32>,
    %c0_5 = arith.constant 0 : index
    %c0_6 = arith.constant 0 : index
    %c91 = arith.constant 91 : index
    %6 = vector.load %arg1[%c0_5, %c0_6, %c91] : memref<1x4x1400xf32, #tpu.memory_space<vmem>>, vector<1x4x1000xf32>
    %7 = vector.shape_cast %6 : vector<1x4x1000xf32> to vector<4x1000xf32>
    %c0_7 = arith.constant 0 : index
    %c0_8 = arith.constant 0 : index
    %c99 = arith.constant 99 : index
    %8 = vector.load %arg1[%c0_7, %c0_8, %c99] : memref<1x4x1400xf32, #tpu.memory_space<vmem>>, vector<1x4x1000xf32>
    %9 = vector.shape_cast %8 : vector<1x4x1000xf32> to vector<4x1000xf32>
    %10 = tpu.concatenate %7, %9 in 0 : vector<4x1000xf32>, vector<4x1000xf32> -> vector<8x1000xf32>
    %c8 = arith.constant 8 : index
    %c0_9 = arith.constant 0 : index
    %11 = vector.load %arg11[%c8, %c0_9] : memref<108x1000xf32, #tpu.memory_space<vmem>>, vector<8x1000xf32>
    tpu.vector_store %arg11[%c8, %c0_9], %10 {strides = array<i32>} : memref<108x1000xf32, #tpu.memory_space<vmem>>, vector<8x1000xf32>,
    %c0_10 = arith.constant 0 : index
    %c0_11 = arith.constant 0 : index
    %c100 = arith.constant 100 : index
    %12 = vector.load %arg1[%c0_10, %c0_11, %c100] : memref<1x4x1400xf32, #tpu.memory_space<vmem>>, vector<1x4x1000xf32>
    %13 = vector.shape_cast %12 : vector<1x4x1000xf32> to vector<4x1000xf32>
    %c0_12 = arith.constant 0 : index
    %c0_13 = arith.constant 0 : index
    %c101 = arith.constant 101 : index
    %14 = vector.load %arg1[%c0_12, %c0_13, %c101] : memref<1x4x1400xf32, #tpu.memory_space<vmem>>, vector<1x4x1000xf32>
    %15 = vector.shape_cast %14 : vector<1x4x1000xf32> to vector<4x1000xf32>
    %16 = tpu.concatenate %13, %15 in 0 : vector<4x1000xf32>, vector<4x1000xf32> -> vector<8x1000xf32>
    %c16 = arith.constant 16 : index
    %c0_14 = arith.constant 0 : index
    %17 = vector.load %arg11[%c16, %c0_14] : memref<108x1000xf32, #tpu.memory_space<vmem>>, vector<8x1000xf32>
    tpu.vector_store %arg11[%c16, %c0_14], %16 {strides = array<i32>} : memref<108x1000xf32, #tpu.memory_space<vmem>>, vector<8x1000xf32>,
    %c0_15 = arith.constant 0 : index
    %c0_16 = arith.constant 0 : index
    %c109 = arith.constant 109 : index
    %18 = vector.load %arg1[%c0_15, %c0_16, %c109] : memref<1x4x1400xf32, #tpu.memory_space<vmem>>, vector<1x4x1000xf32>
    %19 = vector.shape_cast %18 : vector<1x4x1000xf32> to vector<4x1000xf32>
    %c0_17 = arith.constant 0 : index
    %c0_18 = arith.constant 0 : index
    %c110 = arith.constant 110 : index
    %20 = vector.load %arg1[%c0_17, %c0_18, %c110] : memref<1x4x1400xf32, #tpu.memory_space<vmem>>, vector<1x4x1000xf32>
    %21 = vector.shape_cast %20 : vector<1x4x1000xf32> to vector<4x1000xf32>
    %22 = tpu.concatenate %19, %21 in 0 : vector<4x1000xf32>, vector<4x1000xf32> -> vector<8x1000xf32>
    %c24 = arith.constant 24 : index
    %c0_19 = arith.constant 0 : index
    %23 = vector.load %arg11[%c24, %c0_19] : memref<108x1000xf32, #tpu.memory_space<vmem>>, vector<8x1000xf32>
    tpu.vector_store %arg11[%c24, %c0_19], %22 {strides = array<i32>} : memref<108x1000xf32, #tpu.memory_space<vmem>>, vector<8x1000xf32>,
    %c0_20 = arith.constant 0 : index
    %c0_21 = arith.constant 0 : index
    %c111 = arith.constant 111 : index
    %24 = vector.load %arg1[%c0_20, %c0_21, %c111] : memref<1x4x1400xf32, #tpu.memory_space<vmem>>, vector<1x4x1000xf32>
    %25 = vector.shape_cast %24 : vector<1x4x1000xf32> to vector<4x1000xf32>
    %c0_22 = arith.constant 0 : index
    %c0_23 = arith.constant 0 : index
    %c189 = arith.constant 189 : index
    %26 = vector.load %arg1[%c0_22, %c0_23, %c189] : memref<1x4x1400xf32, #tpu.memory_space<vmem>>, vector<1x4x1000xf32>
    %27 = vector.shape_cast %26 : vector<1x4x1000xf32> to vector<4x1000xf32>
    %28 = tpu.concatenate %25, %27 in 0 : vector<4x1000xf32>, vector<4x1000xf32> -> vector<8x1000xf32>
    %c32 = arith.constant 32 : index
    %c0_24 = arith.constant 0 : index
    %29 = vector.load %arg11[%c32, %c0_24] : memref<108x1000xf32, #tpu.memory_space<vmem>>, vector<8x1000xf32>
    tpu.vector_store %arg11[%c32, %c0_24], %28 {strides = array<i32>} : memref<108x1000xf32, #tpu.memory_space<vmem>>, vector<8x1000xf32>,
    %c0_25 = arith.constant 0 : index
    %c0_26 = arith.constant 0 : index
    %c190 = arith.constant 190 : index
    %30 = vector.load %arg1[%c0_25, %c0_26, %c190] : memref<1x4x1400xf32, #tpu.memory_space<vmem>>, vector<1x4x1000xf32>
    %31 = vector.shape_cast %30 : vector<1x4x1000xf32> to vector<4x1000xf32>
    %c0_27 = arith.constant 0 : index
    %c0_28 = arith.constant 0 : index
    %c191 = arith.constant 191 : index
    %32 = vector.load %arg1[%c0_27, %c0_28, %c191] : memref<1x4x1400xf32, #tpu.memory_space<vmem>>, vector<1x4x1000xf32>
    %33 = vector.shape_cast %32 : vector<1x4x1000xf32> to vector<4x1000xf32>
    %34 = tpu.concatenate %31, %33 in 0 : vector<4x1000xf32>, vector<4x1000xf32> -> vector<8x1000xf32>
    %c40 = arith.constant 40 : index
    %c0_29 = arith.constant 0 : index
    %35 = vector.load %arg11[%c40, %c0_29] : memref<108x1000xf32, #tpu.memory_space<vmem>>, vector<8x1000xf32>
    tpu.vector_store %arg11[%c40, %c0_29], %34 {strides = array<i32>} : memref<108x1000xf32, #tpu.memory_space<vmem>>, vector<8x1000xf32>,
    %c0_30 = arith.constant 0 : index
    %c0_31 = arith.constant 0 : index
    %c199 = arith.constant 199 : index
    %36 = vector.load %arg1[%c0_30, %c0_31, %c199] : memref<1x4x1400xf32, #tpu.memory_space<vmem>>, vector<1x4x1000xf32>
    %37 = vector.shape_cast %36 : vector<1x4x1000xf32> to vector<4x1000xf32>
    %c0_32 = arith.constant 0 : index
    %c0_33 = arith.constant 0 : index
    %c200 = arith.constant 200 : index
    %38 = vector.load %arg1[%c0_32, %c0_33, %c200] : memref<1x4x1400xf32, #tpu.memory_space<vmem>>, vector<1x4x1000xf32>
    %39 = vector.shape_cast %38 : vector<1x4x1000xf32> to vector<4x1000xf32>
    %40 = tpu.concatenate %37, %39 in 0 : vector<4x1000xf32>, vector<4x1000xf32> -> vector<8x1000xf32>
    %c48 = arith.constant 48 : index
    %c0_34 = arith.constant 0 : index
    %41 = vector.load %arg11[%c48, %c0_34] : memref<108x1000xf32, #tpu.memory_space<vmem>>, vector<8x1000xf32>
    tpu.vector_store %arg11[%c48, %c0_34], %40 {strides = array<i32>} : memref<108x1000xf32, #tpu.memory_space<vmem>>, vector<8x1000xf32>,
    %c0_35 = arith.constant 0 : index
    %c0_36 = arith.constant 0 : index
    %c201 = arith.constant 201 : index
    %42 = vector.load %arg1[%c0_35, %c0_36, %c201] : memref<1x4x1400xf32, #tpu.memory_space<vmem>>, vector<1x4x1000xf32>
    %43 = vector.shape_cast %42 : vector<1x4x1000xf32> to vector<4x1000xf32>
    %c0_37 = arith.constant 0 : index
    %c0_38 = arith.constant 0 : index
    %c209 = arith.constant 209 : index
    %44 = vector.load %arg1[%c0_37, %c0_38, %c209] : memref<1x4x1400xf32, #tpu.memory_space<vmem>>, vector<1x4x1000xf32>
    %45 = vector.shape_cast %44 : vector<1x4x1000xf32> to vector<4x1000xf32>
    %46 = tpu.concatenate %43, %45 in 0 : vector<4x1000xf32>, vector<4x1000xf32> -> vector<8x1000xf32>
    %c56 = arith.constant 56 : index
    %c0_39 = arith.constant 0 : index
    %47 = vector.load %arg11[%c56, %c0_39] : memref<108x1000xf32, #tpu.memory_space<vmem>>, vector<8x1000xf32>
    tpu.vector_store %arg11[%c56, %c0_39], %46 {strides = array<i32>} : memref<108x1000xf32, #tpu.memory_space<vmem>>, vector<8x1000xf32>,
    %c0_40 = arith.constant 0 : index
    %c0_41 = arith.constant 0 : index
    %c210 = arith.constant 210 : index
    %48 = vector.load %arg1[%c0_40, %c0_41, %c210] : memref<1x4x1400xf32, #tpu.memory_space<vmem>>, vector<1x4x1000xf32>
    %49 = vector.shape_cast %48 : vector<1x4x1000xf32> to vector<4x1000xf32>
    %c0_42 = arith.constant 0 : index
    %c0_43 = arith.constant 0 : index
    %c211 = arith.constant 211 : index
    %50 = vector.load %arg1[%c0_42, %c0_43, %c211] : memref<1x4x1400xf32, #tpu.memory_space<vmem>>, vector<1x4x1000xf32>
    %51 = vector.shape_cast %50 : vector<1x4x1000xf32> to vector<4x1000xf32>
    %52 = tpu.concatenate %49, %51 in 0 : vector<4x1000xf32>, vector<4x1000xf32> -> vector<8x1000xf32>
    %c64 = arith.constant 64 : index
    %c0_44 = arith.constant 0 : index
    %53 = vector.load %arg11[%c64, %c0_44] : memref<108x1000xf32, #tpu.memory_space<vmem>>, vector<8x1000xf32>
    tpu.vector_store %arg11[%c64, %c0_44], %52 {strides = array<i32>} : memref<108x1000xf32, #tpu.memory_space<vmem>>, vector<8x1000xf32>,
    %c0_45 = arith.constant 0 : index
    %c0_46 = arith.constant 0 : index
    %c289 = arith.constant 289 : index
    %54 = vector.load %arg1[%c0_45, %c0_46, %c289] : memref<1x4x1400xf32, #tpu.memory_space<vmem>>, vector<1x4x1000xf32>
    %55 = vector.shape_cast %54 : vector<1x4x1000xf32> to vector<4x1000xf32>
    %c0_47 = arith.constant 0 : index
    %c0_48 = arith.constant 0 : index
    %c290 = arith.constant 290 : index
    %56 = vector.load %arg1[%c0_47, %c0_48, %c290] : memref<1x4x1400xf32, #tpu.memory_space<vmem>>, vector<1x4x1000xf32>
    %57 = vector.shape_cast %56 : vector<1x4x1000xf32> to vector<4x1000xf32>
    %58 = tpu.concatenate %55, %57 in 0 : vector<4x1000xf32>, vector<4x1000xf32> -> vector<8x1000xf32>
    %c72 = arith.constant 72 : index
    %c0_49 = arith.constant 0 : index
    %59 = vector.load %arg11[%c72, %c0_49] : memref<108x1000xf32, #tpu.memory_space<vmem>>, vector<8x1000xf32>
    tpu.vector_store %arg11[%c72, %c0_49], %58 {strides = array<i32>} : memref<108x1000xf32, #tpu.memory_space<vmem>>, vector<8x1000xf32>,
    %c0_50 = arith.constant 0 : index
    %c0_51 = arith.constant 0 : index
    %c291 = arith.constant 291 : index
    %60 = vector.load %arg1[%c0_50, %c0_51, %c291] : memref<1x4x1400xf32, #tpu.memory_space<vmem>>, vector<1x4x1000xf32>
    %61 = vector.shape_cast %60 : vector<1x4x1000xf32> to vector<4x1000xf32>
    %c0_52 = arith.constant 0 : index
    %c0_53 = arith.constant 0 : index
    %c299 = arith.constant 299 : index
    %62 = vector.load %arg1[%c0_52, %c0_53, %c299] : memref<1x4x1400xf32, #tpu.memory_space<vmem>>, vector<1x4x1000xf32>
    %63 = vector.shape_cast %62 : vector<1x4x1000xf32> to vector<4x1000xf32>
    %64 = tpu.concatenate %61, %63 in 0 : vector<4x1000xf32>, vector<4x1000xf32> -> vector<8x1000xf32>
    %c80 = arith.constant 80 : index
    %c0_54 = arith.constant 0 : index
    %65 = vector.load %arg11[%c80, %c0_54] : memref<108x1000xf32, #tpu.memory_space<vmem>>, vector<8x1000xf32>
    tpu.vector_store %arg11[%c80, %c0_54], %64 {strides = array<i32>} : memref<108x1000xf32, #tpu.memory_space<vmem>>, vector<8x1000xf32>,
    %c0_55 = arith.constant 0 : index
    %c0_56 = arith.constant 0 : index
    %c300 = arith.constant 300 : index
    %66 = vector.load %arg1[%c0_55, %c0_56, %c300] : memref<1x4x1400xf32, #tpu.memory_space<vmem>>, vector<1x4x1000xf32>
    %67 = vector.shape_cast %66 : vector<1x4x1000xf32> to vector<4x1000xf32>
    %c0_57 = arith.constant 0 : index
    %c0_58 = arith.constant 0 : index
    %c301 = arith.constant 301 : index
    %68 = vector.load %arg1[%c0_57, %c0_58, %c301] : memref<1x4x1400xf32, #tpu.memory_space<vmem>>, vector<1x4x1000xf32>
    %69 = vector.shape_cast %68 : vector<1x4x1000xf32> to vector<4x1000xf32>
    %70 = tpu.concatenate %67, %69 in 0 : vector<4x1000xf32>, vector<4x1000xf32> -> vector<8x1000xf32>
    %c88 = arith.constant 88 : index
    %c0_59 = arith.constant 0 : index
    %71 = vector.load %arg11[%c88, %c0_59] : memref<108x1000xf32, #tpu.memory_space<vmem>>, vector<8x1000xf32>
    tpu.vector_store %arg11[%c88, %c0_59], %70 {strides = array<i32>} : memref<108x1000xf32, #tpu.memory_space<vmem>>, vector<8x1000xf32>,
    %c0_60 = arith.constant 0 : index
    %c0_61 = arith.constant 0 : index
    %c309 = arith.constant 309 : index
    %72 = vector.load %arg1[%c0_60, %c0_61, %c309] : memref<1x4x1400xf32, #tpu.memory_space<vmem>>, vector<1x4x1000xf32>
    %73 = vector.shape_cast %72 : vector<1x4x1000xf32> to vector<4x1000xf32>
    %c0_62 = arith.constant 0 : index
    %c0_63 = arith.constant 0 : index
    %c310 = arith.constant 310 : index
    %74 = vector.load %arg1[%c0_62, %c0_63, %c310] : memref<1x4x1400xf32, #tpu.memory_space<vmem>>, vector<1x4x1000xf32>
    %75 = vector.shape_cast %74 : vector<1x4x1000xf32> to vector<4x1000xf32>
    %76 = tpu.concatenate %73, %75 in 0 : vector<4x1000xf32>, vector<4x1000xf32> -> vector<8x1000xf32>
    %c96 = arith.constant 96 : index
    %c0_64 = arith.constant 0 : index
    %77 = vector.load %arg11[%c96, %c0_64] : memref<108x1000xf32, #tpu.memory_space<vmem>>, vector<8x1000xf32>
    tpu.vector_store %arg11[%c96, %c0_64], %76 {strides = array<i32>} : memref<108x1000xf32, #tpu.memory_space<vmem>>, vector<8x1000xf32>,
    %c0_65 = arith.constant 0 : index
    %c0_66 = arith.constant 0 : index
    %c311 = arith.constant 311 : index
    %78 = vector.load %arg1[%c0_65, %c0_66, %c311] : memref<1x4x1400xf32, #tpu.memory_space<vmem>>, vector<1x4x1000xf32>
    %79 = vector.shape_cast %78 : vector<1x4x1000xf32> to vector<4x1000xf32>
    %c104 = arith.constant 104 : index
    %c0_67 = arith.constant 0 : index
    %80 = vector.load %arg11[%c104, %c0_67] : memref<108x1000xf32, #tpu.memory_space<vmem>>, vector<4x1000xf32>
    tpu.vector_store %arg11[%c104, %c0_67], %79 {strides = array<i32>} : memref<108x1000xf32, #tpu.memory_space<vmem>>, vector<4x1000xf32>,
    %c0_68 = arith.constant 0 : index
    %c0_69 = arith.constant 0 : index
    %81 = vector.load %arg2[%c0_68, %c0_69] : memref<4x108xf32, #tpu.memory_space<vmem>>, vector<4x108xf32>
    %c0_70 = arith.constant 0 : index
    %c0_71 = arith.constant 0 : index
    %82 = vector.load %arg11[%c0_70, %c0_71] : memref<108x1000xf32, #tpu.memory_space<vmem>>, vector<108x1000xf32>
    %cst = arith.constant dense<0.000000e+00> : vector<4x1000xf32>
    %83 = tpu.matmul %81, %82, %cst {dimension_numbers = #tpu.dot_dimension_numbers<[1], [0], [0], [1], [0, 0, 1, 1], [], []>} : vector<4x108xf32>, vector<108x1000xf32>, vector<4x1000xf32> -> vector<4x1000xf32>
    %c0_72 = arith.constant 0 : index
    %c0_73 = arith.constant 0 : index
    %84 = vector.load %arg3[%c0_72, %c0_73] : memref<4x1xf32, #tpu.memory_space<vmem>>, vector<4x1xf32>
    %85 = vector.broadcast %84 : vector<4x1xf32> to vector<4x1000xf32>
    %86 = arith.addf %83, %85 : vector<4x1000xf32>
    %cst_74 = arith.constant 0.000000e+00 : f32
    %87 = vector.broadcast %cst_74 : f32 to vector<4x1000xf32>
    %88 = arith.cmpf oge, %86, %87 : vector<4x1000xf32>
    %c0_75 = arith.constant 0 : index
    %c0_76 = arith.constant 0 : index
    %89 = vector.load %arg4[%c0_75, %c0_76] : memref<4x1xf32, #tpu.memory_space<vmem>>, vector<4x1xf32>
    %90 = vector.broadcast %89 : vector<4x1xf32> to vector<4x1000xf32>
    %91 = arith.mulf %90, %86 : vector<4x1000xf32>
    %92 = arith.select %88, %86, %91 : vector<4x1000xi1>, vector<4x1000xf32>
    %c0_77 = arith.constant 0 : index
    %c0_78 = arith.constant 0 : index
    %93 = vector.load %arg8[%c0_77, %c0_78] : memref<1x1000xf32, #tpu.memory_space<vmem>>, vector<1x1000xf32>
    %94 = vector.broadcast %93 : vector<1x1000xf32> to vector<4x1000xf32>
    %95 = arith.mulf %92, %94 : vector<4x1000xf32>
    %cst_79 = arith.constant 0.000000e+00 : f32
    %96 = vector.broadcast %cst_79 : f32 to vector<4x128xf32>
    %c0_80 = arith.constant 0 : index
    %c0_81 = arith.constant 0 : index
    %97 = vector.load %arg10[%c0_80, %c0_81] : memref<4x1256xf32, #tpu.memory_space<vmem>>, vector<4x128xf32>
    tpu.vector_store %arg10[%c0_80, %c0_81], %96 {strides = array<i32>} : memref<4x1256xf32, #tpu.memory_space<vmem>>, vector<4x128xf32>,
    %cst_82 = arith.constant 0.000000e+00 : f32
    %98 = vector.broadcast %cst_82 : f32 to vector<4x128xf32>
    %c0_83 = arith.constant 0 : index
    %c1128 = arith.constant 1128 : index
    %99 = vector.load %arg10[%c0_83, %c1128] : memref<4x1256xf32, #tpu.memory_space<vmem>>, vector<4x128xf32>
    tpu.vector_store %arg10[%c0_83, %c1128], %98 {strides = array<i32>} : memref<4x1256xf32, #tpu.memory_space<vmem>>, vector<4x128xf32>,
    %c0_84 = arith.constant 0 : index
    %c128 = arith.constant 128 : index
    %100 = vector.load %arg10[%c0_84, %c128] : memref<4x1256xf32, #tpu.memory_space<vmem>>, vector<4x1000xf32>
    tpu.vector_store %arg10[%c0_84, %c128], %95 {strides = array<i32>} : memref<4x1256xf32, #tpu.memory_space<vmem>>, vector<4x1000xf32>,
    %c0_85 = arith.constant 0 : index
    %c17 = arith.constant 17 : index
    %101 = vector.load %arg10[%c0_85, %c17] : memref<4x1256xf32, #tpu.memory_space<vmem>>, vector<4x1000xf32>
    %c0_86 = arith.constant 0 : index
    %c18 = arith.constant 18 : index
    %102 = vector.load %arg10[%c0_86, %c18] : memref<4x1256xf32, #tpu.memory_space<vmem>>, vector<4x1000xf32>
    %103 = tpu.concatenate %101, %102 in 0 : vector<4x1000xf32>, vector<4x1000xf32> -> vector<8x1000xf32>
    %c0_87 = arith.constant 0 : index
    %c0_88 = arith.constant 0 : index
    %104 = vector.load %arg11[%c0_87, %c0_88] : memref<108x1000xf32, #tpu.memory_space<vmem>>, vector<8x1000xf32>
    tpu.vector_store %arg11[%c0_87, %c0_88], %103 {strides = array<i32>} : memref<108x1000xf32, #tpu.memory_space<vmem>>, vector<8x1000xf32>,
    %c0_89 = arith.constant 0 : index
    %c19 = arith.constant 19 : index
    %105 = vector.load %arg10[%c0_89, %c19] : memref<4x1256xf32, #tpu.memory_space<vmem>>, vector<4x1000xf32>
    %c0_90 = arith.constant 0 : index
    %c27 = arith.constant 27 : index
    %106 = vector.load %arg10[%c0_90, %c27] : memref<4x1256xf32, #tpu.memory_space<vmem>>, vector<4x1000xf32>
    %107 = tpu.concatenate %105, %106 in 0 : vector<4x1000xf32>, vector<4x1000xf32> -> vector<8x1000xf32>
    %c8_91 = arith.constant 8 : index
    %c0_92 = arith.constant 0 : index
    %108 = vector.load %arg11[%c8_91, %c0_92] : memref<108x1000xf32, #tpu.memory_space<vmem>>, vector<8x1000xf32>
    tpu.vector_store %arg11[%c8_91, %c0_92], %107 {strides = array<i32>} : memref<108x1000xf32, #tpu.memory_space<vmem>>, vector<8x1000xf32>,
    %c0_93 = arith.constant 0 : index
    %c28 = arith.constant 28 : index
    %109 = vector.load %arg10[%c0_93, %c28] : memref<4x1256xf32, #tpu.memory_space<vmem>>, vector<4x1000xf32>
    %c0_94 = arith.constant 0 : index
    %c29 = arith.constant 29 : index
    %110 = vector.load %arg10[%c0_94, %c29] : memref<4x1256xf32, #tpu.memory_space<vmem>>, vector<4x1000xf32>
    %111 = tpu.concatenate %109, %110 in 0 : vector<4x1000xf32>, vector<4x1000xf32> -> vector<8x1000xf32>
    %c16_95 = arith.constant 16 : index
    %c0_96 = arith.constant 0 : index
    %112 = vector.load %arg11[%c16_95, %c0_96] : memref<108x1000xf32, #tpu.memory_space<vmem>>, vector<8x1000xf32>
    tpu.vector_store %arg11[%c16_95, %c0_96], %111 {strides = array<i32>} : memref<108x1000xf32, #tpu.memory_space<vmem>>, vector<8x1000xf32>,
    %c0_97 = arith.constant 0 : index
    %c37 = arith.constant 37 : index
    %113 = vector.load %arg10[%c0_97, %c37] : memref<4x1256xf32, #tpu.memory_space<vmem>>, vector<4x1000xf32>
    %c0_98 = arith.constant 0 : index
    %c38 = arith.constant 38 : index
    %114 = vector.load %arg10[%c0_98, %c38] : memref<4x1256xf32, #tpu.memory_space<vmem>>, vector<4x1000xf32>
    %115 = tpu.concatenate %113, %114 in 0 : vector<4x1000xf32>, vector<4x1000xf32> -> vector<8x1000xf32>
    %c24_99 = arith.constant 24 : index
    %c0_100 = arith.constant 0 : index
    %116 = vector.load %arg11[%c24_99, %c0_100] : memref<108x1000xf32, #tpu.memory_space<vmem>>, vector<8x1000xf32>
    tpu.vector_store %arg11[%c24_99, %c0_100], %115 {strides = array<i32>} : memref<108x1000xf32, #tpu.memory_space<vmem>>, vector<8x1000xf32>,
    %c0_101 = arith.constant 0 : index
    %c39 = arith.constant 39 : index
    %117 = vector.load %arg10[%c0_101, %c39] : memref<4x1256xf32, #tpu.memory_space<vmem>>, vector<4x1000xf32>
    %c0_102 = arith.constant 0 : index
    %c117 = arith.constant 117 : index
    %118 = vector.load %arg10[%c0_102, %c117] : memref<4x1256xf32, #tpu.memory_space<vmem>>, vector<4x1000xf32>
    %119 = tpu.concatenate %117, %118 in 0 : vector<4x1000xf32>, vector<4x1000xf32> -> vector<8x1000xf32>
    %c32_103 = arith.constant 32 : index
    %c0_104 = arith.constant 0 : index
    %120 = vector.load %arg11[%c32_103, %c0_104] : memref<108x1000xf32, #tpu.memory_space<vmem>>, vector<8x1000xf32>
    tpu.vector_store %arg11[%c32_103, %c0_104], %119 {strides = array<i32>} : memref<108x1000xf32, #tpu.memory_space<vmem>>, vector<8x1000xf32>,
    %c0_105 = arith.constant 0 : index
    %c118 = arith.constant 118 : index
    %121 = vector.load %arg10[%c0_105, %c118] : memref<4x1256xf32, #tpu.memory_space<vmem>>, vector<4x1000xf32>
    %c0_106 = arith.constant 0 : index
    %c119 = arith.constant 119 : index
    %122 = vector.load %arg10[%c0_106, %c119] : memref<4x1256xf32, #tpu.memory_space<vmem>>, vector<4x1000xf32>
    %123 = tpu.concatenate %121, %122 in 0 : vector<4x1000xf32>, vector<4x1000xf32> -> vector<8x1000xf32>
    %c40_107 = arith.constant 40 : index
    %c0_108 = arith.constant 0 : index
    %124 = vector.load %arg11[%c40_107, %c0_108] : memref<108x1000xf32, #tpu.memory_space<vmem>>, vector<8x1000xf32>
    tpu.vector_store %arg11[%c40_107, %c0_108], %123 {strides = array<i32>} : memref<108x1000xf32, #tpu.memory_space<vmem>>, vector<8x1000xf32>,
    %c0_109 = arith.constant 0 : index
    %c127 = arith.constant 127 : index
    %125 = vector.load %arg10[%c0_109, %c127] : memref<4x1256xf32, #tpu.memory_space<vmem>>, vector<4x1000xf32>
    %c0_110 = arith.constant 0 : index
    %c128_111 = arith.constant 128 : index
    %126 = vector.load %arg10[%c0_110, %c128_111] : memref<4x1256xf32, #tpu.memory_space<vmem>>, vector<4x1000xf32>
    %127 = tpu.concatenate %125, %126 in 0 : vector<4x1000xf32>, vector<4x1000xf32> -> vector<8x1000xf32>
    %c48_112 = arith.constant 48 : index
    %c0_113 = arith.constant 0 : index
    %128 = vector.load %arg11[%c48_112, %c0_113] : memref<108x1000xf32, #tpu.memory_space<vmem>>, vector<8x1000xf32>
    tpu.vector_store %arg11[%c48_112, %c0_113], %127 {strides = array<i32>} : memref<108x1000xf32, #tpu.memory_space<vmem>>, vector<8x1000xf32>,
    %c0_114 = arith.constant 0 : index
    %c129 = arith.constant 129 : index
    %129 = vector.load %arg10[%c0_114, %c129] : memref<4x1256xf32, #tpu.memory_space<vmem>>, vector<4x1000xf32>
    %c0_115 = arith.constant 0 : index
    %c137 = arith.constant 137 : index
    %130 = vector.load %arg10[%c0_115, %c137] : memref<4x1256xf32, #tpu.memory_space<vmem>>, vector<4x1000xf32>
    %131 = tpu.concatenate %129, %130 in 0 : vector<4x1000xf32>, vector<4x1000xf32> -> vector<8x1000xf32>
    %c56_116 = arith.constant 56 : index
    %c0_117 = arith.constant 0 : index
    %132 = vector.load %arg11[%c56_116, %c0_117] : memref<108x1000xf32, #tpu.memory_space<vmem>>, vector<8x1000xf32>
    tpu.vector_store %arg11[%c56_116, %c0_117], %131 {strides = array<i32>} : memref<108x1000xf32, #tpu.memory_space<vmem>>, vector<8x1000xf32>,
    %c0_118 = arith.constant 0 : index
    %c138 = arith.constant 138 : index
    %133 = vector.load %arg10[%c0_118, %c138] : memref<4x1256xf32, #tpu.memory_space<vmem>>, vector<4x1000xf32>
    %c0_119 = arith.constant 0 : index
    %c139 = arith.constant 139 : index
    %134 = vector.load %arg10[%c0_119, %c139] : memref<4x1256xf32, #tpu.memory_space<vmem>>, vector<4x1000xf32>
    %135 = tpu.concatenate %133, %134 in 0 : vector<4x1000xf32>, vector<4x1000xf32> -> vector<8x1000xf32>
    %c64_120 = arith.constant 64 : index
    %c0_121 = arith.constant 0 : index
    %136 = vector.load %arg11[%c64_120, %c0_121] : memref<108x1000xf32, #tpu.memory_space<vmem>>, vector<8x1000xf32>
    tpu.vector_store %arg11[%c64_120, %c0_121], %135 {strides = array<i32>} : memref<108x1000xf32, #tpu.memory_space<vmem>>, vector<8x1000xf32>,
    %c0_122 = arith.constant 0 : index
    %c217 = arith.constant 217 : index
    %137 = vector.load %arg10[%c0_122, %c217] : memref<4x1256xf32, #tpu.memory_space<vmem>>, vector<4x1000xf32>
    %c0_123 = arith.constant 0 : index
    %c218 = arith.constant 218 : index
    %138 = vector.load %arg10[%c0_123, %c218] : memref<4x1256xf32, #tpu.memory_space<vmem>>, vector<4x1000xf32>
    %139 = tpu.concatenate %137, %138 in 0 : vector<4x1000xf32>, vector<4x1000xf32> -> vector<8x1000xf32>
    %c72_124 = arith.constant 72 : index
    %c0_125 = arith.constant 0 : index
    %140 = vector.load %arg11[%c72_124, %c0_125] : memref<108x1000xf32, #tpu.memory_space<vmem>>, vector<8x1000xf32>
    tpu.vector_store %arg11[%c72_124, %c0_125], %139 {strides = array<i32>} : memref<108x1000xf32, #tpu.memory_space<vmem>>, vector<8x1000xf32>,
    %c0_126 = arith.constant 0 : index
    %c219 = arith.constant 219 : index
    %141 = vector.load %arg10[%c0_126, %c219] : memref<4x1256xf32, #tpu.memory_space<vmem>>, vector<4x1000xf32>
    %c0_127 = arith.constant 0 : index
    %c227 = arith.constant 227 : index
    %142 = vector.load %arg10[%c0_127, %c227] : memref<4x1256xf32, #tpu.memory_space<vmem>>, vector<4x1000xf32>
    %143 = tpu.concatenate %141, %142 in 0 : vector<4x1000xf32>, vector<4x1000xf32> -> vector<8x1000xf32>
    %c80_128 = arith.constant 80 : index
    %c0_129 = arith.constant 0 : index
    %144 = vector.load %arg11[%c80_128, %c0_129] : memref<108x1000xf32, #tpu.memory_space<vmem>>, vector<8x1000xf32>
    tpu.vector_store %arg11[%c80_128, %c0_129], %143 {strides = array<i32>} : memref<108x1000xf32, #tpu.memory_space<vmem>>, vector<8x1000xf32>,
    %c0_130 = arith.constant 0 : index
    %c228 = arith.constant 228 : index
    %145 = vector.load %arg10[%c0_130, %c228] : memref<4x1256xf32, #tpu.memory_space<vmem>>, vector<4x1000xf32>
    %c0_131 = arith.constant 0 : index
    %c229 = arith.constant 229 : index
    %146 = vector.load %arg10[%c0_131, %c229] : memref<4x1256xf32, #tpu.memory_space<vmem>>, vector<4x1000xf32>
    %147 = tpu.concatenate %145, %146 in 0 : vector<4x1000xf32>, vector<4x1000xf32> -> vector<8x1000xf32>
    %c88_132 = arith.constant 88 : index
    %c0_133 = arith.constant 0 : index
    %148 = vector.load %arg11[%c88_132, %c0_133] : memref<108x1000xf32, #tpu.memory_space<vmem>>, vector<8x1000xf32>
    tpu.vector_store %arg11[%c88_132, %c0_133], %147 {strides = array<i32>} : memref<108x1000xf32, #tpu.memory_space<vmem>>, vector<8x1000xf32>,
    %c0_134 = arith.constant 0 : index
    %c237 = arith.constant 237 : index
    %149 = vector.load %arg10[%c0_134, %c237] : memref<4x1256xf32, #tpu.memory_space<vmem>>, vector<4x1000xf32>
    %c0_135 = arith.constant 0 : index
    %c238 = arith.constant 238 : index
    %150 = vector.load %arg10[%c0_135, %c238] : memref<4x1256xf32, #tpu.memory_space<vmem>>, vector<4x1000xf32>
    %151 = tpu.concatenate %149, %150 in 0 : vector<4x1000xf32>, vector<4x1000xf32> -> vector<8x1000xf32>
    %c96_136 = arith.constant 96 : index
    %c0_137 = arith.constant 0 : index
    %152 = vector.load %arg11[%c96_136, %c0_137] : memref<108x1000xf32, #tpu.memory_space<vmem>>, vector<8x1000xf32>
    tpu.vector_store %arg11[%c96_136, %c0_137], %151 {strides = array<i32>} : memref<108x1000xf32, #tpu.memory_space<vmem>>, vector<8x1000xf32>,
    %c0_138 = arith.constant 0 : index
    %c239 = arith.constant 239 : index
    %153 = vector.load %arg10[%c0_138, %c239] : memref<4x1256xf32, #tpu.memory_space<vmem>>, vector<4x1000xf32>
    %c104_139 = arith.constant 104 : index
    %c0_140 = arith.constant 0 : index
    %154 = vector.load %arg11[%c104_139, %c0_140] : memref<108x1000xf32, #tpu.memory_space<vmem>>, vector<4x1000xf32>
    tpu.vector_store %arg11[%c104_139, %c0_140], %153 {strides = array<i32>} : memref<108x1000xf32, #tpu.memory_space<vmem>>, vector<4x1000xf32>,
    %c0_141 = arith.constant 0 : index
    %c0_142 = arith.constant 0 : index
    %155 = vector.load %arg5[%c0_141, %c0_142] : memref<4x108xf32, #tpu.memory_space<vmem>>, vector<4x108xf32>
    %c0_143 = arith.constant 0 : index
    %c0_144 = arith.constant 0 : index
    %156 = vector.load %arg11[%c0_143, %c0_144] : memref<108x1000xf32, #tpu.memory_space<vmem>>, vector<108x1000xf32>
    %cst_145 = arith.constant dense<0.000000e+00> : vector<4x1000xf32>
    %157 = tpu.matmul %155, %156, %cst_145 {dimension_numbers = #tpu.dot_dimension_numbers<[1], [0], [0], [1], [0, 0, 1, 1], [], []>} : vector<4x108xf32>, vector<108x1000xf32>, vector<4x1000xf32> -> vector<4x1000xf32>
    %c0_146 = arith.constant 0 : index
    %c0_147 = arith.constant 0 : index
    %158 = vector.load %arg6[%c0_146, %c0_147] : memref<4x1xf32, #tpu.memory_space<vmem>>, vector<4x1xf32>
    %159 = vector.broadcast %158 : vector<4x1xf32> to vector<4x1000xf32>
    %160 = arith.addf %157, %159 : vector<4x1000xf32>
    %cst_148 = arith.constant 0.000000e+00 : f32
    %161 = vector.broadcast %cst_148 : f32 to vector<4x1000xf32>
    %162 = arith.cmpf oge, %160, %161 : vector<4x1000xf32>
    %c0_149 = arith.constant 0 : index
    %c0_150 = arith.constant 0 : index
    %163 = vector.load %arg7[%c0_149, %c0_150] : memref<4x1xf32, #tpu.memory_space<vmem>>, vector<4x1xf32>
    %164 = vector.broadcast %163 : vector<4x1xf32> to vector<4x1000xf32>
    %165 = arith.mulf %164, %160 : vector<4x1000xf32>
    %166 = arith.select %162, %160, %165 : vector<4x1000xi1>, vector<4x1000xf32>
    %c0_151 = arith.constant 0 : index
    %c0_152 = arith.constant 0 : index
    %c0_153 = arith.constant 0 : index
    %167 = vector.load %arg9[%c0_151, %c0_152, %c0_153] : memref<1x4x1000xf32, #tpu.memory_space<vmem>>, vector<1x4x1000xf32>
    %168 = vector.shape_cast %167 : vector<1x4x1000xf32> to vector<4x1000xf32>
    %169 = vector.shape_cast %166 : vector<4x1000xf32> to vector<1x4x1000xf32>
    tpu.vector_store %arg9[%c0_151, %c0_152, %c0_153], %169 {strides = array<i32>} : memref<1x4x1000xf32, #tpu.memory_space<vmem>>, vector<1x4x1000xf32>,
    return
  }
  func.func @transform_0(%arg0: i32) -> (i32, i32, i32) {
    %c0_i32 = arith.constant 0 : i32
    %c0_i32_0 = arith.constant 0 : i32
    %c0_i32_1 = arith.constant 0 : i32
    return %arg0, %c0_i32, %c0_i32_0 : i32, i32, i32
  }
  func.func @transform_1(%arg0: i32) -> (i32, i32) {
    %c0_i32 = arith.constant 0 : i32
    %c0_i32_0 = arith.constant 0 : i32
    %c0_i32_1 = arith.constant 0 : i32
    return %c0_i32, %c0_i32_0 : i32, i32
  }
  func.func @transform_2(%arg0: i32) -> (i32, i32) {
    %c0_i32 = arith.constant 0 : i32
    %c0_i32_0 = arith.constant 0 : i32
    %c0_i32_1 = arith.constant 0 : i32
    return %c0_i32, %c0_i32_0 : i32, i32
  }
  func.func @transform_3(%arg0: i32) -> (i32, i32) {
    %c0_i32 = arith.constant 0 : i32
    %c0_i32_0 = arith.constant 0 : i32
    %c0_i32_1 = arith.constant 0 : i32
    return %c0_i32, %c0_i32_0 : i32, i32
  }
  func.func @transform_4(%arg0: i32) -> (i32, i32) {
    %c0_i32 = arith.constant 0 : i32
    %c0_i32_0 = arith.constant 0 : i32
    %c0_i32_1 = arith.constant 0 : i32
    return %c0_i32, %c0_i32_0 : i32, i32
  }
  func.func @transform_5(%arg0: i32) -> (i32, i32) {
    %c0_i32 = arith.constant 0 : i32
    %c0_i32_0 = arith.constant 0 : i32
    %c0_i32_1 = arith.constant 0 : i32
    return %c0_i32, %c0_i32_0 : i32, i32
  }
  func.func @transform_6(%arg0: i32) -> (i32, i32) {
    %c0_i32 = arith.constant 0 : i32
    %c0_i32_0 = arith.constant 0 : i32
    %c0_i32_1 = arith.constant 0 : i32
    return %c0_i32, %c0_i32_0 : i32, i32
  }
  func.func @transform_7(%arg0: i32) -> (i32, i32) {
    %c0_i32 = arith.constant 0 : i32
    %c0_i32_0 = arith.constant 0 : i32
    %c0_i32_1 = arith.constant 0 : i32
    return %c0_i32, %c0_i32_0 : i32, i32
  }
  func.func @transform_8(%arg0: i32) -> (i32, i32, i32) {
    %c0_i32 = arith.constant 0 : i32
    %c0_i32_0 = arith.constant 0 : i32
    %c0_i32_1 = arith.constant 0 : i32
    return %arg0, %c0_i32, %c0_i32_0 : i32, i32, i32
  }
}

</mosaic_0001>

<bundles_post_ra>
// kernel: tpu_custom_call.1
= control target key start
LH: loop header
LB: loop body
LE: loop exit
PB: predicated region body
PF: predicated region fallthrough
CT: control target
= control target key end

     0   :  { %13 = vsyncpa [#allocation5], 0  ;;  %s7766_s0 = inlined_call_operand.hbm [shape: f32[2,4,1400], index: 0, kind: input, shape index: {}]   ;;  %s7767_s1 = inlined_call_operand.vmem [shape: f32[4,108], index: 1, kind: input, shape index: {}]   ;;  %s7768_s2 = inlined_call_operand.vmem [shape: f32[4,1], index: 2, kind: input, shape index: {}]   ;;  %s7769_s3 = inlined_call_operand.vmem [shape: f32[4,1], index: 3, kind: input, shape index: {}]   ;;  %s7770_s4 = inlined_call_operand.vmem [shape: f32[4,108], index: 4, kind: input, shape index: {}]   ;;  %s7771_s5 = inlined_call_operand.vmem [shape: f32[4,1], index: 5, kind: input, shape index: {}]   ;;  %s7772_s6 = inlined_call_operand.vmem [shape: f32[4,1], index: 6, kind: input, shape index: {}]   ;;  %s7773_s7 = inlined_call_operand.vmem [shape: f32[1,1000], index: 7, kind: input, shape index: {}]   ;;  %s7774_s8 = inlined_call_operand.hbm [shape: f32[2,4,1000], index: 8, kind: output, shape index: {}]  }
   0x1   :  { %15 = vsyncpa [#allocation5 + $0x1], 0 }
   0x2   :  { %16 = vsyncpa [#allocation6], 0 }
   0x3   :  { %18 = vsyncpa [#allocation6 + $0x1], 0  ;;  %s4955_s27 = smov 0   ;;  %s4957_s28 = smov 0  }
   0x4   :  { %s4959_s29 = smov 0   ;;  %s4961_s30 = smov 0  }
   0x5 LB: > { %7798 = sst [smem:[#allocation10_spill]] %s4875_s29  ;;  %s4976_s9 = sadd.s32 4294967295, %s4879_s30   ;;  %s4879_s30 = sphi %s4961_s30, %s7871_s30   ;;  %s4875_s29 = sphi %s4959_s29, %s7868_s29   ;;  %s4871_s28 = sphi %s4957_s28, %s7870_s28   ;;  %s4867_s27 = sphi %s4955_s27, %s7869_s27  }
   0x6   : > { %s4602_s10 = sadd.s32 4294967294, %s4879_s30   ;;  %s4980_s11 = sadd.s32 1, %s4879_s30  }
   0x7   : > { %s31_s12 = sadd.s32 1, %s4875_s29  ;;  %s28_s13 = ssub.s32 %s4879_s30, %s4980_s11 }
   0x8   : > { %p38_p0 = scmp.ne.s32.totalorder %s4875_s29, %s4871_s28  ;;  %p29_p1 = scmp.eq.s32.totalorder %s28_s13, 0 }
   0x9   : > { %p39_p2 = scmp.eq.s32.totalorder %s4879_s30, 0  ;;  %p44_p3 = scmp.ne.s32.totalorder %s4871_s28, %s4867_s27 }
   0xa   : > { %p45_p4 = scmp.eq.s32.totalorder %s4976_s9, 0  ;;  %p215_p7 = scmp.eq.s32.totalorder %s4976_s9, 1 }
   0xb   : > { %s4992_s14 = scalar_select %p29_p1, %s4875_s29, %s31_s12  }
   0xc   : > { %p40_p5 = por %p39_p2, %p38_p0  ;;  %p4994_p6 = por %p45_p4, %p44_p3 }
   0xd   : > { %7799 = sst [smem:[#allocation11_spill]] %s4992_s14  ;;  %p221_p8 = scmp.eq.s32.totalorder %s4602_s10, 1 }
   0xe   : > { %s7800_s15 = scalar_select %p4994_p6, 1, 0 }
   0xf   : > { %p4653_p10 = scmp.lt.s32.totalorder %s4879_s30, 2  ;;  %p5001_p11 = por %p215_p7, %p38_p0 }
  0x10   : > { %p5005_p12 = por %p221_p8, %p44_p3  ;;  %s262_s18 = sand.u32 1, %s4875_s29  }
  0x11   : > { %s7801_s16 = scalar_select %p5001_p11, 1, 0 }
  0x12   : > { %s7802_s17 = scalar_select %p5005_p12, 1, 0 }
  0x13   : > { %s4639_s19 = smul.u32 704, %s4879_s30  ;;  %p5016_p13 = pnand %p4653_p10, %p40_p5 }
  0x14   : > { %s4638_s20 = smul.u32 44, %s262_s18  ;;  %s263_s10 = scalar_lea.sflag [#allocation5], %s262_s18 }
  0x15   : > { %s5014_s23 = scalar_lea.hbm %s7766_s0, %s4639_s19  ;;  %p4789_p3 = pneg %p5016_p13 }
  0x16   : > { %s266_s25 = scalar_lea.vmem [#allocation4], %s4638_s20  ;;  %s4787_s12 = scalar_lea.hbm %s5014_s23, 704 }
  0x17   : > { %s274_s26 = sshll.u32 %s266_s25, 4  ;;  %p4788_p2 = scmp.ne.s32.totalorder %s5014_s23, %s4787_s12  ;;  %s275_s26 = int_to_ptr.vmem [resolvable:$true] %s274_s26 }
  0x18   : > { %s4792_s21 = scalar_lea.hbm %s7766_s0, 1408  ;;  %p4793_p5 = scmp.lt.s32.totalorder %s5014_s23, %s7766_s0 }
  0x19   : > { %p4790_p4 = pnand %p4789_p3, %p4788_p2  ;;  %p4794_p8 = scmp.lt.s32.totalorder %s4792_s21, %s4787_s12 }
  0x1b   : > { %p4791_p7 = pneg %p4790_p4  ;;  %p4795_p10 = por %p4794_p8, %p4793_p5 }
  0x1d   : > { %p4796_p9 = pnand %p4795_p10, %p4791_p7 }
  0x1f   : > { %4799 = shalt.err (!%p4796_p9)
}
  0x20   : > { %s4800_s20 = scalar_lea.vmem %s275_s26, 704  ;;  %s4881_s18 = smov [#allocation4]  }
  0x21   : > { %p4801_p0 = scmp.ne.s32.totalorder %s275_s26, %s4800_s20  ;;  %s4805_s25 = sshll.u32 %s4881_s18, 4  ;;  %s4806_s25 = int_to_ptr.vmem [resolvable:$false] %s4805_s25 }
  0x22   : > { %s4807_s29 = scalar_lea.vmem %s4806_s25, 1408  ;;  %p4808_p2 = scmp.lt.s32.totalorder %s275_s26, %s4806_s25 }
  0x23   : > { %p4803_p1 = pnand %p4801_p0, %p4789_p3  ;;  %p4809_p4 = scmp.lt.s32.totalorder %s4807_s29, %s4800_s20 }
  0x25   : > { %p4804_p12 = pneg %p4803_p1  ;;  %p4810_p11 = por %p4809_p4, %p4808_p2 }
  0x27   : > { %p4811_p6 = pnand %p4810_p11, %p4804_p12 }
  0x29   : > { %4814 = shalt.err (!%p4811_p6)
}
  0x2a   : > { %4648 = dma.hbm_to_vmem [thread:$0]  (!%p5016_p13), %s5014_s23, 704, %s275_s26, %s263_s10  }
  0x2b   : > { %p7804_p9 = scmp.lt.s32.totalorder %s4879_s30, 3  ;;  %p7805_p7 = scmp.ge.s32.totalorder %s4879_s30, 1 }
  0x2d   : > { %p280_p5 = pnand %p7805_p7, %p7804_p9 }
  0x2f   : > { %283 = sbr.rel (%p280_p5) target bundleno = 1923 (0x783), region = 52 }
  0x34   : > { %s5041_s14 = sand.u32 1, %s4871_s28   ;;  %p7806_p6 = scmp.ne.s32.totalorder %s7800_s15, 0 }
  0x35   : > { %s4640_s29 = smul.u32 44, %s5041_s14  ;;  %s286_s12 = scalar_lea.sflag [#allocation5], %s5041_s14 }
  0x37   : > { %s5045_s13 = scalar_lea.vmem [#allocation4], %s4640_s29 }
  0x38   : > { %4858 = dma.done.wait (%p7806_p6), %s286_s12, 704  }
  0x39   : > { %4860 = vsyncadd (%p7806_p6), %s286_s12, 4294966592  ;;  %v5052_v0 = vld [vmem:[%s5045_s13 + $0x8] sm:$0xff]  ;;  %v5055_v1 = vld [vmem:[%s5045_s13] sm:$0xff]  ;;  %s4882_s23 = smov 127   ;;  %s4883_s15 = smov 120   ;;  %vm363_vm0 = vcmask 1039360  }
  0x3a   : > { %351 = vrot.lane.b32.xlu1 %v5052_v0, %s4882_s23  ;;  %347 = vrot.lane.b32.xlu0 %v5055_v1, %s4882_s23  ;;  %v340_v2 = vcombine.low %v5055_v1, %v5055_v1  ;;  %v5064_v3 = vld [vmem:[%s5045_s13 + $0x10] sm:$0xff]  ;;  %v5071_v4 = vcombine.low %v5052_v0, %v5052_v0  ;;  %v5078_v6 = vld [vmem:[%s5045_s13 + $0x18] sm:$0xff]  ;;  %v5171_v20 = vcombine.high %v5055_v1, %v5055_v1  ;;  %vm381_vm1 = vcmask 1043456   ;;  %s7778_s24 = smov 39   ;;  %s7780_s26 = smov 37  }
  0x3b   : > { %v5075_v5 = vcombine.low %v5064_v3, %v5064_v3  ;;  %v5086_v7 = vcombine.low %v5078_v6, %v5078_v6  ;;  %v5089_v8 = vld [vmem:[%s5045_s13 + $0x20] sm:$0xf]  ;;  %v5184_v25 = vcombine.high %v5052_v0, %v5052_v0  ;;  %v5198_v30 = vcombine.high %v5064_v3, %v5064_v3  ;;  %s7782_s10 = smov 28   ;;  %s7784_s19 = smov 19  }
  0x3c   : > { %v344_v9 = vcombine.low %v5089_v8, %v5089_v8  ;;  %v5112_v10 = vld [vmem:[%s5045_s13 + $0x20] sm:$0xf]  ;;  %v5213_v36 = vcombine.high %v5078_v6, %v5078_v6  ;;  %vm485_vm2 = vcmask 982016   ;;  %s4888_s21 = smov 50   ;;  %vm7786_vm3 = vcmask 318464   ;;  %s4889_s22 = smov 17  }
  0x3d   : > { %v466_v11 = vcombine.low %v5112_v10, %v5112_v10  ;;  %v5135_v12 = vld [vmem:[%s5045_s13 + $0x20] sm:$0xf]  ;;  %vm442_vm4 = vcmask 850944   ;;  %vm7787_vm5 = vcmask 302080   ;;  %vm7788_vm6 = vcmask 228352   ;;  %s4890_s20 = smov 73  }
  0x3e   : > { %355 = vrot.lane.b32.xlu1 %v5064_v3, %s4882_s23  ;;  %345 = vrot.lane.b32.xlu0 %v340_v2, %s4882_s23  ;;  %v586_v13 = vcombine.low %v5135_v12, %v5135_v12  ;;  %v5154_v14 = vld [vmem:[%s5045_s13 + $0x20] sm:$0xf]  ;;  %vm7789_vm7 = vcmask 154624   ;;  %vm852_vm8 = vcmask 408576   ;;  %vm7790_vm9 = vcmask 138240   ;;  %s4891_s18 = smov 75  }
  0x3f   : > { %v705_v15 = vcombine.low %v5154_v14, %v5154_v14  ;;  %s4892_s25 = smov 84   ;;  %s4893_s29 = smov 93   ;;  %vm1915_vm10 = vcmask 596992   ;;  %vm1858_vm11 = vcmask 613376   ;;  %vm1739_vm12 = vcmask 687104  }
  0x40   : > { %s4894_s12 = smov 95   ;;  %vm1620_vm13 = vcmask 760832   ;;  %vm1501_vm14 = vcmask 777216   ;;  %vm1382_vm15 = vcmask 375808   ;;  %p7864_p12 = scmp.ne.s32.totalorder %s7801_s16, 0 }
  0x42   : > { %349 = vrot.lane.b32.xlu1 %v5071_v4, %s4882_s23  ;;  %353 = vrot.lane.b32.xlu0 %v5075_v5, %s4882_s23 }
  0x46   : > { %359 = vrot.lane.b32.xlu1 %v5078_v6, %s4882_s23  ;;  %357 = vrot.lane.b32.xlu0 %v5086_v7, %s4882_s23 }
  0x4a   : > { %361 = vrot.lane.b32.xlu0 %v344_v9, %s4882_s23  ;;  %469 = vrot.lane.b32.xlu1 %v5055_v1, %s4883_s15 }
  0x4e   : > { %467 = vrot.lane.b32.xlu0 %v340_v2, %s4883_s15  ;;  %473 = vrot.lane.b32.xlu1 %v5052_v0, %s4883_s15 }
  0x52   : > { %471 = vrot.lane.b32.xlu0 %v5071_v4, %s4883_s15  ;;  %477 = vrot.lane.b32.xlu1 %v5064_v3, %s4883_s15 }
  0x56   : > { %475 = vrot.lane.b32.xlu0 %v5075_v5, %s4883_s15  ;;  %481 = vrot.lane.b32.xlu1 %v5078_v6, %s4883_s15 }
  0x5a   : > { %479 = vrot.lane.b32.xlu0 %v5086_v7, %s4883_s15  ;;  %589 = vrot.lane.b32.xlu1 %v5055_v1, %s4882_s23 }
  0x5e   : > { %483 = vrot.lane.b32.xlu0 %v466_v11, %s4883_s15  ;;  %593 = vrot.lane.b32.xlu1 %v5052_v0, %s4882_s23 }
  0x62   : > { %587 = vrot.lane.b32.xlu0 %v340_v2, %s4882_s23  ;;  %597 = vrot.lane.b32.xlu1 %v5064_v3, %s4882_s23 }
  0x66   : > { %591 = vrot.lane.b32.xlu0 %v5071_v4, %s4882_s23  ;;  %601 = vrot.lane.b32.xlu1 %v5078_v6, %s4882_s23 }
  0x6a   : > { %595 = vrot.lane.b32.xlu0 %v5075_v5, %s4882_s23  ;;  %708 = vrot.lane.b32.xlu1 %v5055_v1, %s4882_s23 }
  0x6e   : > { %599 = vrot.lane.b32.xlu0 %v5086_v7, %s4882_s23  ;;  %712 = vrot.lane.b32.xlu1 %v5052_v0, %s4882_s23 }
  0x72   : > { %603 = vrot.lane.b32.xlu0 %v586_v13, %s4882_s23  ;;  %716 = vrot.lane.b32.xlu1 %v5064_v3, %s4882_s23 }
  0x76   : > { %706 = vrot.lane.b32.xlu0 %v340_v2, %s4882_s23  ;;  %720 = vrot.lane.b32.xlu1 %v5078_v6, %s4882_s23 }
  0x7a   : > { %710 = vrot.lane.b32.xlu0 %v5071_v4, %s4882_s23 }
  0x7e   : > { %714 = vrot.lane.b32.xlu0 %v5075_v5, %s4882_s23 }
  0x82   : > { %718 = vrot.lane.b32.xlu0 %v5086_v7, %s4882_s23 }
  0x86   : > { %722 = vrot.lane.b32.xlu0 %v705_v15, %s4882_s23 }
  0xac   : > { %v5161_v16 = vpop.permute.xlu1 %351  ;;  %v5163_v17 = vpop.permute.xlu0 %347 }
  0xb0   : > { %v5165_v18 = vpop.permute.xlu1 %355  ;;  %v5167_v19 = vpop.permute.xlu0 %345 }
  0xb4   : > { %v5173_v21 = vpop.permute.xlu1 %349  ;;  %v5175_v22 = vpop.permute.xlu0 %353 }
  0xb5   : > { %v365_v23 = vsel %vm363_vm0, %v5163_v17, %v5173_v21  ;;  %v367_v26 = vsel %vm363_vm0, %v5161_v16, %v5175_v22 }
  0xb6   : > { %v383_v24 = vsel %vm381_vm1, %v5171_v20, %v365_v23  ;;  %v385_v29 = vsel %vm381_vm1, %v5184_v25, %v367_v26 }
  0xb7   : > { %402 = vrot.lane.b32.xlu0 %v383_v24, %s7778_s24 }
  0xb8   : > { %v5190_v27 = vpop.permute.xlu1 %359  ;;  %v5192_v28 = vpop.permute.xlu0 %357 }
  0xb9   : > { %v369_v31 = vsel %vm363_vm0, %v5165_v18, %v5192_v28 }
  0xba   : > { %v387_v35 = vsel %vm381_vm1, %v5198_v30, %v369_v31 }
  0xbb   : > { %406 = vrot.lane.b32.xlu0 %v385_v29, %s7778_s24  ;;  %v364_v29 = vsel %vm363_vm0, %v5167_v19, %v5163_v17 }
  0xbc   : > { %v362_v32 = vpop.permute.xlu0 %361  ;;  %v5204_v33 = vpop.permute.xlu1 %469 }
  0xbd   : > { %v390_v34 = vsel %vm381_vm1, %v5089_v8, %v362_v32  ;;  %v371_v37 = vsel %vm363_vm0, %v5190_v27, %v362_v32 }
  0xbe   : > { %416 = vrot.lane.b32.xlu1 %v390_v34, %s7778_s24  ;;  %v389_v40 = vsel %vm381_vm1, %v5213_v36, %v371_v37  ;;  %v382_v34 = vsel %vm381_vm1, %v5055_v1, %v364_v29 }
  0xbf   : > { %410 = vrot.lane.b32.xlu0 %v387_v35, %s7778_s24 }
  0xc0   : > { %v5218_v38 = vpop.permute.xlu0 %467  ;;  %v5220_v39 = vpop.permute.xlu1 %473 }
  0xc3   : > { %414 = vrot.lane.b32.xlu0 %v389_v40, %s7778_s24  ;;  %v368_v40 = vsel %vm363_vm0, %v5175_v22, %v5165_v18  ;;  %v370_v22 = vsel %vm363_vm0, %v5192_v28, %v5190_v27 }
  0xc4   : > { %v5225_v41 = vpop.permute.xlu0 %471  ;;  %v5227_v42 = vpop.permute.xlu1 %477 }
  0xc5   : > { %v487_v43 = vsel %vm485_vm2, %v5204_v33, %v5225_v41 }
  0xc6   : > { %v504_v44 = vsel %vm381_vm1, %v5171_v20, %v487_v43 }
  0xc7   : > { %523 = vrot.lane.b32.xlu0 %v504_v44, %s7780_s26  ;;  %v386_v44 = vsel %vm381_vm1, %v5064_v3, %v368_v40 }
  0xc8   : > { %v5235_v45 = vpop.permute.xlu0 %475  ;;  %v5242_v48 = vpop.permute.xlu1 %481 }
  0xc9   : > { %v489_v46 = vsel %vm485_vm2, %v5220_v39, %v5235_v45 }
  0xca   : > { %v506_v47 = vsel %vm381_vm1, %v5184_v25, %v489_v46 }
  0xcb   : > { %527 = vrot.lane.b32.xlu0 %v506_v47, %s7780_s26 }
  0xcc   : > { %v5245_v49 = vpop.permute.xlu0 %479  ;;  %v5252_v52 = vpop.permute.xlu1 %589 }
  0xcd   : > { %v491_v50 = vsel %vm485_vm2, %v5227_v42, %v5245_v49 }
  0xce   : > { %v508_v51 = vsel %vm381_vm1, %v5198_v30, %v491_v50  ;;  %v388_v50 = vsel %vm381_vm1, %v5078_v6, %v370_v22 }
  0xcf   : > { %531 = vrot.lane.b32.xlu0 %v508_v51, %s7780_s26 }
  0xd0   : > { %v484_v53 = vpop.permute.xlu0 %483  ;;  %v5265_v58 = vpop.permute.xlu1 %593 }
  0xd1   : > { %v493_v54 = vsel %vm485_vm2, %v5242_v48, %v484_v53  ;;  %v511_v55 = vsel %vm381_vm1, %v5112_v10, %v484_v53  ;;  %v486_v53 = vsel %vm485_vm2, %v5218_v38, %v5204_v33  ;;  %v488_v33 = vsel %vm485_vm2, %v5225_v41, %v5220_v39 }
  0xd2   : > { %537 = vrot.lane.b32.xlu1 %v511_v55, %s7780_s26  ;;  %v510_v56 = vsel %vm381_vm1, %v5213_v36, %v493_v54  ;;  %v5360_v55 = vld [vmem:[%s5045_s13 + $0x4] sm:$0xff]  ;;  %v490_v39 = vsel %vm485_vm2, %v5235_v45, %v5227_v42  ;;  %v492_v42 = vsel %vm485_vm2, %v5245_v49, %v5242_v48 }
  0xd3   : > { %535 = vrot.lane.b32.xlu0 %v510_v56, %s7780_s26  ;;  %v503_v56 = vsel %vm381_vm1, %v5055_v1, %v486_v53 }
  0xd4   : > { %v5263_v57 = vpop.permute.xlu0 %587  ;;  %v5274_v62 = vpop.permute.xlu1 %597 }
  0xd8   : > { %v5267_v59 = vpop.permute.xlu0 %591  ;;  %v5285_v9 = vpop.permute.xlu1 %601 }
  0xd9   : > { %v606_v60 = vsel %vm363_vm0, %v5252_v52, %v5267_v59  ;;  %v607_v29 = vsel %vm363_vm0, %v5267_v59, %v5265_v58 }
  0xda   : > { %v623_v61 = vsel %vm381_vm1, %v5171_v20, %v606_v60 }
  0xdb   : > { %642 = vrot.lane.b32.xlu0 %v623_v61, %s7782_s10  ;;  %v5374_v61 = vcombine.low %v5360_v55, %v5360_v55 }
  0xdc   : > { %v5277_v63 = vpop.permute.xlu0 %595  ;;  %v5295_v23 = vpop.permute.xlu1 %708 }
  0xdd   : > { %v608_v2 = vsel %vm363_vm0, %v5265_v58, %v5277_v63 }
  0xde   : > { %v625_v8 = vsel %vm381_vm1, %v5184_v25, %v608_v2  ;;  %v5377_v2 = vld [vmem:[%s5045_s13 + $0xc] sm:$0xff] }
  0xdf   : > { %646 = vrot.lane.b32.xlu0 %v625_v8, %s7782_s10  ;;  %v505_v8 = vsel %vm381_vm1, %v5052_v0, %v488_v33  ;;  %v5389_v41 = vcombine.low %v5377_v2, %v5377_v2 }
  0xe0   : > { %v5287_v10 = vpop.permute.xlu0 %599  ;;  %v5316_v35 = vpop.permute.xlu1 %712 }
  0xe1   : > { %v610_v11 = vsel %vm363_vm0, %v5274_v62, %v5287_v10  ;;  %v611_v59 = vsel %vm363_vm0, %v5287_v10, %v5285_v9 }
  0xe2   : > { %v627_v13 = vsel %vm381_vm1, %v5198_v30, %v610_v11  ;;  %v5392_v11 = vld [vmem:[%s5045_s13 + $0x14] sm:$0xff] }
  0xe3   : > { %650 = vrot.lane.b32.xlu0 %v627_v13, %s7782_s10  ;;  %v507_v13 = vsel %vm381_vm1, %v5064_v3, %v490_v39  ;;  %v5404_v45 = vcombine.low %v5392_v11, %v5392_v11 }
  0xe4   : > { %v604_v15 = vpop.permute.xlu0 %603  ;;  %v5334_v43 = vpop.permute.xlu1 %716 }
  0xe5   : > { %v612_v24 = vsel %vm363_vm0, %v5285_v9, %v604_v15  ;;  %v630_v26 = vsel %vm381_vm1, %v5135_v12, %v604_v15  ;;  %v366_v12 = vsel %vm363_vm0, %v5173_v21, %v5161_v16  ;;  %v5407_v15 = vld [vmem:[%s5045_s13 + $0x1c] sm:$0xff] }
  0xe6   : > { %656 = vrot.lane.b32.xlu1 %v630_v26, %s7782_s10  ;;  %v629_v31 = vsel %vm381_vm1, %v5213_v36, %v612_v24  ;;  %v384_v19 = vsel %vm381_vm1, %v5052_v0, %v366_v12  ;;  %v509_v24 = vsel %vm381_vm1, %v5078_v6, %v492_v42  ;;  %v605_v26 = vsel %vm363_vm0, %v5263_v57, %v5252_v52  ;;  %v4732_v52 = vld [vmem:[%s5045_s13 + $0x24] ss:$0 sps:$4 sm:$0xff]  }
  0xe7   : > { %654 = vrot.lane.b32.xlu0 %v629_v31, %s7782_s10  ;;  %v5419_v48 = vcombine.low %v5407_v15, %v5407_v15  ;;  %v622_v49 = vsel %vm381_vm1, %v5055_v1, %v605_v26  ;;  %v624_v57 = vsel %vm381_vm1, %v5052_v0, %v607_v29  ;;  %v609_v31 = vsel %vm363_vm0, %v5277_v63, %v5274_v62 }
  0xe8   : > { %v5308_v32 = vpop.permute.xlu0 %706  ;;  %v721_v28 = vpop.permute.xlu1 %720  ;;  %v626_v58 = vsel %vm381_vm1, %v5064_v3, %v609_v31  ;;  %v628_v62 = vsel %vm381_vm1, %v5078_v6, %v611_v59 }
  0xea   : > { %400 = vrot.lane.b32.xlu1 %v382_v34, %s7778_s24  ;;  %v724_v34 = vsel %vm363_vm0, %v5308_v32, %v5295_v23 }
  0xeb   : > { %v741_v63 = vsel %vm381_vm1, %v5055_v1, %v724_v34 }
  0xec   : > { %v5318_v17 = vpop.permute.xlu0 %710 }
  0xed   : > { %v725_v37 = vsel %vm363_vm0, %v5295_v23, %v5318_v17  ;;  %v726_v12 = vsel %vm363_vm0, %v5318_v17, %v5316_v35 }
  0xee   : > { %404 = vrot.lane.b32.xlu1 %v384_v19, %s7778_s24  ;;  %v742_v16 = vsel %vm381_vm1, %v5171_v20, %v725_v37  ;;  %v743_v9 = vsel %vm381_vm1, %v5052_v0, %v726_v12 }
  0xef   : > { %761 = vrot.lane.b32.xlu0 %v742_v16, %s7784_s19 }
  0xf0   : > { %v5332_v21 = vpop.permute.xlu0 %714 }
  0xf1   : > { %v727_v18 = vsel %vm363_vm0, %v5316_v35, %v5332_v21  ;;  %v728_v10 = vsel %vm363_vm0, %v5332_v21, %v5334_v43 }
  0xf2   : > { %408 = vrot.lane.b32.xlu1 %v386_v44, %s7778_s24  ;;  %v744_v46 = vsel %vm381_vm1, %v5184_v25, %v727_v18  ;;  %v745_v23 = vsel %vm381_vm1, %v5064_v3, %v728_v10 }
  0xf3   : > { %765 = vrot.lane.b32.xlu0 %v744_v46, %s7784_s19 }
  0xf4   : > { %v719_v47 = vpop.permute.xlu0 %718 }
  0xf5   : > { %v729_v51 = vsel %vm363_vm0, %v5334_v43, %v719_v47  ;;  %v730_v32 = vsel %vm363_vm0, %v719_v47, %v721_v28 }
  0xf6   : > { %412 = vrot.lane.b32.xlu1 %v388_v50, %s7778_s24  ;;  %v746_v27 = vsel %vm381_vm1, %v5198_v30, %v729_v51  ;;  %v747_v35 = vsel %vm381_vm1, %v5078_v6, %v730_v32  ;;  %s4895_s24 = smov 46  }
  0xf7   : > { %769 = vrot.lane.b32.xlu0 %v746_v27, %s7784_s19 }
  0xf8   : > { %v723_v54 = vpop.permute.xlu0 %722 }
  0xf9   : > { %v731_v60 = vsel %vm363_vm0, %v721_v28, %v723_v54  ;;  %v749_v17 = vsel %vm381_vm1, %v5154_v14, %v723_v54 }
  0xfa   : > { %521 = vrot.lane.b32.xlu1 %v503_v56, %s7780_s26  ;;  %v748_v38 = vsel %vm381_vm1, %v5213_v36, %v731_v60 }
  0xfb   : > { %773 = vrot.lane.b32.xlu0 %v748_v38, %s7784_s19 }
  0xfe   : > { %525 = vrot.lane.b32.xlu1 %v505_v8, %s7780_s26 }
  0xff   : > { %834 = vrot.lane.b32.xlu0 %v5374_v61, %s4888_s21 }
 0x102   : > { %529 = vrot.lane.b32.xlu1 %v507_v13, %s7780_s26 }
 0x103   : > { %838 = vrot.lane.b32.xlu0 %v5389_v41, %s4888_s21 }
 0x106   : > { %533 = vrot.lane.b32.xlu1 %v509_v24, %s7780_s26  ;;  %s4896_s26 = smov 55  }
 0x107   : > { %842 = vrot.lane.b32.xlu0 %v5404_v45, %s4888_s21 }
 0x10a   : > { %640 = vrot.lane.b32.xlu1 %v622_v49, %s7782_s10 }
 0x10b   : > { %846 = vrot.lane.b32.xlu0 %v5419_v48, %s4888_s21 }
 0x10e   : > { %644 = vrot.lane.b32.xlu1 %v624_v57, %s7782_s10 }
 0x10f   : > { %850 = vrot.lane.b32.xlu0 %v4732_v52, %s4888_s21 }
 0x112   : > { %648 = vrot.lane.b32.xlu1 %v626_v58, %s7782_s10 }
 0x116   : > { %652 = vrot.lane.b32.xlu1 %v628_v62, %s7782_s10  ;;  %s4897_s10 = smov 57  }
 0x11a   : > { %759 = vrot.lane.b32.xlu1 %v741_v63, %s7784_s19 }
 0x11e   : > { %763 = vrot.lane.b32.xlu1 %v743_v9, %s7784_s19 }
 0x122   : > { %767 = vrot.lane.b32.xlu1 %v745_v23, %s7784_s19 }
 0x126   : > { %771 = vrot.lane.b32.xlu1 %v747_v35, %s7784_s19 }
 0x129   : > { %v403_v19 = vpop.permute.xlu0 %402 }
 0x12a   : > { %775 = vrot.lane.b32.xlu1 %v749_v17, %s7784_s19  ;;  %s4898_s19 = smov 66  }
 0x12d   : > { %v407_v37 = vpop.permute.xlu0 %406 }
 0x12e   : > { %836 = vrot.lane.b32.xlu1 %v5360_v55, %s4888_s21 }
 0x130   : > { %v417_v16 = vpop.permute.xlu1 %416 }
 0x131   : > { %v411_v40 = vpop.permute.xlu0 %410 }
 0x132   : > { %840 = vrot.lane.b32.xlu1 %v5377_v2, %s4888_s21 }
 0x135   : > { %v415_v21 = vpop.permute.xlu0 %414 }
 0x136   : > { %v426_v43 = vsel %vm7786_vm3, %v415_v21, %v417_v16  ;;  %844 = vrot.lane.b32.xlu1 %v5392_v11, %s4888_s21 }
 0x137   : > { %443 = vst.msk [vmem:[#allocation3 + $0x38] sm:$0xff] %vm442_vm4, %v426_v43 }
 0x139   : > { %v524_v14 = vpop.permute.xlu0 %523 }
 0x13a   : > { %848 = vrot.lane.b32.xlu1 %v5407_v15, %s4888_s21 }
 0x13d   : > { %v528_v44 = vpop.permute.xlu0 %527 }
 0x141   : > { %v532_v18 = vpop.permute.xlu0 %531 }
 0x144   : > { %v538_v22 = vpop.permute.xlu1 %537 }
 0x145   : > { %v536_v46 = vpop.permute.xlu0 %535 }
 0x146   : > { %v547_v47 = vsel %vm7787_vm5, %v536_v46, %v538_v22 }
 0x147   : > { %563 = vst.msk [vmem:[#allocation3 + $0x78] sm:$0xff] %vm442_vm4, %v547_v47 }
 0x14d   : > { %v643_v50 = vpop.permute.xlu0 %642 }
 0x151   : > { %v647_v51 = vpop.permute.xlu0 %646 }
 0x155   : > { %v5483_v53 = vpop.permute.xlu0 %650 }
 0x158   : > { %v657_v27 = vpop.permute.xlu1 %656 }
 0x159   : > { %v5485_v28 = vpop.permute.xlu0 %654 }
 0x15a   : > { %v666_v54 = vsel %vm7788_vm6, %v5485_v28, %v657_v27 }
 0x15b   : > { %682 = vst.msk [vmem:[#allocation3 + $0xb8] sm:$0xff] %vm442_vm4, %v666_v54 }
 0x15c   : > { %v401_v56 = vpop.permute.xlu1 %400 }
 0x15d   : > { %v419_v60 = vsel %vm7786_vm3, %v401_v56, %v403_v19 }
 0x15e   : > { %435 = vst [vmem:[#allocation3] sm:$0xff] %v419_v60 }
 0x160   : > { %v405_v33 = vpop.permute.xlu1 %404 }
 0x161   : > { %v420_v38 = vsel %vm7786_vm3, %v403_v19, %v405_v33  ;;  %v421_v8 = vsel %vm7786_vm3, %v405_v33, %v407_v37  ;;  %v762_v39 = vpop.permute.xlu0 %761 }
 0x162   : > { %436 = vst [vmem:[#allocation3 + $0x8] sm:$0xff] %v420_v38  ;;  %437 = vst [vmem:[#allocation3 + $0x10] sm:$0xff] %v421_v8 }
 0x164   : > { %v409_v13 = vpop.permute.xlu1 %408 }
 0x165   : > { %v422_v42 = vsel %vm7786_vm3, %v407_v37, %v409_v13  ;;  %v423_v24 = vsel %vm7786_vm3, %v409_v13, %v411_v40  ;;  %v766_v26 = vpop.permute.xlu0 %765 }
 0x166   : > { %438 = vst [vmem:[#allocation3 + $0x18] sm:$0xff] %v422_v42  ;;  %439 = vst [vmem:[#allocation3 + $0x20] sm:$0xff] %v423_v24 }
 0x168   : > { %v413_v49 = vpop.permute.xlu1 %412 }
 0x169   : > { %v424_v29 = vsel %vm7786_vm3, %v411_v40, %v413_v49  ;;  %v425_v52 = vsel %vm7786_vm3, %v413_v49, %v415_v21  ;;  %v770_v57 = vpop.permute.xlu0 %769  ;;  %vm1263_vm3 = vcmask 449536  }
 0x16a   : > { %440 = vst [vmem:[#allocation3 + $0x28] sm:$0xff] %v424_v29  ;;  %441 = vst [vmem:[#allocation3 + $0x30] sm:$0xff] %v425_v52 }
 0x16c   : > { %v522_v31 = vpop.permute.xlu1 %521 }
 0x16d   : > { %v540_v58 = vsel %vm7787_vm5, %v522_v31, %v524_v14  ;;  %v774_v59 = vpop.permute.xlu0 %773 }
 0x16e   : > { %556 = vst [vmem:[#allocation3 + $0x40] sm:$0xff] %v540_v58 }
 0x170   : > { %v526_v34 = vpop.permute.xlu1 %525 }
 0x171   : > { %v541_v62 = vsel %vm7787_vm5, %v524_v14, %v526_v34  ;;  %v542_v63 = vsel %vm7787_vm5, %v526_v34, %v528_v44  ;;  %v835_v12 = vpop.permute.xlu0 %834 }
 0x172   : > { %557 = vst [vmem:[#allocation3 + $0x48] sm:$0xff] %v541_v62  ;;  %558 = vst [vmem:[#allocation3 + $0x50] sm:$0xff] %v542_v63  ;;  %v870_v9 = vsel %vm381_vm1, %v5055_v1, %v835_v12 }
 0x173   : > { %888 = vrot.lane.b32.xlu1 %v870_v9, %s4889_s22 }
 0x174   : > { %v530_v10 = vpop.permute.xlu1 %529 }
 0x175   : > { %v543_v23 = vsel %vm7787_vm5, %v528_v44, %v530_v10  ;;  %v544_v32 = vsel %vm7787_vm5, %v530_v10, %v532_v18  ;;  %v839_v33 = vpop.permute.xlu0 %838 }
 0x176   : > { %559 = vst [vmem:[#allocation3 + $0x58] sm:$0xff] %v543_v23  ;;  %560 = vst [vmem:[#allocation3 + $0x60] sm:$0xff] %v544_v32  ;;  %v806_v32 = vld [vmem:[%s5045_s13 + $0x20] sm:$0xf] }
 0x178   : > { %v534_v35 = vpop.permute.xlu1 %533 }
 0x179   : > { %v545_v17 = vsel %vm7787_vm5, %v532_v18, %v534_v35  ;;  %v546_v19 = vsel %vm7787_vm5, %v534_v35, %v536_v46  ;;  %v843_v42 = vpop.permute.xlu0 %842  ;;  %vm1144_vm5 = vcmask 465920  }
 0x17a   : > { %561 = vst [vmem:[#allocation3 + $0x68] sm:$0xff] %v545_v17  ;;  %562 = vst [vmem:[#allocation3 + $0x70] sm:$0xff] %v546_v19 }
 0x17c   : > { %v641_v37 = vpop.permute.xlu1 %640 }
 0x17d   : > { %v659_v1 = vsel %vm7788_vm6, %v641_v37, %v643_v50  ;;  %v847_v31 = vpop.permute.xlu0 %846 }
 0x17e   : > { %675 = vst [vmem:[#allocation3 + $0x80] sm:$0xff] %v659_v1 }
 0x180   : > { %v645_v40 = vpop.permute.xlu1 %644 }
 0x181   : > { %v660_v16 = vsel %vm7788_vm6, %v643_v50, %v645_v40  ;;  %v661_v21 = vsel %vm7788_vm6, %v645_v40, %v647_v51  ;;  %v851_v23 = vpop.permute.xlu0 %850 }
 0x182   : > { %676 = vst [vmem:[#allocation3 + $0x88] sm:$0xff] %v660_v16  ;;  %677 = vst [vmem:[#allocation3 + $0x90] sm:$0xff] %v661_v21 }
 0x184   : > { %v649_v43 = vpop.permute.xlu1 %648 }
 0x185   : > { %v662_v14 = vsel %vm7788_vm6, %v647_v51, %v649_v43  ;;  %v663_v44 = vsel %vm7788_vm6, %v649_v43, %v5483_v53 }
 0x186   : > { %678 = vst [vmem:[#allocation3 + $0x98] sm:$0xff] %v662_v14  ;;  %679 = vst [vmem:[#allocation3 + $0xa0] sm:$0xff] %v663_v44 }
 0x188   : > { %v653_v18 = vpop.permute.xlu1 %652 }
 0x189   : > { %v664_v22 = vsel %vm7788_vm6, %v5483_v53, %v653_v18  ;;  %v665_v46 = vsel %vm7788_vm6, %v653_v18, %v5485_v28  ;;  %vm1025_vm6 = vcmask 539648  }
 0x18a   : > { %680 = vst [vmem:[#allocation3 + $0xa8] sm:$0xff] %v664_v22  ;;  %681 = vst [vmem:[#allocation3 + $0xb0] sm:$0xff] %v665_v46 }
 0x18c   : > { %v760_v47 = vpop.permute.xlu1 %759 }
 0x18d   : > { %v778_v50 = vsel %vm7789_vm7, %v760_v47, %v762_v39 }
 0x18e   : > { %794 = vst [vmem:[#allocation3 + $0xc0] sm:$0xff] %v778_v50 }
 0x190   : > { %v764_v51 = vpop.permute.xlu1 %763 }
 0x191   : > { %v779_v27 = vsel %vm7789_vm7, %v762_v39, %v764_v51  ;;  %v780_v54 = vsel %vm7789_vm7, %v764_v51, %v766_v26 }
 0x192   : > { %795 = vst [vmem:[#allocation3 + $0xc8] sm:$0xff] %v779_v27  ;;  %796 = vst [vmem:[#allocation3 + $0xd0] sm:$0xff] %v780_v54 }
 0x194   : > { %v768_v56 = vpop.permute.xlu1 %767 }
 0x195   : > { %v781_v53 = vsel %vm7789_vm7, %v766_v26, %v768_v56  ;;  %v782_v60 = vsel %vm7789_vm7, %v768_v56, %v770_v57 }
 0x196   : > { %797 = vst [vmem:[#allocation3 + $0xd8] sm:$0xff] %v781_v53  ;;  %798 = vst [vmem:[#allocation3 + $0xe0] sm:$0xff] %v782_v60  ;;  %v5701_v53 = vld [vmem:[%s5045_s13 + $0x28] sm:$0xf] }
 0x197   : > { %v5704_v60 = vld [vmem:[%s5045_s13 + $0x28] sm:$0xf] }
 0x198   : > { %v772_v28 = vpop.permute.xlu1 %771 }
 0x199   : > { %v783_v38 = vsel %vm7789_vm7, %v770_v57, %v772_v28  ;;  %v784_v8 = vsel %vm7789_vm7, %v772_v28, %v774_v59 }
 0x19a   : > { %799 = vst [vmem:[#allocation3 + $0xe8] sm:$0xff] %v783_v38  ;;  %800 = vst [vmem:[#allocation3 + $0xf0] sm:$0xff] %v784_v8 }
 0x19c   : > { %v776_v39 = vpop.permute.xlu1 %775 }
 0x19d   : > { %v785_v13 = vsel %vm7789_vm7, %v774_v59, %v776_v39  ;;  %vm2060_vm7 = vcmask 883712  }
 0x19e   : > { %801 = vst.msk [vmem:[#allocation3 + $0xf8] sm:$0xff] %vm442_vm4, %v785_v13  ;;  %v5724_v13 = vld [vmem:[%s5045_s13 + $0x10] sm:$0xff] }
 0x1a0   : > { %v837_v24 = vpop.permute.xlu1 %836 }
 0x1a1   : > { %v853_v26 = vsel %vm852_vm8, %v835_v12, %v837_v24  ;;  %v854_v49 = vsel %vm852_vm8, %v837_v24, %v839_v33 }
 0x1a2   : > { %v871_v29 = vsel %vm381_vm1, %v5171_v20, %v853_v26  ;;  %v872_v52 = vsel %vm381_vm1, %v5052_v0, %v854_v49 }
 0x1a3   : > { %890 = vrot.lane.b32.xlu0 %v871_v29, %s4889_s22  ;;  %892 = vrot.lane.b32.xlu1 %v872_v52, %s4889_s22 }
 0x1a4   : > { %v841_v57 = vpop.permute.xlu1 %840 }
 0x1a5   : > { %v855_v58 = vsel %vm852_vm8, %v839_v33, %v841_v57  ;;  %v856_v59 = vsel %vm852_vm8, %v841_v57, %v843_v42 }
 0x1a6   : > { %v873_v34 = vsel %vm381_vm1, %v5184_v25, %v855_v58  ;;  %v874_v20 = vsel %vm381_vm1, %v5064_v3, %v856_v59 }
 0x1a7   : > { %894 = vrot.lane.b32.xlu0 %v873_v34, %s4889_s22  ;;  %896 = vrot.lane.b32.xlu1 %v874_v20, %s4889_s22 }
 0x1a8   : > { %v845_v62 = vpop.permute.xlu1 %844 }
 0x1a9   : > { %v857_v63 = vsel %vm852_vm8, %v843_v42, %v845_v62  ;;  %v858_v12 = vsel %vm852_vm8, %v845_v62, %v847_v31  ;;  %v5727_v42 = vld [vmem:[%s5045_s13 + $0x28] sm:$0xf] }
 0x1aa   : > { %v875_v9 = vsel %vm381_vm1, %v5198_v30, %v857_v63  ;;  %v876_v10 = vsel %vm381_vm1, %v5078_v6, %v858_v12  ;;  %v1548_v26 = vcombine.low %v5727_v42, %v5727_v42 }
 0x1ab   : > { %898 = vrot.lane.b32.xlu0 %v875_v9, %s4889_s22  ;;  %900 = vrot.lane.b32.xlu1 %v876_v10, %s4889_s22 }
 0x1ac   : > { %v849_v35 = vpop.permute.xlu1 %848 }
 0x1ad   : > { %v859_v17 = vsel %vm852_vm8, %v847_v31, %v849_v35  ;;  %v860_v19 = vsel %vm852_vm8, %v849_v35, %v851_v23  ;;  %v5742_v31 = vld [vmem:[%s5045_s13 + $0x28] sm:$0xf]  ;;  %v5763_v35 = vld [vmem:[%s5045_s13 + $0x24] sm:$0xf] }
 0x1ae   : > { %v877_v37 = vsel %vm381_vm1, %v5213_v36, %v859_v17  ;;  %v878_v1 = vsel %vm381_vm1, %v806_v32, %v860_v19  ;;  %v1429_v63 = vcombine.low %v5742_v31, %v5742_v31 }
 0x1af   : > { %902 = vrot.lane.b32.xlu0 %v877_v37, %s4889_s22  ;;  %904 = vrot.lane.b32.xlu1 %v878_v1, %s4889_s22 }
 0x1b3   : > { %954 = vrot.lane.b32.xlu0 %v5374_v61, %s4882_s23  ;;  %956 = vrot.lane.b32.xlu1 %v5360_v55, %s4882_s23 }
 0x1b7   : > { %958 = vrot.lane.b32.xlu0 %v5389_v41, %s4882_s23  ;;  %960 = vrot.lane.b32.xlu1 %v5377_v2, %s4882_s23 }
 0x1bb   : > { %962 = vrot.lane.b32.xlu0 %v5404_v45, %s4882_s23  ;;  %964 = vrot.lane.b32.xlu1 %v5392_v11, %s4882_s23 }
 0x1bf   : > { %966 = vrot.lane.b32.xlu0 %v5419_v48, %s4882_s23  ;;  %1789 = vrot.lane.b32.xlu1 %v5052_v0, %s4882_s23 }
 0x1c3   : > { %1791 = vrot.lane.b32.xlu0 %v5075_v5, %s4882_s23  ;;  %1793 = vrot.lane.b32.xlu1 %v5064_v3, %s4882_s23 }
 0x1c7   : > { %1787 = vrot.lane.b32.xlu0 %v5071_v4, %s4882_s23  ;;  %1670 = vrot.lane.b32.xlu1 %v5052_v0, %s4882_s23 }
 0x1cb   : > { %1672 = vrot.lane.b32.xlu0 %v5075_v5, %s4882_s23  ;;  %1674 = vrot.lane.b32.xlu1 %v5064_v3, %s4882_s23 }
 0x1cf   : > { %1668 = vrot.lane.b32.xlu0 %v5071_v4, %s4882_s23  ;;  %1551 = vrot.lane.b32.xlu1 %v5052_v0, %s4883_s15 }
 0x1d3   : > { %1553 = vrot.lane.b32.xlu0 %v5075_v5, %s4883_s15  ;;  %1555 = vrot.lane.b32.xlu1 %v5064_v3, %s4883_s15 }
 0x1d7   : > { %1549 = vrot.lane.b32.xlu0 %v5071_v4, %s4883_s15  ;;  %1432 = vrot.lane.b32.xlu1 %v5052_v0, %s4882_s23 }
 0x1db   : > { %1434 = vrot.lane.b32.xlu0 %v5075_v5, %s4882_s23  ;;  %1436 = vrot.lane.b32.xlu1 %v5064_v3, %s4882_s23 }
 0x1df   : > { %1430 = vrot.lane.b32.xlu0 %v5071_v4, %s4882_s23  ;;  %1313 = vrot.lane.b32.xlu1 %v5360_v55, %s4882_s23  ;;  %v5627_v4 = vld [vmem:[%s5045_s13 + $0x20] sm:$0xff] }
 0x1e0   : > { %v1785_v5 = vcombine.low %v5627_v4, %v5627_v4 }
 0x1e3   : > { %1315 = vrot.lane.b32.xlu0 %v5389_v41, %s4882_s23  ;;  %1317 = vrot.lane.b32.xlu1 %v5377_v2, %s4882_s23 }
 0x1e5   : > { %v889_v30 = vpop.permute.xlu1 %888 }
 0x1e7   : > { %1311 = vrot.lane.b32.xlu0 %v5374_v61, %s4882_s23  ;;  %1194 = vrot.lane.b32.xlu1 %v5360_v55, %s4883_s15 }
 0x1eb   : > { %1196 = vrot.lane.b32.xlu0 %v5389_v41, %s4883_s15  ;;  %1198 = vrot.lane.b32.xlu1 %v5377_v2, %s4883_s15 }
 0x1ef   : > { %1192 = vrot.lane.b32.xlu0 %v5374_v61, %s4883_s15  ;;  %1075 = vrot.lane.b32.xlu1 %v5360_v55, %s4882_s23 }
 0x1f3   : > { %1077 = vrot.lane.b32.xlu0 %v5389_v41, %s4882_s23  ;;  %1079 = vrot.lane.b32.xlu1 %v5377_v2, %s4882_s23 }
 0x1f7   : > { %1073 = vrot.lane.b32.xlu0 %v5374_v61, %s4882_s23  ;;  %1795 = vrot.lane.b32.xlu1 %v5086_v7, %s4882_s23 }
 0x1fb   : > { %1797 = vrot.lane.b32.xlu0 %v5078_v6, %s4882_s23  ;;  %1799 = vrot.lane.b32.xlu1 %v1785_v5, %s4882_s23 }
 0x1ff   : > { %1801 = vrot.lane.b32.xlu0 %v5627_v4, %s4882_s23  ;;  %1676 = vrot.lane.b32.xlu1 %v5086_v7, %s4882_s23 }
 0x203   : > { %1678 = vrot.lane.b32.xlu0 %v5078_v6, %s4882_s23  ;;  %1680 = vrot.lane.b32.xlu1 %v1785_v5, %s4882_s23 }
 0x207   : > { %1682 = vrot.lane.b32.xlu0 %v5627_v4, %s4882_s23  ;;  %1557 = vrot.lane.b32.xlu1 %v5086_v7, %s4883_s15 }
 0x20b   : > { %1559 = vrot.lane.b32.xlu0 %v5078_v6, %s4883_s15  ;;  %1561 = vrot.lane.b32.xlu1 %v1785_v5, %s4883_s15 }
 0x20f   : > { %1563 = vrot.lane.b32.xlu0 %v5627_v4, %s4883_s15  ;;  %1438 = vrot.lane.b32.xlu1 %v5086_v7, %s4882_s23 }
 0x213   : > { %1440 = vrot.lane.b32.xlu0 %v5078_v6, %s4882_s23  ;;  %1442 = vrot.lane.b32.xlu1 %v1785_v5, %s4882_s23  ;;  %v1310_v5 = vcombine.low %v5763_v35, %v5763_v35 }
 0x215   : > { %v893_v36 = vpop.permute.xlu1 %892  ;;  %v891_v61 = vpop.permute.xlu0 %890 }
 0x216   : > { %v907_v41 = vsel %vm7790_vm9, %v889_v30, %v891_v61  ;;  %v908_v40 = vsel %vm7790_vm9, %v891_v61, %v893_v36  ;;  %v4769_v61 = vld [vmem:[%s5045_s13 + $0x8] sm:$0xff] }
 0x217   : > { %923 = vst [vmem:[#allocation3 + $0x100] sm:$0xff] %v907_v41  ;;  %924 = vst [vmem:[#allocation3 + $0x108] sm:$0xff] %v908_v40  ;;  %1444 = vrot.lane.b32.xlu0 %v5627_v4, %s4882_s23  ;;  %1319 = vrot.lane.b32.xlu1 %v5404_v45, %s4882_s23 }
 0x219   : > { %v897_v7 = vpop.permute.xlu1 %896  ;;  %v895_v16 = vpop.permute.xlu0 %894 }
 0x21a   : > { %v909_v6 = vsel %vm7790_vm9, %v893_v36, %v895_v16  ;;  %v910_v21 = vsel %vm7790_vm9, %v895_v16, %v897_v7 }
 0x21b   : > { %925 = vst [vmem:[#allocation3 + $0x110] sm:$0xff] %v909_v6  ;;  %926 = vst [vmem:[#allocation3 + $0x118] sm:$0xff] %v910_v21  ;;  %1321 = vrot.lane.b32.xlu0 %v5392_v11, %s4882_s23  ;;  %1323 = vrot.lane.b32.xlu1 %v5419_v48, %s4882_s23  ;;  %v5789_v21 = vld [vmem:[%s5045_s13 + $0x10] sm:$0xff] }
 0x21d   : > { %v901_v43 = vpop.permute.xlu1 %900  ;;  %v899_v14 = vpop.permute.xlu0 %898 }
 0x21e   : > { %v911_v44 = vsel %vm7790_vm9, %v897_v7, %v899_v14  ;;  %v912_v18 = vsel %vm7790_vm9, %v899_v14, %v901_v43  ;;  %v5784_v7 = vld [vmem:[%s5045_s13 + $0x24] sm:$0xf] }
 0x21f   : > { %927 = vst [vmem:[#allocation3 + $0x120] sm:$0xff] %v911_v44  ;;  %928 = vst [vmem:[#allocation3 + $0x128] sm:$0xff] %v912_v18  ;;  %1325 = vrot.lane.b32.xlu0 %v5407_v15, %s4882_s23  ;;  %1200 = vrot.lane.b32.xlu1 %v5404_v45, %s4883_s15  ;;  %v1191_v18 = vcombine.low %v5784_v7, %v5784_v7 }
 0x221   : > { %v905_v22 = vpop.permute.xlu1 %904  ;;  %v903_v46 = vpop.permute.xlu0 %902 }
 0x222   : > { %v913_v47 = vsel %vm7790_vm9, %v901_v43, %v903_v46  ;;  %v914_v50 = vsel %vm7790_vm9, %v903_v46, %v905_v22  ;;  %vm1939_vm9 = vcmask 846848  }
 0x223   : > { %929 = vst [vmem:[#allocation3 + $0x130] sm:$0xff] %v913_v47  ;;  %930 = vst.msk [vmem:[#allocation3 + $0x138] sm:$0xff] %vm442_vm4, %v914_v50  ;;  %1202 = vrot.lane.b32.xlu0 %v5392_v11, %s4883_s15  ;;  %1204 = vrot.lane.b32.xlu1 %v5419_v48, %s4883_s15 }
 0x225   : > { %v5684_v51 = vpop.permute.xlu1 %956  ;;  %v5686_v27 = vpop.permute.xlu0 %954 }
 0x227   : > { %1206 = vrot.lane.b32.xlu0 %v5407_v15, %s4883_s15  ;;  %1081 = vrot.lane.b32.xlu1 %v5404_v45, %s4882_s23  ;;  %v1667_v45 = vcombine.low %v5704_v60, %v5704_v60 }
 0x229   : > { %v5692_v54 = vpop.permute.xlu1 %960  ;;  %v5694_v56 = vpop.permute.xlu0 %958 }
 0x22b   : > { %1083 = vrot.lane.b32.xlu0 %v5392_v11, %s4882_s23  ;;  %1085 = vrot.lane.b32.xlu1 %v5419_v48, %s4882_s23  ;;  %v1786_v11 = vcombine.low %v5701_v53, %v5701_v53  ;;  %v1883_v48 = vld [vmem:[%s5045_s13 + $0x8] sm:$0xff] }
 0x22c   : > { %v1893_v39 = vcombine.high %v1883_v48, %v1883_v48 }
 0x22d   : > { %v5706_v28 = vpop.permute.xlu1 %964  ;;  %v5708_v33 = vpop.permute.xlu0 %962 }
 0x22f   : > { %1087 = vrot.lane.b32.xlu0 %v5407_v15, %s4882_s23  ;;  %968 = vrot.lane.b32.xlu1 %v5407_v15, %s4882_s23 }
 0x231   : > { %v1790_v38 = vpop.permute.xlu1 %1789  ;;  %v5719_v8 = vpop.permute.xlu0 %966 }
 0x233   : > { %1803 = vrot.lane.b32.xlu0 %v1786_v11, %s4882_s23  ;;  %1684 = vrot.lane.b32.xlu1 %v1667_v45, %s4882_s23  ;;  %v5807_v45 = vld [vmem:[%s5045_s13 + $0x24] sm:$0xf] }
 0x235   : > { %v5729_v15 = vpop.permute.xlu1 %1793  ;;  %v1792_v24 = vpop.permute.xlu0 %1791 }
 0x236   : > { %v1806_v52 = vsel %vm363_vm0, %v1790_v38, %v1792_v24  ;;  %v1807_v57 = vsel %vm363_vm0, %v1792_v24, %v5729_v15 }
 0x237   : > { %1899 = vrot.lane.b32.xlu0 %v1893_v39, %s4890_s20  ;;  %1901 = vrot.lane.b32.xlu1 %v5724_v13, %s4890_s20  ;;  %v1824_v34 = vsel %vm381_vm1, %v5064_v3, %v1807_v57  ;;  %v1823_v20 = vsel %vm381_vm1, %v5184_v25, %v1806_v52 }
 0x239   : > { %v1671_v49 = vpop.permute.xlu1 %1670  ;;  %v1788_v29 = vpop.permute.xlu0 %1787 }
 0x23a   : > { %v1805_v62 = vsel %vm363_vm0, %v1788_v29, %v1790_v38 }
 0x23b   : > { %1897 = vrot.lane.b32.xlu0 %v1883_v48, %s4890_s20  ;;  %1565 = vrot.lane.b32.xlu1 %v1548_v26, %s4883_s15  ;;  %v1822_v10 = vsel %vm381_vm1, %v5052_v0, %v1805_v62 }
 0x23d   : > { %v5744_v58 = vpop.permute.xlu1 %1674  ;;  %v1673_v59 = vpop.permute.xlu0 %1672 }
 0x23e   : > { %v1687_v23 = vsel %vm363_vm0, %v1671_v49, %v1673_v59  ;;  %v1688_v32 = vsel %vm363_vm0, %v1673_v59, %v5744_v58 }
 0x23f   : > { %1844 = vrot.lane.b32.xlu1 %v1824_v34, %s4891_s18  ;;  %1842 = vrot.lane.b32.xlu0 %v1823_v20, %s4891_s18  ;;  %v1705_v37 = vsel %vm381_vm1, %v5064_v3, %v1688_v32  ;;  %v1704_v0 = vsel %vm381_vm1, %v5184_v25, %v1687_v23  ;;  %v5829_v20 = vld [vmem:[%s5045_s13 + $0x24] sm:$0xf] }
 0x240   : > { %v953_v23 = vcombine.low %v5829_v20, %v5829_v20 }
 0x241   : > { %v1552_v12 = vpop.permute.xlu1 %1551  ;;  %v1669_v9 = vpop.permute.xlu0 %1668 }
 0x242   : > { %v1686_v1 = vsel %vm363_vm0, %v1669_v9, %v1671_v49  ;;  %v1072_v49 = vcombine.low %v5807_v45, %v5807_v45 }
 0x243   : > { %1446 = vrot.lane.b32.xlu1 %v1429_v63, %s4882_s23  ;;  %1840 = vrot.lane.b32.xlu0 %v1822_v10, %s4891_s18  ;;  %v1703_v41 = vsel %vm381_vm1, %v4769_v61, %v1686_v1 }
 0x245   : > { %v5765_v17 = vpop.permute.xlu1 %1555  ;;  %v1554_v19 = vpop.permute.xlu0 %1553 }
 0x246   : > { %v1568_v3 = vsel %vm485_vm2, %v1552_v12, %v1554_v19  ;;  %v1569_v40 = vsel %vm485_vm2, %v1554_v19, %v5765_v17 }
 0x247   : > { %1725 = vrot.lane.b32.xlu1 %v1705_v37, %s4892_s25  ;;  %1723 = vrot.lane.b32.xlu0 %v1704_v0, %s4892_s25  ;;  %v1586_v43 = vsel %vm381_vm1, %v5789_v21, %v1569_v40  ;;  %v1585_v14 = vsel %vm381_vm1, %v5184_v25, %v1568_v3 }
 0x249   : > { %v1433_v30 = vpop.permute.xlu1 %1432  ;;  %v1550_v36 = vpop.permute.xlu0 %1549 }
 0x24a   : > { %v1567_v44 = vsel %vm485_vm2, %v1550_v36, %v1552_v12 }
 0x24b   : > { %1327 = vrot.lane.b32.xlu1 %v1310_v5, %s4882_s23  ;;  %1721 = vrot.lane.b32.xlu0 %v1703_v41, %s4892_s25  ;;  %v1584_v47 = vsel %vm381_vm1, %v4769_v61, %v1567_v44 }
 0x24d   : > { %v5786_v16 = vpop.permute.xlu1 %1436  ;;  %v1435_v6 = vpop.permute.xlu0 %1434 }
 0x24e   : > { %v1449_v50 = vsel %vm363_vm0, %v1433_v30, %v1435_v6  ;;  %v1450_v11 = vsel %vm363_vm0, %v1435_v6, %v5786_v16 }
 0x24f   : > { %1606 = vrot.lane.b32.xlu1 %v1586_v43, %s4893_s29  ;;  %1604 = vrot.lane.b32.xlu0 %v1585_v14, %s4893_s29  ;;  %v1467_v39 = vsel %vm381_vm1, %v5789_v21, %v1450_v11  ;;  %v1466_v24 = vsel %vm381_vm1, %v5184_v25, %v1449_v50  ;;  %v1298_v25 = vcombine.high %v5360_v55, %v5360_v55 }
 0x250   : > { %v973_v11 = vsel %vm363_vm0, %v5684_v51, %v5694_v56 }
 0x251   : > { %v1314_v22 = vpop.permute.xlu1 %1313  ;;  %v1431_v46 = vpop.permute.xlu0 %1430 }
 0x252   : > { %v1448_v26 = vsel %vm363_vm0, %v1431_v46, %v1433_v30 }
 0x253   : > { %1208 = vrot.lane.b32.xlu1 %v1191_v18, %s4883_s15  ;;  %1602 = vrot.lane.b32.xlu0 %v1584_v47, %s4893_s29  ;;  %v1465_v57 = vsel %vm381_vm1, %v4769_v61, %v1448_v26  ;;  %v990_v26 = vsel %vm381_vm1, %v1298_v25, %v973_v11 }
 0x255   : > { %v5809_v48 = vpop.permute.xlu1 %1317  ;;  %v1316_v38 = vpop.permute.xlu0 %1315 }
 0x256   : > { %v1330_v59 = vsel %vm363_vm0, %v1314_v22, %v1316_v38  ;;  %v1331_v34 = vsel %vm363_vm0, %v1316_v38, %v5809_v48  ;;  %v974_v38 = vsel %vm363_vm0, %v5694_v56, %v5692_v54  ;;  %v1885_v56 = vld [vmem:[%s5045_s13 + $0x18] sm:$0xff] }
 0x257   : > { %1487 = vrot.lane.b32.xlu1 %v1467_v39, %s4894_s12  ;;  %1485 = vrot.lane.b32.xlu0 %v1466_v24, %s4894_s12  ;;  %v1348_v12 = vsel %vm381_vm1, %v5377_v2, %v1331_v34  ;;  %v1347_v9 = vsel %vm381_vm1, %v1298_v25, %v1330_v59 }
 0x259   : > { %v1195_v29 = vpop.permute.xlu1 %1194  ;;  %v1312_v52 = vpop.permute.xlu0 %1311 }
 0x25a   : > { %v1329_v10 = vsel %vm363_vm0, %v1312_v52, %v1314_v22  ;;  %v1894_v52 = vcombine.high %v5724_v13, %v5724_v13  ;;  %v1775_v13 = vcombine.high %v5789_v21, %v5789_v21 }
 0x25b   : > { %1089 = vrot.lane.b32.xlu1 %v1072_v49, %s4882_s23  ;;  %1483 = vrot.lane.b32.xlu0 %v1465_v57, %s4894_s12  ;;  %v1346_v37 = vsel %vm381_vm1, %v5360_v55, %v1329_v10  ;;  %v991_v49 = vsel %vm381_vm1, %v5377_v2, %v974_v38  ;;  %v4771_v10 = vld [vmem:[%s5045_s13 + $0x18] sm:$0xff] }
 0x25d   : > { %v5831_v62 = vpop.permute.xlu1 %1198  ;;  %v1197_v63 = vpop.permute.xlu0 %1196 }
 0x25e   : > { %v1211_v0 = vsel %vm485_vm2, %v1195_v29, %v1197_v63  ;;  %v1212_v1 = vsel %vm485_vm2, %v1197_v63, %v5831_v62 }
 0x25f   : > { %1368 = vrot.lane.b32.xlu1 %v1348_v12, %s4895_s24  ;;  %1366 = vrot.lane.b32.xlu0 %v1347_v9, %s4895_s24  ;;  %v1229_v36 = vsel %vm381_vm1, %v5377_v2, %v1212_v1  ;;  %v1228_v61 = vsel %vm381_vm1, %v1298_v25, %v1211_v0 }
 0x261   : > { %v1076_v32 = vpop.permute.xlu1 %1075  ;;  %v1193_v19 = vpop.permute.xlu0 %1192 }
 0x262   : > { %v1210_v41 = vsel %vm485_vm2, %v1193_v19, %v1195_v29  ;;  %v972_v29 = vsel %vm363_vm0, %v5686_v27, %v5684_v51 }
 0x263   : > { %970 = vrot.lane.b32.xlu1 %v953_v23, %s4882_s23  ;;  %1364 = vrot.lane.b32.xlu0 %v1346_v37, %s4895_s24  ;;  %v1227_v43 = vsel %vm381_vm1, %v5360_v55, %v1210_v41  ;;  %v989_v34 = vsel %vm381_vm1, %v5360_v55, %v972_v29  ;;  %v1776_v23 = vcombine.high %v4771_v10, %v4771_v10 }
 0x265   : > { %v5848_v5 = vpop.permute.xlu1 %1079  ;;  %v1078_v30 = vpop.permute.xlu0 %1077 }
 0x266   : > { %v1092_v3 = vsel %vm363_vm0, %v1076_v32, %v1078_v30  ;;  %v1093_v44 = vsel %vm363_vm0, %v1078_v30, %v5848_v5 }
 0x267   : > { %1249 = vrot.lane.b32.xlu1 %v1229_v36, %s4896_s26  ;;  %1247 = vrot.lane.b32.xlu0 %v1228_v61, %s4896_s26  ;;  %v1109_v14 = vsel %vm381_vm1, %v1298_v25, %v1092_v3  ;;  %v1110_v47 = vsel %vm381_vm1, %v5377_v2, %v1093_v44  ;;  %v7791_v25 = vmov 0.0   ;;  %v1895_v2 = vcombine.high %v1885_v56, %v1885_v56 }
 0x268   : > { %2152 = vmatprep.mubr.f32.mxu0 %v7791_v25  ;;  %2452 = vst [vmem:[#allocation2] sm:$0xf] %v7791_v25  ;;  %2223 = vmatprep.mubr.f32.mxu1 %v7791_v25 }
 0x269   : > { %v1796_v40 = vpop.permute.xlu1 %1795  ;;  %v1074_v6 = vpop.permute.xlu0 %1073 }
 0x26a   : > { %v1091_v18 = vsel %vm363_vm0, %v1074_v6, %v1076_v32 }
 0x26b   : > { %1245 = vrot.lane.b32.xlu0 %v1227_v43, %s4896_s26  ;;  %1128 = vrot.lane.b32.xlu1 %v1109_v14, %s4897_s10  ;;  %v1108_v50 = vsel %vm381_vm1, %v5360_v55, %v1091_v18  ;;  %v1808_v55 = vsel %vm363_vm0, %v5729_v15, %v1796_v40 }
 0x26c   : > { %v1825_v9 = vsel %vm381_vm1, %v1775_v13, %v1808_v55 }
 0x26d   : > { %v1800_v22 = vpop.permute.xlu1 %1799  ;;  %v1798_v46 = vpop.permute.xlu0 %1797 }
 0x26e   : > { %v1809_v32 = vsel %vm363_vm0, %v1796_v40, %v1798_v46  ;;  %v1810_v19 = vsel %vm363_vm0, %v1798_v46, %v1800_v22 }
 0x26f   : > { %1130 = vrot.lane.b32.xlu0 %v1110_v47, %s4897_s10  ;;  %1126 = vrot.lane.b32.xlu1 %v1108_v50, %s4897_s10  ;;  %v1827_v37 = vsel %vm381_vm1, %v1776_v23, %v1810_v19  ;;  %v1826_v0 = vsel %vm381_vm1, %v4771_v10, %v1809_v32  ;;  %v4772_v19 = vld [vmem:[%s5045_s13 + $0xc] sm:$0xff] }
 0x271   : > { %v1677_v39 = vpop.permute.xlu1 %1676  ;;  %v5877_v24 = vpop.permute.xlu0 %1801 }
 0x272   : > { %v1689_v1 = vsel %vm363_vm0, %v5744_v58, %v1677_v39  ;;  %v1811_v30 = vsel %vm363_vm0, %v1800_v22, %v5877_v24 }
 0x273   : > { %1009 = vrot.lane.b32.xlu0 %v990_v26, %s4898_s19  ;;  %1011 = vrot.lane.b32.xlu1 %v991_v49, %s4898_s19  ;;  %v1706_v41 = vsel %vm381_vm1, %v1775_v13, %v1689_v1  ;;  %v1828_v3 = vsel %vm381_vm1, %v5627_v4, %v1811_v30  ;;  %v5985_v30 = vld [vmem:[%s5045_s13 + $0x14] sm:$0xff] }
 0x275   : > { %v1681_v57 = vpop.permute.xlu1 %1680  ;;  %v1679_v59 = vpop.permute.xlu0 %1678 }
 0x276   : > { %v1690_v40 = vsel %vm363_vm0, %v1677_v39, %v1679_v59  ;;  %v1691_v6 = vsel %vm363_vm0, %v1679_v59, %v1681_v57 }
 0x277   : > { %1007 = vrot.lane.b32.xlu0 %v989_v34, %s4898_s19  ;;  %1903 = vrot.lane.b32.xlu1 %v1894_v52, %s4890_s20  ;;  %v1708_v14 = vsel %vm381_vm1, %v1776_v23, %v1691_v6  ;;  %v1707_v44 = vsel %vm381_vm1, %v4771_v10, %v1690_v40 }
 0x279   : > { %v1558_v51 = vpop.permute.xlu1 %1557  ;;  %v5897_v27 = vpop.permute.xlu0 %1682 }
 0x27a   : > { %v1570_v18 = vsel %vm485_vm2, %v5765_v17, %v1558_v51  ;;  %v1692_v22 = vsel %vm363_vm0, %v1681_v57, %v5897_v27 }
 0x27b   : > { %1905 = vrot.lane.b32.xlu0 %v1885_v56, %s4890_s20  ;;  %1907 = vrot.lane.b32.xlu1 %v1895_v2, %s4890_s20  ;;  %v1587_v50 = vsel %vm381_vm1, %v1775_v13, %v1570_v18  ;;  %v1709_v11 = vsel %vm381_vm1, %v5627_v4, %v1692_v22  ;;  %v6012_v22 = vld [vmem:[%s5045_s13 + $0x1c] sm:$0xff] }
 0x27d   : > { %v1562_v63 = vpop.permute.xlu1 %1561  ;;  %v1560_v12 = vpop.permute.xlu0 %1559 }
 0x27e   : > { %v1571_v38 = vsel %vm485_vm2, %v1558_v51, %v1560_v12  ;;  %v1572_v39 = vsel %vm485_vm2, %v1560_v12, %v1562_v63 }
 0x27f   : > { %1909 = vrot.lane.b32.xlu0 %v5627_v4, %s4890_s20  ;;  %1846 = vrot.lane.b32.xlu1 %v1825_v9, %s4891_s18  ;;  %v1589_v49 = vsel %vm381_vm1, %v1776_v23, %v1572_v39  ;;  %v1588_v29 = vsel %vm381_vm1, %v4771_v10, %v1571_v38 }
 0x281   : > { %v1439_v15 = vpop.permute.xlu1 %1438  ;;  %v5912_v21 = vpop.permute.xlu0 %1563 }
 0x282   : > { %v1451_v52 = vsel %vm363_vm0, %v5786_v16, %v1439_v15  ;;  %v1573_v56 = vsel %vm485_vm2, %v1562_v63, %v5912_v21 }
 0x283   : > { %1850 = vrot.lane.b32.xlu1 %v1827_v37, %s4891_s18  ;;  %1848 = vrot.lane.b32.xlu0 %v1826_v0, %s4891_s18  ;;  %v1468_v34 = vsel %vm381_vm1, %v1775_v13, %v1451_v52  ;;  %v1590_v2 = vsel %vm381_vm1, %v5627_v4, %v1573_v56 }
 0x285   : > { %v1443_v36 = vpop.permute.xlu1 %1442  ;;  %v1441_v61 = vpop.permute.xlu0 %1440 }
 0x286   : > { %v1452_v51 = vsel %vm363_vm0, %v1439_v15, %v1441_v61  ;;  %v1453_v55 = vsel %vm363_vm0, %v1441_v61, %v1443_v36  ;;  %v5974_v15 = vcombine.high %v4772_v19, %v4772_v19 }
 0x287   : > { %1727 = vrot.lane.b32.xlu1 %v1706_v41, %s4892_s25  ;;  %1852 = vrot.lane.b32.xlu0 %v1828_v3, %s4891_s18  ;;  %v1470_v12 = vsel %vm381_vm1, %v1776_v23, %v1453_v55  ;;  %v1469_v9 = vsel %vm381_vm1, %v4771_v10, %v1452_v51 }
 0x289   : > { %v1320_v58 = vpop.permute.xlu1 %1319  ;;  %v5929_v43 = vpop.permute.xlu0 %1444 }
 0x28a   : > { %v1332_v13 = vsel %vm363_vm0, %v5809_v48, %v1320_v58  ;;  %v1454_v32 = vsel %vm363_vm0, %v1443_v36, %v5929_v43  ;;  %v5989_v36 = vcombine.high %v5985_v30, %v5985_v30 }
 0x28b   : > { %1731 = vrot.lane.b32.xlu1 %v1708_v14, %s4892_s25  ;;  %1729 = vrot.lane.b32.xlu0 %v1707_v44, %s4892_s25  ;;  %v1349_v23 = vsel %vm381_vm1, %v5974_v15, %v1332_v13  ;;  %v1471_v10 = vsel %vm381_vm1, %v5627_v4, %v1454_v32 }
 0x28d   : > { %v1324_v46 = vpop.permute.xlu1 %1323  ;;  %v1322_v47 = vpop.permute.xlu0 %1321 }
 0x28e   : > { %v1333_v48 = vsel %vm363_vm0, %v1320_v58, %v1322_v47  ;;  %v1334_v1 = vsel %vm363_vm0, %v1322_v47, %v1324_v46 }
 0x28f   : > { %1608 = vrot.lane.b32.xlu1 %v1587_v50, %s4893_s29  ;;  %1733 = vrot.lane.b32.xlu0 %v1709_v11, %s4892_s25  ;;  %v1351_v3 = vsel %vm381_vm1, %v5989_v36, %v1334_v1  ;;  %v1350_v40 = vsel %vm381_vm1, %v5985_v30, %v1333_v48  ;;  %v977_v48 = vsel %vm363_vm0, %v5706_v28, %v5719_v8 }
 0x291   : > { %v1201_v17 = vpop.permute.xlu1 %1200  ;;  %v5946_v26 = vpop.permute.xlu0 %1325 }
 0x292   : > { %v1213_v6 = vsel %vm485_vm2, %v5831_v62, %v1201_v17  ;;  %v1335_v58 = vsel %vm363_vm0, %v1324_v46, %v5946_v26 }
 0x293   : > { %1612 = vrot.lane.b32.xlu1 %v1589_v49, %s4893_s29  ;;  %1610 = vrot.lane.b32.xlu0 %v1588_v29, %s4893_s29  ;;  %v1230_v18 = vsel %vm381_vm1, %v5974_v15, %v1213_v6  ;;  %v1352_v47 = vsel %vm381_vm1, %v6012_v22, %v1335_v58 }
 0x295   : > { %v1205_v57 = vpop.permute.xlu1 %1204  ;;  %v1203_v59 = vpop.permute.xlu0 %1202 }
 0x296   : > { %v1214_v62 = vsel %vm485_vm2, %v1201_v17, %v1203_v59  ;;  %v1215_v46 = vsel %vm485_vm2, %v1203_v59, %v1205_v57 }
 0x297   : > { %1489 = vrot.lane.b32.xlu1 %v1468_v34, %s4894_s12  ;;  %1614 = vrot.lane.b32.xlu0 %v1590_v2, %s4893_s29  ;;  %v1232_v39 = vsel %vm381_vm1, %v5989_v36, %v1215_v46  ;;  %v1231_v49 = vsel %vm381_vm1, %v5985_v30, %v1214_v62  ;;  %v4900_v62 = vmov 0  }
 0x298   : > { %4714 = vset.pattern.permute.xlu1 %v4900_v62  ;;  %4715 = vset.pattern.permute.xlu0 %v4900_v62 }
 0x299   : > { %v1082_v16 = vpop.permute.xlu1 %1081  ;;  %v5963_v63 = vpop.permute.xlu0 %1206 }
 0x29a   : > { %v1094_v17 = vsel %vm363_vm0, %v5848_v5, %v1082_v16  ;;  %v1216_v29 = vsel %vm485_vm2, %v1205_v57, %v5963_v63 }
 0x29b   : > { %1493 = vrot.lane.b32.xlu1 %v1470_v12, %s4894_s12  ;;  %1491 = vrot.lane.b32.xlu0 %v1469_v9, %s4894_s12  ;;  %v1111_v34 = vsel %vm381_vm1, %v5974_v15, %v1094_v17  ;;  %v1233_v2 = vsel %vm381_vm1, %v6012_v22, %v1216_v29 }
 0x29d   : > { %v1086_v37 = vpop.permute.xlu1 %1085  ;;  %v1084_v0 = vpop.permute.xlu0 %1083 }
 0x29e   : > { %v1095_v5 = vsel %vm363_vm0, %v1082_v16, %v1084_v0  ;;  %v1096_v57 = vsel %vm363_vm0, %v1084_v0, %v1086_v37  ;;  %v975_v16 = vsel %vm363_vm0, %v5692_v54, %v5708_v33 }
 0x29f   : > { %1370 = vrot.lane.b32.xlu1 %v1349_v23, %s4895_s24  ;;  %1495 = vrot.lane.b32.xlu0 %v1471_v10, %s4894_s12  ;;  %v1113_v12 = vsel %vm381_vm1, %v5989_v36, %v1096_v57  ;;  %v1112_v9 = vsel %vm381_vm1, %v5985_v30, %v1095_v5  ;;  %v992_v23 = vsel %vm381_vm1, %v5974_v15, %v975_v16 }
 0x2a1   : > { %v5991_v61 = vpop.permute.xlu1 %968  ;;  %v5993_v41 = vpop.permute.xlu0 %1087 }
 0x2a2   : > { %v1097_v32 = vsel %vm363_vm0, %v1086_v37, %v5993_v41  ;;  %v976_v37 = vsel %vm363_vm0, %v5708_v33, %v5706_v28  ;;  %v994_v28 = vsel %vm381_vm1, %v5989_v36, %v977_v48  ;;  %v978_v58 = vsel %vm363_vm0, %v5719_v8, %v5991_v61 }
 0x2a3   : > { %1374 = vrot.lane.b32.xlu1 %v1351_v3, %s4895_s24  ;;  %1372 = vrot.lane.b32.xlu0 %v1350_v40, %s4895_s24  ;;  %v1114_v10 = vsel %vm381_vm1, %v6012_v22, %v1097_v32  ;;  %v993_v6 = vsel %vm381_vm1, %v5985_v30, %v976_v37  ;;  %v995_v8 = vsel %vm381_vm1, %v6012_v22, %v978_v58  ;;  %v2054_v58 = vld [vmem:[%s7768_s2] sm:$0xf] }
 0x2a5   : > { %v6005_v14 = vpop.permute.xlu1 %1684  ;;  %v6007_v44 = vpop.permute.xlu0 %1803 }
 0x2a6   : > { %v1812_v46 = vsel %vm363_vm0, %v5877_v24, %v6007_v44  ;;  %v1693_v17 = vsel %vm363_vm0, %v5897_v27, %v6005_v14 }
 0x2a7   : > { %1251 = vrot.lane.b32.xlu1 %v1230_v18, %s4896_s26  ;;  %1376 = vrot.lane.b32.xlu0 %v1352_v47, %s4895_s24  ;;  %v1896_v18 = vcombine.high %v5627_v4, %v5627_v4  ;;  %v1887_v4 = vld [vmem:[%s5045_s13 + $0x28] sm:$0xf]  ;;  %s4903_s13 = smov 100  }
 0x2a9   : > { %v6020_v50 = vpop.permute.xlu1 %1901  ;;  %v1900_v11 = vpop.permute.xlu0 %1899 }
 0x2aa   : > { %v1917_v38 = vsel %vm1915_vm10, %v1900_v11, %v6020_v50 }
 0x2ab   : > { %1933 = vst [vmem:[#allocation3 + $0x348] sm:$0xf] %v1917_v38  ;;  %1255 = vrot.lane.b32.xlu1 %v1232_v39, %s4896_s26  ;;  %1253 = vrot.lane.b32.xlu0 %v1231_v49, %s4896_s26  ;;  %v1829_v49 = vsel %vm381_vm1, %v1896_v18, %v1812_v46 }
 0x2ad   : > { %v6034_v52 = vpop.permute.xlu1 %1565  ;;  %v1898_v56 = vpop.permute.xlu0 %1897 }
 0x2ae   : > { %v1916_v59 = vsel %vm1915_vm10, %v1898_v56, %v1900_v11 }
 0x2af   : > { %1932 = vst [vmem:[#allocation3 + $0x340] sm:$0xf] %v1916_v59  ;;  %1132 = vrot.lane.b32.xlu1 %v1111_v34, %s4897_s10  ;;  %1257 = vrot.lane.b32.xlu0 %v1233_v2, %s4896_s26  ;;  %v1830_v59 = vsel %vm381_vm1, %v5701_v53, %v6007_v44  ;;  %v1710_v34 = vsel %vm381_vm1, %v1896_v18, %v1693_v17 }
 0x2b0   : > { %v1574_v2 = vsel %vm485_vm2, %v5912_v21, %v6034_v52  ;;  %v1711_v53 = vsel %vm381_vm1, %v5704_v60, %v6005_v14  ;;  %v1301_v14 = vcombine.high %v6012_v22, %v6012_v22 }
 0x2b1   : > { %v6045_v51 = vpop.permute.xlu1 %1844  ;;  %v1843_v55 = vpop.permute.xlu0 %1842  ;;  %v1591_v44 = vsel %vm381_vm1, %v1896_v18, %v1574_v2  ;;  %v1958_v2 = vld [vmem:[#allocation3 + $0x80] sm:$0xff] }
 0x2b2   : > { %v2047_v13 = vld [vmem:[#allocation3 + $0x348] sm:$0xf]  ;;  %v1860_v15 = vsel %vm1858_vm11, %v1843_v55, %v6045_v51 }
 0x2b3   : > { %1136 = vrot.lane.b32.xlu1 %v1113_v12, %s4897_s10  ;;  %1134 = vrot.lane.b32.xlu0 %v1112_v9, %s4897_s10 }
 0x2b4   : > { %4608 = vmatprep.subr.msk.mxu0 %vm381_vm1, %v2047_v13  ;;  %v1592_v13 = vsel %vm381_vm1, %v5727_v42, %v6034_v52 }
 0x2b5   : > { %v6059_v19 = vpop.permute.xlu1 %1446  ;;  %v1841_v0 = vpop.permute.xlu0 %1840 }
 0x2b6   : > { %v2046_v54 = vld [vmem:[#allocation3 + $0x340] sm:$0xf]  ;;  %v1859_v1 = vsel %vm1858_vm11, %v1841_v0, %v1843_v55  ;;  %v1455_v21 = vsel %vm363_vm0, %v5929_v43, %v6059_v19  ;;  %v1473_v22 = vsel %vm381_vm1, %v5742_v31, %v6059_v19 }
 0x2b7   : > { %1013 = vrot.lane.b32.xlu1 %v992_v23, %s4898_s19  ;;  %1138 = vrot.lane.b32.xlu0 %v1114_v10, %s4897_s10  ;;  %v1472_v60 = vsel %vm381_vm1, %v1896_v18, %v1455_v21  ;;  %v1950_v21 = vld [vmem:[#allocation3 + $0x40] sm:$0xff] }
 0x2b8   : > { %4609 = vmatpush1.msk.msra.mxu0 %vm381_vm1, %v2046_v54 }
 0x2b9   : > { %v6077_v3 = vpop.permute.xlu1 %1725  ;;  %v1724_v40 = vpop.permute.xlu0 %1723  ;;  %2094 = vmatprep.subr.mxu0 %v1860_v15 }
 0x2ba   : > { %v1741_v33 = vsel %vm1739_vm12, %v1724_v40, %v6077_v3  ;;  %2095 = vmatpush1.msra.mxu0 %v1859_v1 }
 0x2bb   : > { %1017 = vrot.lane.b32.xlu1 %v994_v28, %s4898_s19  ;;  %1015 = vrot.lane.b32.xlu0 %v993_v6, %s4898_s19 }
 0x2bc   : > { %2096 = vmatprep.subr.mxu0 %v1741_v33 }
 0x2bd   : > { %v6092_v47 = vpop.permute.xlu1 %1327  ;;  %v1722_v36 = vpop.permute.xlu0 %1721 }
 0x2be   : > { %v1740_v30 = vsel %vm1739_vm12, %v1722_v36, %v1724_v40  ;;  %v1336_v43 = vsel %vm363_vm0, %v5946_v26, %v6092_v47  ;;  %v1354_v54 = vsel %vm381_vm1, %v5763_v35, %v6092_v47  ;;  %v2380_v36 = vld [vmem:[%s7769_s3] sm:$0xf] }
 0x2bf   : > { %1911 = vrot.lane.b32.xlu1 %v1896_v18, %s4890_s20  ;;  %1019 = vrot.lane.b32.xlu0 %v995_v8, %s4898_s19  ;;  %v1353_v52 = vsel %vm381_vm1, %v1301_v14, %v1336_v43 }
 0x2c0   : > { %2097 = vmatpush1.msra.mxu0 %v1740_v30 }
 0x2c1   : > { %v6103_v11 = vpop.permute.xlu1 %1606  ;;  %v1605_v38 = vpop.permute.xlu0 %1604 }
 0x2c2   : > { %v1622_v39 = vsel %vm1620_vm13, %v1605_v38, %v6103_v11 }
 0x2c3   : > { %1913 = vrot.lane.b32.xlu0 %v1887_v4, %s4890_s20  ;;  %1854 = vrot.lane.b32.xlu1 %v1829_v49, %s4891_s18  ;;  %v1974_v49 = vld [vmem:[#allocation3 + $0x100] sm:$0xff]  ;;  %s4906_s20 = smov 10  }
 0x2c4   : > { %2098 = vmatprep.subr.mxu0 %v1622_v39  ;;  %v1975_v39 = vld [vmem:[#allocation3 + $0x108] sm:$0xff] }
 0x2c5   : > { %v1209_v24 = vpop.permute.xlu1 %1208  ;;  %v1603_v29 = vpop.permute.xlu0 %1602 }
 0x2c6   : > { %v1621_v56 = vsel %vm1620_vm13, %v1603_v29, %v1605_v38  ;;  %v1217_v26 = vsel %vm485_vm2, %v5963_v63, %v1209_v24  ;;  %v1235_v35 = vsel %vm381_vm1, %v5784_v7, %v1209_v24  ;;  %v1967_v29 = vld [vmem:[#allocation3 + $0xc8] sm:$0xff] }
 0x2c7   : > { %1856 = vrot.lane.b32.xlu0 %v1830_v59, %s4891_s18  ;;  %1735 = vrot.lane.b32.xlu1 %v1710_v34, %s4892_s25  ;;  %v1234_v31 = vsel %vm381_vm1, %v1301_v14, %v1217_v26  ;;  %v1966_v34 = vld [vmem:[#allocation3 + $0xc0] sm:$0xff]  ;;  %s4907_s18 = smov 89  }
 0x2c8   : > { %2099 = vmatpush1.msra.mxu0 %v1621_v56 }
 0x2c9   : > { %v6123_v27 = vpop.permute.xlu1 %1487  ;;  %v1486_v5 = vpop.permute.xlu0 %1485 }
 0x2ca   : > { %v1503_v57 = vsel %vm1501_vm14, %v1486_v5, %v6123_v27 }
 0x2cb   : > { %1737 = vrot.lane.b32.xlu0 %v1711_v53, %s4892_s25  ;;  %1616 = vrot.lane.b32.xlu1 %v1591_v44, %s4893_s29  ;;  %v1951_v53 = vld [vmem:[#allocation3 + $0x48] sm:$0xff]  ;;  %s4908_s25 = smov 91  }
 0x2cc   : > { %2100 = vmatprep.subr.mxu0 %v1503_v57 }
 0x2cd   : > { %v1090_v55 = vpop.permute.xlu1 %1089  ;;  %v1484_v12 = vpop.permute.xlu0 %1483 }
 0x2ce   : > { %v1502_v9 = vsel %vm1501_vm14, %v1484_v12, %v1486_v5  ;;  %v1098_v19 = vsel %vm363_vm0, %v5993_v41, %v1090_v55  ;;  %v1116_v28 = vsel %vm381_vm1, %v5807_v45, %v1090_v55  ;;  %v1943_v55 = vld [vmem:[#allocation3 + $0x8] sm:$0xff]  ;;  %v6216_v12 = vld [vmem:[%s7767_s1] sm:$0xf] }
 0x2cf   : > { %1618 = vrot.lane.b32.xlu0 %v1592_v13, %s4893_s29  ;;  %1497 = vrot.lane.b32.xlu1 %v1472_v60, %s4894_s12  ;;  %v1115_v15 = vsel %vm381_vm1, %v1301_v14, %v1098_v19  ;;  %s4901_s29 = smov 111  }
 0x2d0   : > { %2101 = vmatpush1.msra.mxu0 %v1502_v9  ;;  %v1942_v9 = vld [vmem:[#allocation3] sm:$0xff] }
 0x2d1   : > { %v6148_v16 = vpop.permute.xlu1 %1368  ;;  %v1367_v32 = vpop.permute.xlu0 %1366 }
 0x2d2   : > { %v1384_v42 = vsel %vm1382_vm15, %v1367_v32, %v6148_v16 }
 0x2d3   : > { %1499 = vrot.lane.b32.xlu0 %v1473_v22, %s4894_s12  ;;  %1378 = vrot.lane.b32.xlu1 %v1353_v52, %s4895_s24  ;;  %s4902_s12 = smov 109  }
 0x2d4   : > { %2102 = vmatprep.subr.mxu0 %v1384_v42 }
 0x2d5   : > { %v971_v0 = vpop.permute.xlu1 %970  ;;  %v1365_v23 = vpop.permute.xlu0 %1364 }
 0x2d6   : > { %v1383_v10 = vsel %vm1382_vm15, %v1365_v23, %v1367_v32  ;;  %v979_v41 = vsel %vm363_vm0, %v5991_v61, %v971_v0  ;;  %v997_v47 = vsel %vm381_vm1, %v5829_v20, %v971_v0 }
 0x2d7   : > { %1380 = vrot.lane.b32.xlu0 %v1354_v54, %s4895_s24  ;;  %1259 = vrot.lane.b32.xlu1 %v1234_v31, %s4896_s26  ;;  %v996_v6 = vsel %vm381_vm1, %v1301_v14, %v979_v41  ;;  %s7816_s24 = smov 37  }
 0x2d8   : > { %2103 = vmatpush1.msra.mxu0 %v1383_v10 }
 0x2d9   : > { %v6169_v63 = vpop.permute.xlu1 %1249  ;;  %v1248_v37 = vpop.permute.xlu0 %1247 }
 0x2da   : > { %v1265_v48 = vsel %vm1263_vm3, %v1248_v37, %v6169_v63 }
 0x2db   : > { %1261 = vrot.lane.b32.xlu0 %v1235_v35, %s4896_s26  ;;  %1140 = vrot.lane.b32.xlu1 %v1115_v15, %s4897_s10  ;;  %s7817_s26 = smov 39  }
 0x2dc   : > { %2104 = vmatprep.subr.mxu0 %v1265_v48 }
 0x2dd   : > { %v1129_v1 = vpop.permute.xlu1 %1128  ;;  %v1246_v40 = vpop.permute.xlu0 %1245 }
 0x2de   : > { %v1264_v33 = vsel %vm1263_vm3, %v1246_v40, %v1248_v37 }
 0x2df   : > { %1142 = vrot.lane.b32.xlu0 %v1116_v28, %s4897_s10  ;;  %1021 = vrot.lane.b32.xlu1 %v996_v6, %s4898_s19  ;;  %s4904_s10 = smov 118  }
 0x2e0   : > { %2105 = vmatpush1.msra.mxu0 %v1264_v33 }
 0x2e1   : > { %v1127_v7 = vpop.permute.xlu1 %1126  ;;  %v6186_v61 = vpop.permute.xlu0 %1130 }
 0x2e2   : > { %v1145_v18 = vsel %vm1144_vm5, %v1127_v7, %v1129_v1  ;;  %v1146_v45 = vsel %vm1144_vm5, %v1129_v1, %v6186_v61 }
 0x2e3   : > { %1023 = vrot.lane.b32.xlu0 %v997_v47, %s4898_s19  ;;  %2106 = vmatprep.subr.mxu0 %v1146_v45  ;;  %s4905_s19 = smov 1  }
 0x2e4   : > { %2107 = vmatpush1.msra.mxu0 %v1145_v18  ;;  %2057 = vperm.xlu1 %4714, %v2054_v58  }
 0x2e5   : > { %v6200_v62 = vpop.permute.xlu1 %1011  ;;  %v1010_v30 = vpop.permute.xlu0 %1009 }
 0x2e6   : > { %v1027_v8 = vsel %vm1025_vm6, %v1010_v30, %v6200_v62 }
 0x2e7   : > { %2108 = vmatprep.subr.mxu0 %v1027_v8  ;;  %2383 = vperm.xlu0 %4715, %v2380_v36  }
 0x2e9   : > { %v1904_v46 = vpop.permute.xlu1 %1903  ;;  %v1008_v20 = vpop.permute.xlu0 %1007 }
 0x2ea   : > { %v1918_v4 = vsel %vm1915_vm10, %v6020_v50, %v1904_v46  ;;  %v1026_v38 = vsel %vm1025_vm6, %v1008_v20, %v1010_v30  ;;  %v1959_v50 = vld [vmem:[#allocation3 + $0x88] sm:$0xff] }
 0x2eb   : > { %1934 = vst [vmem:[#allocation3 + $0x350] sm:$0xf] %v1918_v4  ;;  %2109 = vmatpush1.msra.mxu0 %v1026_v38 }
 0x2ec   : > { %2110 = vmatprep.subr.mxu0 %v1975_v39 }
 0x2ed   : > { %v1908_v17 = vpop.permute.xlu1 %1907  ;;  %v1906_v24 = vpop.permute.xlu0 %1905  ;;  %2111 = vmatpush1.msra.mxu0 %v1974_v49 }
 0x2ee   : > { %v1919_v56 = vsel %vm1915_vm10, %v1904_v46, %v1906_v24  ;;  %v1920_v59 = vsel %vm1915_vm10, %v1906_v24, %v1908_v17  ;;  %2112 = vmatprep.subr.mxu0 %v1967_v29 }
 0x2ef   : > { %1935 = vst [vmem:[#allocation3 + $0x358] sm:$0xf] %v1919_v56  ;;  %1936 = vst [vmem:[#allocation3 + $0x360] sm:$0xf] %v1920_v59  ;;  %2113 = vmatpush1.msra.mxu0 %v1966_v34 }
 0x2f0   : > { %2114 = vmatprep.subr.mxu0 %v1959_v50 }
 0x2f1   : > { %v1847_v5 = vpop.permute.xlu1 %1846  ;;  %v6209_v57 = vpop.permute.xlu0 %1909  ;;  %2115 = vmatpush1.msra.mxu0 %v1958_v2 }
 0x2f2   : > { %v1921_v44 = vsel %vm1915_vm10, %v1908_v17, %v6209_v57  ;;  %2116 = vmatprep.subr.mxu0 %v1951_v53  ;;  %v2048_v43 = vld [vmem:[#allocation3 + $0x350] sm:$0xf]  ;;  %v1861_v42 = vsel %vm1858_vm11, %v6045_v51, %v1847_v5 }
 0x2f3   : > { %1937 = vst [vmem:[#allocation3 + $0x368] sm:$0xf] %v1921_v44  ;;  %2117 = vmatpush1.msra.mxu0 %v1950_v21 }
 0x2f4   : > { %2118 = vmatprep.subr.mxu0 %v1943_v55 }
 0x2f5   : > { %v1851_v13 = vpop.permute.xlu1 %1850  ;;  %v1849_v60 = vpop.permute.xlu0 %1848  ;;  %2119 = vmatpush1.msra.mxu0 %v1942_v9 }
 0x2f6   : > { %v2049_v14 = vld [vmem:[#allocation3 + $0x358] sm:$0xf]  ;;  %4610 = vmatmul.mubr.msk.f32.vlgmr.msra.gmra.mxu0 %vm2060_vm7, %v6216_v12  ;;  %v1862_v32 = vsel %vm1858_vm11, %v1847_v5, %v1849_v60  ;;  %v2050_v0 = vld [vmem:[#allocation3 + $0x360] sm:$0xf]  ;;  %v1863_v10 = vsel %vm1858_vm11, %v1849_v60, %v1851_v13 }
 0x2f7   : > { %4611 = vmatprep.subr.msk.mxu1 %vm381_vm1, %v2049_v14  ;;  %2294 = vmatprep.mubr.f32.mxu0 %v7791_v25 }
 0x2f8   : > { %4612 = vmatpush1.msk.msra.mxu1 %vm381_vm1, %v2048_v43 }
 0x2f9   : > { %v1728_v22 = vpop.permute.xlu1 %1727  ;;  %v6226_v52 = vpop.permute.xlu0 %1852  ;;  %2165 = vmatprep.subr.mxu1 %v1862_v32 }
 0x2fa   : > { %v2051_v26 = vld [vmem:[#allocation3 + $0x368] sm:$0xf]  ;;  %2166 = vmatpush1.msra.mxu1 %v1861_v42  ;;  %v1864_v23 = vsel %vm1858_vm11, %v1851_v13, %v6226_v52  ;;  %v1742_v19 = vsel %vm1739_vm12, %v6077_v3, %v1728_v22 }
 0x2fb   : > { %4614 = vmatprep.subr.msk.mxu0 %vm381_vm1, %v2051_v26  ;;  %v1976_v26 = vld [vmem:[#allocation3 + $0x110] sm:$0xff] }
 0x2fc   : > { %4615 = vmatpush1.msk.msra.mxu0 %vm381_vm1, %v2050_v0 }
 0x2fd   : > { %v1732_v54 = vpop.permute.xlu1 %1731  ;;  %v1730_v31 = vpop.permute.xlu0 %1729  ;;  %2236 = vmatprep.subr.mxu0 %v1864_v23 }
 0x2fe   : > { %v1743_v51 = vsel %vm1739_vm12, %v1728_v22, %v1730_v31  ;;  %2237 = vmatpush1.msra.mxu0 %v1863_v10  ;;  %v1744_v15 = vsel %vm1739_vm12, %v1730_v31, %v1732_v54  ;;  %v1969_v10 = vld [vmem:[#allocation3 + $0xd8] sm:$0xff] }
 0x2ff   : > { %2167 = vmatprep.subr.mxu1 %v1743_v51  ;;  %v1961_v31 = vld [vmem:[#allocation3 + $0x98] sm:$0xff]  ;;  %v1979_v51 = vld [vmem:[#allocation3 + $0x128] sm:$0xff] }
 0x300   : > { %2168 = vmatpush1.msra.mxu1 %v1742_v19 }
 0x301   : > { %v1609_v37 = vpop.permute.xlu1 %1608  ;;  %v6236_v48 = vpop.permute.xlu0 %1733 }
 0x302   : > { %v1745_v35 = vsel %vm1739_vm12, %v1732_v54, %v6236_v48  ;;  %v1623_v33 = vsel %vm1620_vm13, %v6103_v11, %v1609_v37 }
 0x303   : > { %2238 = vmatprep.subr.mxu0 %v1745_v35  ;;  %v1978_v35 = vld [vmem:[#allocation3 + $0x120] sm:$0xff] }
 0x304   : > { %2239 = vmatpush1.msra.mxu0 %v1744_v15 }
 0x305   : > { %v1613_v41 = vpop.permute.xlu1 %1612  ;;  %v1611_v1 = vpop.permute.xlu0 %1610 }
 0x306   : > { %v1624_v40 = vsel %vm1620_vm13, %v1609_v37, %v1611_v1  ;;  %v1625_v7 = vsel %vm1620_vm13, %v1611_v1, %v1613_v41  ;;  %v1971_v1 = vld [vmem:[#allocation3 + $0xe8] sm:$0xff] }
 0x307   : > { %2169 = vmatprep.subr.mxu1 %v1624_v40  ;;  %v1952_v40 = vld [vmem:[#allocation3 + $0x50] sm:$0xff] }
 0x308   : > { %2170 = vmatpush1.msra.mxu1 %v1623_v33  ;;  %v1970_v33 = vld [vmem:[#allocation3 + $0xe0] sm:$0xff] }
 0x309   : > { %v1490_v3 = vpop.permute.xlu1 %1489  ;;  %v6244_v28 = vpop.permute.xlu0 %1614 }
 0x30a   : > { %v1626_v6 = vsel %vm1620_vm13, %v1613_v41, %v6244_v28  ;;  %v1504_v47 = vsel %vm1501_vm14, %v6123_v27, %v1490_v3  ;;  %v1953_v41 = vld [vmem:[#allocation3 + $0x58] sm:$0xff] }
 0x30b   : > { %2240 = vmatprep.subr.mxu0 %v1626_v6  ;;  %v1963_v6 = vld [vmem:[#allocation3 + $0xa8] sm:$0xff] }
 0x30c   : > { %2241 = vmatpush1.msra.mxu0 %v1625_v7 }
 0x30d   : > { %v1494_v58 = vpop.permute.xlu1 %1493  ;;  %v1492_v18 = vpop.permute.xlu0 %1491 }
 0x30e   : > { %v1505_v45 = vsel %vm1501_vm14, %v1490_v3, %v1492_v18  ;;  %v1506_v8 = vsel %vm1501_vm14, %v1492_v18, %v1494_v58  ;;  %v1945_v3 = vld [vmem:[#allocation3 + $0x18] sm:$0xff]  ;;  %v1944_v18 = vld [vmem:[#allocation3 + $0x10] sm:$0xff] }
 0x30f   : > { %2171 = vmatprep.subr.mxu1 %v1505_v45  ;;  %v1962_v45 = vld [vmem:[#allocation3 + $0xa0] sm:$0xff] }
 0x310   : > { %2172 = vmatpush1.msra.mxu1 %v1504_v47 }
 0x311   : > { %v1371_v11 = vpop.permute.xlu1 %1370  ;;  %v6252_v36 = vpop.permute.xlu0 %1495 }
 0x312   : > { %v1507_v30 = vsel %vm1501_vm14, %v1494_v58, %v6252_v36  ;;  %v1385_v38 = vsel %vm1382_vm15, %v6148_v16, %v1371_v11 }
 0x313   : > { %2242 = vmatprep.subr.mxu0 %v1507_v30  ;;  %v1954_v30 = vld [vmem:[#allocation3 + $0x60] sm:$0xff] }
 0x314   : > { %2243 = vmatpush1.msra.mxu0 %v1506_v8  ;;  %v1947_v8 = vld [vmem:[#allocation3 + $0x28] sm:$0xff] }
 0x315   : > { %v1375_v46 = vpop.permute.xlu1 %1374  ;;  %v1373_v20 = vpop.permute.xlu0 %1372 }
 0x316   : > { %v1386_v4 = vsel %vm1382_vm15, %v1371_v11, %v1373_v20  ;;  %v1387_v17 = vsel %vm1382_vm15, %v1373_v20, %v1375_v46  ;;  %v1955_v11 = vld [vmem:[#allocation3 + $0x68] sm:$0xff] }
 0x317   : > { %2173 = vmatprep.subr.mxu1 %v1386_v4  ;;  %v1946_v4 = vld [vmem:[#allocation3 + $0x20] sm:$0xff] }
 0x318   : > { %2174 = vmatpush1.msra.mxu1 %v1385_v38 }
 0x319   : > { %v1252_v27 = vpop.permute.xlu1 %1251  ;;  %v6260_v39 = vpop.permute.xlu0 %1376 }
 0x31a   : > { %v1388_v49 = vsel %vm1382_vm15, %v1375_v46, %v6260_v39  ;;  %v1266_v59 = vsel %vm1263_vm3, %v6169_v63, %v1252_v27 }
 0x31b   : > { %2244 = vmatprep.subr.mxu0 %v1388_v49 }
 0x31c   : > { %2245 = vmatpush1.msra.mxu0 %v1387_v17 }
 0x31d   : > { %v1256_v24 = vpop.permute.xlu1 %1255  ;;  %v1254_v29 = vpop.permute.xlu0 %1253 }
 0x31e   : > { %v1267_v56 = vsel %vm1263_vm3, %v1252_v27, %v1254_v29  ;;  %v1268_v2 = vsel %vm1263_vm3, %v1254_v29, %v1256_v24 }
 0x31f   : > { %2175 = vmatprep.subr.mxu1 %v1267_v56 }
 0x320   : > { %2176 = vmatpush1.msra.mxu1 %v1266_v59 }
 0x321   : > { %v1133_v16 = vpop.permute.xlu1 %1132  ;;  %v6268_v34 = vpop.permute.xlu0 %1257 }
 0x322   : > { %v1269_v50 = vsel %vm1263_vm3, %v1256_v24, %v6268_v34  ;;  %v1147_v21 = vsel %vm1144_vm5, %v6186_v61, %v1133_v16  ;;  %v1977_v61 = vld [vmem:[#allocation3 + $0x118] sm:$0xff] }
 0x323   : > { %2246 = vmatprep.subr.mxu0 %v1269_v50 }
 0x324   : > { %2247 = vmatpush1.msra.mxu0 %v1268_v2 }
 0x325   : > { %v1137_v5 = vpop.permute.xlu1 %1136  ;;  %v1135_v53 = vpop.permute.xlu0 %1134 }
 0x326   : > { %v1148_v44 = vsel %vm1144_vm5, %v1133_v16, %v1135_v53  ;;  %v1149_v13 = vsel %vm1144_vm5, %v1135_v53, %v1137_v5 }
 0x327   : > { %2177 = vmatprep.subr.mxu1 %v1148_v44 }
 0x328   : > { %2178 = vmatpush1.msra.mxu1 %v1147_v21 }
 0x329   : > { %v1014_v63 = vpop.permute.xlu1 %1013  ;;  %v6276_v55 = vpop.permute.xlu0 %1138 }
 0x32a   : > { %v1150_v9 = vsel %vm1144_vm5, %v1137_v5, %v6276_v55  ;;  %v1028_v32 = vsel %vm1025_vm6, %v6200_v62, %v1014_v63  ;;  %v1968_v62 = vld [vmem:[#allocation3 + $0xd0] sm:$0xff] }
 0x32b   : > { %2248 = vmatprep.subr.mxu0 %v1150_v9 }
 0x32c   : > { %2249 = vmatpush1.msra.mxu0 %v1149_v13 }
 0x32d   : > { %v1018_v60 = vpop.permute.xlu1 %1017  ;;  %v1016_v14 = vpop.permute.xlu0 %1015 }
 0x32e   : > { %v1029_v43 = vsel %vm1025_vm6, %v1014_v63, %v1016_v14  ;;  %v1030_v54 = vsel %vm1025_vm6, %v1016_v14, %v1018_v60 }
 0x32f   : > { %2179 = vmatprep.subr.mxu1 %v1029_v43 }
 0x330   : > { %2180 = vmatpush1.msra.mxu1 %v1028_v32 }
 0x331   : > { %v1912_v42 = vpop.permute.xlu1 %1911  ;;  %v6284_v22 = vpop.permute.xlu0 %1019  ;;  %2181 = vmatprep.subr.mxu1 %v1977_v61 }
 0x332   : > { %v1922_v0 = vsel %vm1915_vm10, %v6209_v57, %v1912_v42  ;;  %v1031_v23 = vsel %vm1025_vm6, %v1018_v60, %v6284_v22  ;;  %2182 = vmatpush1.msra.mxu1 %v1976_v26  ;;  %v1960_v57 = vld [vmem:[#allocation3 + $0x90] sm:$0xff] }
 0x333   : > { %1938 = vst [vmem:[#allocation3 + $0x370] sm:$0xf] %v1922_v0  ;;  %2183 = vmatprep.subr.mxu1 %v1969_v10  ;;  %2250 = vmatprep.subr.mxu0 %v1031_v23 }
 0x334   : > { %2184 = vmatpush1.msra.mxu1 %v1968_v62  ;;  %2251 = vmatpush1.msra.mxu0 %v1030_v54 }
 0x335   : > { %v1855_v19 = vpop.permute.xlu1 %1854  ;;  %v1914_v37 = vpop.permute.xlu0 %1913  ;;  %2185 = vmatprep.subr.mxu1 %v1961_v31  ;;  %2252 = vmatprep.subr.mxu0 %v1979_v51  ;;  %v1981_v51 = vld [vmem:[#allocation3 + $0x138] sm:$0xff] }
 0x336   : > { %v1923_v15 = vsel %vm1915_vm10, %v1912_v42, %v1914_v37  ;;  %2186 = vmatpush1.msra.mxu1 %v1960_v57  ;;  %2253 = vmatpush1.msra.mxu0 %v1978_v35  ;;  %v1865_v59 = vsel %vm1858_vm11, %v6226_v52, %v1855_v19  ;;  %v1972_v37 = vld [vmem:[#allocation3 + $0xf0] sm:$0xff]  ;;  %v1965_v57 = vld [vmem:[#allocation3 + $0xb8] sm:$0xff] }
 0x337   : > { %1940 = vst.msk [vmem:[#allocation3 + $0x378] sm:$0xf] %vm1939_vm9, %v1923_v15  ;;  %2187 = vmatprep.subr.mxu1 %v1953_v41  ;;  %2254 = vmatprep.subr.mxu0 %v1971_v1  ;;  %v1964_v35 = vld [vmem:[#allocation3 + $0xb0] sm:$0xff]  ;;  %v1949_v41 = vld [vmem:[#allocation3 + $0x38] sm:$0xff]  ;;  %v2404_v1 = vlaneseq }
 0x338   : > { %2188 = vmatpush1.msra.mxu1 %v1952_v40  ;;  %2255 = vmatpush1.msra.mxu0 %v1970_v33  ;;  %v1956_v15 = vld [vmem:[#allocation3 + $0x70] sm:$0xff] }
 0x339   : > { %v1736_v7 = vpop.permute.xlu1 %1735  ;;  %v1857_v58 = vpop.permute.xlu0 %1856  ;;  %2189 = vmatprep.subr.mxu1 %v1945_v3  ;;  %2256 = vmatprep.subr.mxu0 %v1963_v6  ;;  %v6336_v40 = vshrl.u32 %v2404_v1, 7  ;;  %v6345_v6 = vld [vmem:[%s7773_s7] sm:$0xff] }
 0x33a   : > { %v1866_v47 = vsel %vm1858_vm11, %v1855_v19, %v1857_v58  ;;  %2190 = vmatpush1.msra.mxu1 %v1944_v18  ;;  %2257 = vmatpush1.msra.mxu0 %v1962_v45  ;;  %v2052_v49 = vld [vmem:[#allocation3 + $0x370] sm:$0xf]  ;;  %v1746_v53 = vsel %vm1739_vm12, %v6236_v48, %v1736_v7 }
 0x33b   : > { %1882 = vst.msk [vmem:[#allocation3 + $0x338] sm:$0xff] %vm442_vm4, %v1866_v47  ;;  %4613 = vmatmul.mubr.msk.f32.vlgmr.msra.gmra.mxu1 %vm2060_vm7, %v6216_v12  ;;  %2258 = vmatprep.subr.mxu0 %v1955_v11  ;;  %v1980_v19 = vld [vmem:[#allocation3 + $0x130] sm:$0xff]  ;;  %v2406_v3 = vsub.s32 0, %v6336_v40 }
 0x33c   : > { %2259 = vmatpush1.msra.mxu0 %v1954_v30  ;;  %2365 = vmatprep.mubr.f32.mxu1 %v7791_v25 }
 0x33d   : > { %v1617_v46 = vpop.permute.xlu1 %1616  ;;  %v1738_v20 = vpop.permute.xlu0 %1737  ;;  %2260 = vmatprep.subr.mxu0 %v1947_v8  ;;  %v2407_v47 = vrot.slane %v6345_v6, %v2406_v3 }
 0x33e   : > { %v1747_v38 = vsel %vm1739_vm12, %v1736_v7, %v1738_v20  ;;  %v2053_v27 = vld [vmem:[#allocation3 + $0x378] sm:$0xf]  ;;  %2261 = vmatpush1.msra.mxu0 %v1946_v4  ;;  %v1627_v9 = vsel %vm1620_vm13, %v6244_v28, %v1617_v46  ;;  %v2410_v7 = vsub.s32 1, %v6336_v40 }
 0x33f   : > { %1763 = vst.msk [vmem:[#allocation3 + $0x2f8] sm:$0xff] %vm442_vm4, %v1747_v38  ;;  %4617 = vmatprep.subr.msk.mxu1 %vm381_vm1, %v2053_v27  ;;  %4616 = vmatmul.mubr.msk.f32.vlgmr.msra.gmra.mxu0 %vm2060_vm7, %v6216_v12 }
 0x340   : > { %4618 = vmatpush1.msk.msra.mxu1 %vm381_vm1, %v2052_v49  ;;  %4247 = vmatprep.mubr.f32.mxu0 %v7791_v25  ;;  %v2411_v8 = vrot.slane %v6345_v6, %v2410_v7 }
 0x341   : > { %v1498_v17 = vpop.permute.xlu1 %1497  ;;  %v1619_v24 = vpop.permute.xlu0 %1618 }
 0x342   : > { %v1628_v29 = vsel %vm1620_vm13, %v1617_v46, %v1619_v24  ;;  %v2045_v56 = vld [vmem:[#allocation3 + $0x338] sm:$0xff]  ;;  %v1508_v14 = vsel %vm1501_vm14, %v6252_v36, %v1498_v17 }
 0x343   : > { %1644 = vst.msk [vmem:[#allocation3 + $0x2b8] sm:$0xff] %vm442_vm4, %v1628_v29  ;;  %2307 = vmatprep.subr.mxu1 %v2045_v56  ;;  %v2414_v29 = vsub.s32 2, %v6336_v40 }
 0x344   : > { %2308 = vmatpush1.msra.mxu1 %v1865_v59  ;;  %v2418_v59 = vsub.s32 3, %v6336_v40 }
 0x345   : > { %v1379_v16 = vpop.permute.xlu1 %1378  ;;  %v1500_v50 = vpop.permute.xlu0 %1499 }
 0x346   : > { %v1509_v2 = vsel %vm1501_vm14, %v1498_v17, %v1500_v50  ;;  %v2037_v5 = vld [vmem:[#allocation3 + $0x2f8] sm:$0xff]  ;;  %v1389_v42 = vsel %vm1382_vm15, %v6260_v39, %v1379_v16  ;;  %v2415_v50 = vrot.slane %v6345_v6, %v2414_v29 }
 0x347   : > { %1525 = vst.msk [vmem:[#allocation3 + $0x278] sm:$0xff] %vm442_vm4, %v1509_v2  ;;  %2309 = vmatprep.subr.mxu1 %v2037_v5  ;;  %v2422_v5 = vsub.s32 4, %v6336_v40 }
 0x348   : > { %2310 = vmatpush1.msra.mxu1 %v1746_v53 }
 0x349   : > { %v1260_v44 = vpop.permute.xlu1 %1259  ;;  %v1381_v21 = vpop.permute.xlu0 %1380 }
 0x34a   : > { %v1390_v52 = vsel %vm1382_vm15, %v1379_v16, %v1381_v21  ;;  %v2029_v63 = vld [vmem:[#allocation3 + $0x2b8] sm:$0xff]  ;;  %v1270_v10 = vsel %vm1263_vm3, %v6268_v34, %v1260_v44  ;;  %v2419_v21 = vrot.slane %v6345_v6, %v2418_v59 }
 0x34b   : > { %1406 = vst.msk [vmem:[#allocation3 + $0x238] sm:$0xff] %vm442_vm4, %v1390_v52  ;;  %2311 = vmatprep.subr.mxu1 %v2029_v63  ;;  %v1973_v34 = vld [vmem:[#allocation3 + $0xf8] sm:$0xff]  ;;  %v2426_v63 = vsub.s32 5, %v6336_v40 }
 0x34c   : > { %2312 = vmatpush1.msra.mxu1 %v1627_v9 }
 0x34d   : > { %v1262_v13 = vpop.permute.xlu0 %1261  ;;  %v1141_v43 = vpop.permute.xlu1 %1140 }
 0x34e   : > { %v1271_v60 = vsel %vm1263_vm3, %v1260_v44, %v1262_v13  ;;  %v2021_v48 = vld [vmem:[#allocation3 + $0x278] sm:$0xff]  ;;  %v1151_v39 = vsel %vm1144_vm5, %v6276_v55, %v1141_v43  ;;  %vm2453_vm3 = vcmask 1044288  }
 0x34f   : > { %1287 = vst.msk [vmem:[#allocation3 + $0x1f8] sm:$0xff] %vm442_vm4, %v1271_v60  ;;  %2313 = vmatprep.subr.mxu1 %v2021_v48  ;;  %v1957_v55 = vld [vmem:[#allocation3 + $0x78] sm:$0xff] }
 0x350   : > { %2314 = vmatpush1.msra.mxu1 %v1508_v14  ;;  %v2423_v14 = vrot.slane %v6345_v6, %v2422_v5 }
 0x351   : > { %v1143_v32 = vpop.permute.xlu0 %1142  ;;  %v1022_v26 = vpop.permute.xlu1 %1021 }
 0x352   : > { %v1152_v61 = vsel %vm1144_vm5, %v1141_v43, %v1143_v32  ;;  %v2013_v28 = vld [vmem:[#allocation3 + $0x238] sm:$0xff]  ;;  %v1032_v31 = vsel %vm1025_vm6, %v6284_v22, %v1022_v26  ;;  %v1948_v22 = vld [vmem:[#allocation3 + $0x30] sm:$0xff]  ;;  %vm2454_vm5 = vcmask 850948  }
 0x353   : > { %1168 = vst.msk [vmem:[#allocation3 + $0x1b8] sm:$0xff] %vm442_vm4, %v1152_v61  ;;  %2315 = vmatprep.subr.mxu1 %v2013_v28 }
 0x354   : > { %2316 = vmatpush1.msra.mxu1 %v1389_v42 }
 0x355   : > { %v1024_v0 = vpop.permute.xlu0 %1023 }
 0x356   : > { %v1033_v36 = vsel %vm1025_vm6, %v1022_v26, %v1024_v0  ;;  %v2005_v23 = vld [vmem:[#allocation3 + $0x1f8] sm:$0xff]  ;;  %vm2455_vm6 = vmor %vm2454_vm5, %vm2453_vm3  ;;  %v2427_v26 = vrot.slane %v6345_v6, %v2426_v63 }
 0x357   : > { %1049 = vst.msk [vmem:[#allocation3 + $0x178] sm:$0xff] %vm442_vm4, %v1033_v36  ;;  %2317 = vmatprep.subr.mxu1 %v2005_v23 }
 0x358   : > { %2318 = vmatpush1.msra.mxu1 %v1270_v10  ;;  %2456 = vst.msk [vmem:[#allocation2 + $0x20] sm:$0xff] %vm2455_vm6, %v7791_v25 }
 0x35a   : > { %v1997_v54 = vld [vmem:[#allocation3 + $0x1b8] sm:$0xff] }
 0x35b   : > { %2319 = vmatprep.subr.mxu1 %v1997_v54 }
 0x35c   : > { %2320 = vmatpush1.msra.mxu1 %v1151_v39 }
 0x35e   : > { %v1989_v62 = vld [vmem:[#allocation3 + $0x178] sm:$0xff] }
 0x35f   : > { %2321 = vmatprep.subr.mxu1 %v1989_v62  ;;  %v6338_v33 = vpop.permute.xlu1 %2057 }
 0x360   : > { %2322 = vmatpush1.msra.mxu1 %v1032_v31 }
 0x361   : > { %2323 = vmatprep.subr.mxu1 %v1981_v51 }
 0x362   : > { %2324 = vmatpush1.msra.mxu1 %v1980_v19  ;;  %v6349_v58 = vpop.permute.xlu0 %2383 }
 0x363   : > { %2325 = vmatprep.subr.mxu1 %v1973_v34 }
 0x364   : > { %2326 = vmatpush1.msra.mxu1 %v1972_v37 }
 0x365   : > { %2327 = vmatprep.subr.mxu1 %v1965_v57  ;;  %v2430_v57 = vsub.s32 6, %v6336_v40 }
 0x366   : > { %2328 = vmatpush1.msra.mxu1 %v1964_v35  ;;  %v2434_v35 = vsub.s32 7, %v6336_v40  ;;  %v7807_v40 = vmov 0 }
 0x367   : > { %2329 = vmatprep.subr.mxu1 %v1957_v55  ;;  %v2431_v1 = vrot.slane %v6345_v6, %v2430_v57 }
 0x368   : > { %2330 = vmatpush1.msra.mxu1 %v1956_v15  ;;  %v2435_v3 = vrot.slane %v6345_v6, %v2434_v35 }
 0x369   : > { %2331 = vmatprep.subr.mxu1 %v1949_v41 }
 0x36a   : > { %2332 = vmatpush1.msra.mxu1 %v1948_v22 }
 0x36b   : > { %4619 = vmatmul.mubr.msk.f32.vlgmr.msra.gmra.mxu1 %vm2060_vm7, %v6216_v12 }
 0x36c   : > { %4318 = vmatprep.mubr.f32.mxu1 %v7791_v25 }
 0x3b6   : > { %v2154_v12 = vpop.f32.mrf.mxu0 }
 0x3b7   : > { %v2155_v18 = vadd.f32 %v2154_v12, %v6338_v33 }
 0x3b8   : > { %v2156_v45 = vpop.f32.mrf.mxu0 }
 0x3b9   : > { %vm2372_vm10 = vcmp.ge.f32.partialorder %v2155_v18, 0.0  ;;  %v2157_v11 = vadd.f32 %v2156_v45, %v6338_v33  ;;  %v2386_v30 = vmul.f32 %v6349_v58, %v2155_v18 }
 0x3bb   : > { %vm2373_vm11 = vcmp.ge.f32.partialorder %v2157_v11, 0.0  ;;  %v2387_v46 = vmul.f32 %v6349_v58, %v2157_v11  ;;  %v2394_v20 = vsel %vm2372_vm10, %v2155_v18, %v2386_v30  ;;  %vm6442_vm10 = vmor %vm2454_vm5, %vm381_vm1  ;;  %vm2561_vm5 = vcmask 908288  }
 0x3bc   : > { %v6357_v4 = vmul.f32 %v2407_v47, %v2394_v20  ;;  %v7808_v40 = vsel %vm6442_vm10, 4294967295, %v7807_v40 }
 0x3bd   : > { %v2395_v38 = vsel %vm2373_vm11, %v2157_v11, %v2387_v46  ;;  %7809 = vst [vmem:[#allocation12_spill] sm:$0xff] %v7808_v40  ;;  %vm2674_vm11 = vcmask 891904  }
 0x3be   : > { %v6359_v27 = vmul.f32 %v2411_v8, %v2395_v38  ;;  %v6502_v38 = vcombine.low %v6357_v4, %v6357_v4 }
 0x3c0   : > { %v6363_v49 = vcombine.low %v6357_v4, %v6359_v27 }
 0x3c2   : > { %2473 = vst [vmem:[#allocation2 + $0x4] sm:$0xff] %v6363_v49 }
 0x3c9   : > { %v6366_v17 = vld [vmem:[#allocation2] sm:$0xff] }
 0x3ca   : > { %v6370_v24 = vcombine.low %v6366_v17, %v6366_v17 }
 0x3cc   : > { %2498 = vrot.lane.b32.xlu1 %v6370_v24, %s4882_s23 }
 0x3d0   : > { %2500 = vrot.lane.b32.xlu1 %v6366_v17, %s4882_s23 }
 0x3fb   : > { %v2225_v56 = vpop.f32.mrf.mxu1 }
 0x3fc   : > { %v2226_v16 = vadd.f32 %v2225_v56, %v6338_v33 }
 0x3fd   : > { %v2227_v2 = vpop.f32.mrf.mxu1 }
 0x3fe   : > { %vm2374_vm12 = vcmp.ge.f32.partialorder %v2226_v16, 0.0  ;;  %v2388_v53 = vmul.f32 %v6349_v58, %v2226_v16  ;;  %v2228_v44 = vadd.f32 %v2227_v2, %v6338_v33 }
 0x3ff   : > { %v2296_v52 = vpop.f32.mrf.mxu0 }
 0x400   : > { %v2396_v9 = vsel %vm2374_vm12, %v2226_v16, %v2388_v53  ;;  %vm2375_vm13 = vcmp.ge.f32.partialorder %v2228_v44, 0.0  ;;  %v2389_v13 = vmul.f32 %v6349_v58, %v2228_v44  ;;  %v2297_v60 = vadd.f32 %v2296_v52, %v6338_v33 }
 0x401   : > { %v6387_v48 = vmul.f32 %v2415_v50, %v2396_v9  ;;  %v2298_v43 = vpop.f32.mrf.mxu0  ;;  %v6548_v53 = vcombine.high %v6366_v17, %v6366_v17  ;;  %vm2792_vm12 = vcmask 818176  }
 0x402   : > { %v2397_v32 = vsel %vm2375_vm13, %v2228_v44, %v2389_v13  ;;  %vm2376_vm14 = vcmp.ge.f32.partialorder %v2297_v60, 0.0  ;;  %v2390_v61 = vmul.f32 %v6349_v58, %v2297_v60  ;;  %v2299_v28 = vadd.f32 %v2298_v43, %v6338_v33 }
 0x403   : > { %v6392_v42 = vmul.f32 %v2419_v21, %v2397_v32  ;;  %v6488_v46 = vcombine.low %v6387_v48, %v6387_v48  ;;  %vm7818_vm13 = vcmask 138240  }
 0x404   : > { %v2398_v0 = vsel %vm2376_vm14, %v2297_v60, %v2390_v61  ;;  %vm2377_vm15 = vcmp.ge.f32.partialorder %v2299_v28, 0.0  ;;  %v2391_v36 = vmul.f32 %v6349_v58, %v2299_v28  ;;  %vm7819_vm14 = vmmov %vm7818_vm13 }
 0x405   : > { %v6398_v23 = vcombine.low %v6387_v48, %v6392_v42  ;;  %v2448_v10 = vmul.f32 %v2423_v14, %v2398_v0 }
 0x406   : > { %v2399_v54 = vsel %vm2377_vm15, %v2299_v28, %v2391_v36  ;;  %vm7820_vm15 = vmmov %vm7818_vm13 }
 0x407   : > { %2474 = vst [vmem:[#allocation2 + $0xc] sm:$0xff] %v6398_v23  ;;  %v2449_v39 = vmul.f32 %v2427_v26, %v2399_v54  ;;  %v6494_v20 = vcombine.low %v2448_v10, %v2448_v10 }
 0x409   : > { %v6401_v62 = vcombine.low %v2448_v10, %v2449_v39 }
 0x40b   : > { %2475 = vst [vmem:[#allocation2 + $0x14] sm:$0xff] %v6401_v62 }
 0x40e   : > { %v6404_v31 = vld [vmem:[#allocation2 + $0x8] sm:$0xff] }
 0x40f   : > { %2504 = vrot.lane.b32.xlu1 %v6404_v31, %s4882_s23  ;;  %v6410_v51 = vcombine.low %v6404_v31, %v6404_v31 }
 0x411   : > { %2502 = vrot.lane.b32.xlu0 %v6410_v51, %s4882_s23 }
 0x412   : > { %v6418_v19 = vld [vmem:[#allocation2 + $0x10] sm:$0xff] }
 0x413   : > { %2610 = vrot.lane.b32.xlu1 %v6366_v17, %s4883_s15  ;;  %v6426_v34 = vcombine.low %v6418_v19, %v6418_v19 }
 0x415   : > { %2608 = vrot.lane.b32.xlu0 %v6370_v24, %s4883_s15 }
 0x417   : > { %2614 = vrot.lane.b32.xlu1 %v6404_v31, %s4883_s15 }
 0x419   : > { %2612 = vrot.lane.b32.xlu0 %v6410_v51, %s4883_s15 }
 0x41b   : > { %2508 = vrot.lane.b32.xlu1 %v6418_v19, %s4882_s23 }
 0x41d   : > { %2506 = vrot.lane.b32.xlu0 %v6426_v34, %s4882_s23 }
 0x42b   : > { %v2367_v37 = vpop.f32.mrf.mxu1 }
 0x42c   : > { %v2368_v55 = vadd.f32 %v2367_v37, %v6338_v33 }
 0x42d   : > { %v2369_v15 = vpop.f32.mrf.mxu1 }
 0x42e   : > { %vm2378_vm3 = vcmp.ge.f32.partialorder %v2368_v55, 0.0  ;;  %v2392_v41 = vmul.f32 %v6349_v58, %v2368_v55  ;;  %v2370_v22 = vadd.f32 %v2369_v15, %v6338_v33 }
 0x430   : > { %v2400_v12 = vsel %vm2378_vm3, %v2368_v55, %v2392_v41  ;;  %vm2379_vm6 = vcmp.ge.f32.partialorder %v2370_v22, 0.0  ;;  %v2393_v7 = vmul.f32 %v6349_v58, %v2370_v22  ;;  %vm7821_vm3 = vmmov %vm7818_vm13 }
 0x431   : > { %v2450_v45 = vmul.f32 %v2431_v1, %v2400_v12 }
 0x432   : > { %v2401_v18 = vsel %vm2379_vm6, %v2370_v22, %v2393_v7  ;;  %vm7822_vm6 = vcmask 154624  }
 0x433   : > { %v2451_v47 = vmul.f32 %v2435_v3, %v2401_v18 }
 0x435   : > { %v2468_v11 = vcombine.low %v2450_v45, %v2451_v47 }
 0x437   : > { %2477 = vst.msk [vmem:[#allocation2 + $0x1c] sm:$0xff] %vm6442_vm10, %v2468_v11 }
 0x43e   : > { %v6448_v33 = vld [vmem:[#allocation2 + $0x18] sm:$0xff]  ;;  %v4753_v58 = vld [vmem:[#allocation2 + $0x20] ss:$0 sps:$4 sm:$0xff]   ;;  %v2499_v4 = vpop.permute.xlu1 %2498 }
 0x43f   : > { %2512 = vrot.lane.b32.xlu1 %v6448_v33, %s4882_s23  ;;  %v6454_v6 = vcombine.low %v6448_v33, %v6448_v33  ;;  %v2702_v30 = vld [vmem:[#allocation2 + $0x20] sm:$0xf]  ;;  %v6590_v11 = vcombine.high %v6448_v33, %v6448_v33 }
 0x440   : > { %v2720_v8 = vcombine.low %v2702_v30, %v2702_v30 }
 0x441   : > { %2510 = vrot.lane.b32.xlu0 %v6454_v6, %s4882_s23 }
 0x442   : > { %v2501_v29 = vpop.permute.xlu1 %2500 }
 0x443   : > { %2618 = vrot.lane.b32.xlu1 %v6418_v19, %s4883_s15  ;;  %v2514_v50 = vsel %vm363_vm0, %v2499_v4, %v2501_v29 }
 0x444   : > { %v2529_v44 = vsel %vm381_vm1, %v6366_v17, %v2514_v50 }
 0x445   : > { %2616 = vrot.lane.b32.xlu0 %v6426_v34, %s4883_s15 }
 0x447   : > { %2622 = vrot.lane.b32.xlu1 %v6448_v33, %s4883_s15 }
 0x449   : > { %2620 = vrot.lane.b32.xlu0 %v6454_v6, %s4883_s15 }
 0x44b   : > { %2721 = vrot.lane.b32.xlu1 %v6370_v24, %s4882_s23 }
 0x44d   : > { %2624 = vrot.lane.b32.xlu0 %v4753_v58, %s4883_s15 }
 0x44f   : > { %2725 = vrot.lane.b32.xlu1 %v6410_v51, %s4882_s23 }
 0x451   : > { %2723 = vrot.lane.b32.xlu0 %v6366_v17, %s4882_s23 }
 0x453   : > { %2729 = vrot.lane.b32.xlu1 %v6426_v34, %s4882_s23 }
 0x455   : > { %2727 = vrot.lane.b32.xlu0 %v6404_v31, %s4882_s23 }
 0x457   : > { %2733 = vrot.lane.b32.xlu1 %v6454_v6, %s4882_s23 }
 0x459   : > { %2731 = vrot.lane.b32.xlu0 %v6418_v19, %s4882_s23 }
 0x45b   : > { %2737 = vrot.lane.b32.xlu1 %v2720_v8, %s4882_s23 }
 0x45d   : > { %2735 = vrot.lane.b32.xlu0 %v6448_v33, %s4882_s23 }
 0x45f   : > { %3888 = vrot.lane.b32.xlu1 %v6363_v49, %s4882_s23 }
 0x461   : > { %3890 = vrot.lane.b32.xlu0 %v6488_v46, %s4882_s23 }
 0x463   : > { %3892 = vrot.lane.b32.xlu1 %v6398_v23, %s4882_s23 }
 0x465   : > { %3894 = vrot.lane.b32.xlu0 %v6494_v20, %s4882_s23 }
 0x467   : > { %3896 = vrot.lane.b32.xlu1 %v6401_v62, %s4882_s23 }
 0x469   : > { %3886 = vrot.lane.b32.xlu0 %v6502_v38, %s4882_s23 }
 0x46b   : > { %3770 = vrot.lane.b32.xlu1 %v6363_v49, %s4882_s23 }
 0x46d   : > { %3772 = vrot.lane.b32.xlu0 %v6488_v46, %s4882_s23 }
 0x46f   : > { %3774 = vrot.lane.b32.xlu1 %v6398_v23, %s4882_s23 }
 0x471   : > { %3776 = vrot.lane.b32.xlu0 %v6494_v20, %s4882_s23 }
 0x473   : > { %3778 = vrot.lane.b32.xlu1 %v6401_v62, %s4882_s23 }
 0x475   : > { %3768 = vrot.lane.b32.xlu0 %v6502_v38, %s4882_s23 }
 0x477   : > { %3652 = vrot.lane.b32.xlu1 %v6363_v49, %s4883_s15 }
 0x479   : > { %3654 = vrot.lane.b32.xlu0 %v6488_v46, %s4883_s15 }
 0x47b   : > { %3656 = vrot.lane.b32.xlu1 %v6398_v23, %s4883_s15 }
 0x47d   : > { %3658 = vrot.lane.b32.xlu0 %v6494_v20, %s4883_s15 }
 0x47f   : > { %3660 = vrot.lane.b32.xlu1 %v6401_v62, %s4883_s15 }
 0x481   : > { %3650 = vrot.lane.b32.xlu0 %v6502_v38, %s4883_s15  ;;  %v2505_v59 = vpop.permute.xlu1 %2504 }
 0x483   : > { %3534 = vrot.lane.b32.xlu1 %v6363_v49, %s4882_s23  ;;  %v2503_v56 = vpop.permute.xlu0 %2502 }
 0x484   : > { %v2515_v5 = vsel %vm363_vm0, %v2501_v29, %v2503_v56  ;;  %v2516_v21 = vsel %vm363_vm0, %v2503_v56, %v2505_v59  ;;  %v2487_v56 = vcombine.high %v6404_v31, %v6404_v31 }
 0x485   : > { %3536 = vrot.lane.b32.xlu0 %v6488_v46, %s4882_s23  ;;  %v2611_v2 = vpop.permute.xlu1 %2610  ;;  %v2530_v63 = vsel %vm381_vm1, %v6548_v53, %v2515_v5  ;;  %v2531_v60 = vsel %vm381_vm1, %v6404_v31, %v2516_v21  ;;  %v2488_v21 = vcombine.high %v6418_v19, %v6418_v19 }
 0x487   : > { %3538 = vrot.lane.b32.xlu1 %v6398_v23, %s4882_s23  ;;  %v2609_v16 = vpop.permute.xlu0 %2608 }
 0x488   : > { %v2626_v9 = vsel %vm485_vm2, %v2609_v16, %v2611_v2 }
 0x489   : > { %3540 = vrot.lane.b32.xlu0 %v6494_v20, %s4882_s23  ;;  %v2615_v13 = vpop.permute.xlu1 %2614  ;;  %v2642_v14 = vsel %vm381_vm1, %v6366_v17, %v2626_v9 }
 0x48b   : > { %3542 = vrot.lane.b32.xlu1 %v6401_v62, %s4882_s23  ;;  %v2613_v52 = vpop.permute.xlu0 %2612 }
 0x48c   : > { %v2627_v48 = vsel %vm485_vm2, %v2611_v2, %v2613_v52  ;;  %v2628_v43 = vsel %vm485_vm2, %v2613_v52, %v2615_v13 }
 0x48d   : > { %3532 = vrot.lane.b32.xlu0 %v6502_v38, %s4882_s23  ;;  %v2643_v32 = vsel %vm381_vm1, %v6548_v53, %v2627_v48  ;;  %v2644_v61 = vsel %vm381_vm1, %v6404_v31, %v2628_v43  ;;  %v2509_v28 = vpop.permute.xlu1 %2508 }
 0x48f   : > { %3424 = vrot.lane.b32.xlu1 %v6363_v49, %s4882_s23  ;;  %v2507_v26 = vpop.permute.xlu0 %2506 }
 0x490   : > { %v2517_v4 = vsel %vm363_vm0, %v2505_v59, %v2507_v26  ;;  %v2518_v29 = vsel %vm363_vm0, %v2507_v26, %v2509_v28 }
 0x491   : > { %2545 = vrot.lane.b32.xlu0 %v2529_v44, %s4901_s29  ;;  %v2533_v2 = vsel %vm381_vm1, %v6418_v19, %v2518_v29  ;;  %v2532_v5 = vsel %vm381_vm1, %v2487_v56, %v2517_v4 }
 0x493   : > { %2547 = vrot.lane.b32.xlu1 %v2530_v63, %s4901_s29 }
 0x495   : > { %2549 = vrot.lane.b32.xlu0 %v2531_v60, %s4901_s29 }
 0x497   : > { %2658 = vrot.lane.b32.xlu1 %v2642_v14, %s4902_s12 }
 0x499   : > { %2660 = vrot.lane.b32.xlu0 %v2643_v32, %s4902_s12 }
 0x49b   : > { %2662 = vrot.lane.b32.xlu1 %v2644_v61, %s4902_s12 }
 0x4b1   : > { %v2513_v0 = vpop.permute.xlu1 %2512 }
 0x4b2   : > { %v2536_v8 = vsel %vm381_vm1, %v6590_v11, %v2513_v0 }
 0x4b3   : > { %v2511_v36 = vpop.permute.xlu0 %2510 }
 0x4b4   : > { %v2519_v59 = vsel %vm363_vm0, %v2509_v28, %v2511_v36  ;;  %v2520_v44 = vsel %vm363_vm0, %v2511_v36, %v2513_v0 }
 0x4b5   : > { %v2619_v10 = vpop.permute.xlu1 %2618  ;;  %v2535_v9 = vsel %vm381_vm1, %v6448_v33, %v2520_v44  ;;  %v2534_v60 = vsel %vm381_vm1, %v2488_v21, %v2519_v59 }
 0x4b7   : > { %v2617_v54 = vpop.permute.xlu0 %2616 }
 0x4b8   : > { %v2629_v48 = vsel %vm485_vm2, %v2615_v13, %v2617_v54  ;;  %v2630_v14 = vsel %vm485_vm2, %v2617_v54, %v2619_v10 }
 0x4b9   : > { %v2623_v39 = vpop.permute.xlu1 %2622  ;;  %v2645_v61 = vsel %vm381_vm1, %v2487_v56, %v2629_v48  ;;  %v2646_v28 = vsel %vm381_vm1, %v6418_v19, %v2630_v14 }
 0x4bb   : > { %v2621_v37 = vpop.permute.xlu0 %2620 }
 0x4bc   : > { %v2631_v26 = vsel %vm485_vm2, %v2619_v10, %v2621_v37  ;;  %v2632_v0 = vsel %vm485_vm2, %v2621_v37, %v2623_v39 }
 0x4bd   : > { %v2722_v57 = vpop.permute.xlu1 %2721  ;;  %v2647_v54 = vsel %vm381_vm1, %v2488_v21, %v2631_v26 }
 0x4bf   : > { %v2625_v35 = vpop.permute.xlu0 %2624 }
 0x4c1   : > { %v2726_v55 = vpop.permute.xlu1 %2725 }
 0x4c3   : > { %v2724_v15 = vpop.permute.xlu0 %2723 }
 0x4c4   : > { %v2739_v41 = vsel %vm363_vm0, %v2722_v57, %v2724_v15  ;;  %v2740_v22 = vsel %vm363_vm0, %v2724_v15, %v2726_v55  ;;  %v2648_v57 = vsel %vm381_vm1, %v6448_v33, %v2632_v0 }
 0x4c5   : > { %v2730_v1 = vpop.permute.xlu1 %2729  ;;  %v2756_v3 = vsel %vm381_vm1, %v6366_v17, %v2739_v41  ;;  %v2757_v12 = vsel %vm381_vm1, %v6548_v53, %v2740_v22 }
 0x4c6   : > { %2774 = vrot.lane.b32.xlu0 %v2756_v3, %s4903_s13  ;;  %2776 = vrot.lane.b32.xlu1 %v2757_v12, %s4903_s13 }
 0x4c7   : > { %v2728_v7 = vpop.permute.xlu0 %2727 }
 0x4c8   : > { %v2741_v18 = vsel %vm363_vm0, %v2726_v55, %v2728_v7  ;;  %v2633_v55 = vsel %vm485_vm2, %v2623_v39, %v2625_v35  ;;  %v2742_v15 = vsel %vm363_vm0, %v2728_v7, %v2730_v1 }
 0x4c9   : > { %v6581_v45 = vpop.permute.xlu1 %2733  ;;  %v2758_v47 = vsel %vm381_vm1, %v6404_v31, %v2741_v18  ;;  %v2649_v41 = vsel %vm381_vm1, %v6590_v11, %v2633_v55  ;;  %v2759_v22 = vsel %vm381_vm1, %v2487_v56, %v2742_v15  ;;  %v6793_v55 = vld [vmem:[#allocation2 + $0x24] sm:$0xf] }
 0x4ca   : > { %2778 = vrot.lane.b32.xlu0 %v2758_v47, %s4903_s13  ;;  %3428 = vrot.lane.b32.xlu1 %v6398_v23, %s4882_s23  ;;  %v6795_v15 = vld [vmem:[#allocation2 + $0x24] sm:$0xf] }
 0x4cb   : > { %v6592_v58 = vpop.permute.xlu0 %2731 }
 0x4cc   : > { %v2743_v3 = vsel %vm363_vm0, %v2730_v1, %v6592_v58 }
 0x4cd   : > { %v6594_v30 = vpop.permute.xlu1 %2737  ;;  %v2760_v12 = vsel %vm381_vm1, %v6418_v19, %v2743_v3 }
 0x4ce   : > { %7810 = vst [vmem:[#allocation13_spill] sm:$0xff] %v6594_v30  ;;  %3426 = vrot.lane.b32.xlu0 %v6488_v46, %s4882_s23  ;;  %2559 = vrot.lane.b32.xlu1 %v2536_v8, %s4901_s29 }
 0x4cf   : > { %v6605_v16 = vpop.permute.xlu0 %2735 }
 0x4d0   : > { %7811 = vst [vmem:[#allocation14_spill] sm:$0xff] %v6605_v16 }
 0x4d1   : > { %v6607_v50 = vpop.permute.xlu1 %3888 }
 0x4d2   : > { %2553 = vrot.lane.b32.xlu0 %v2533_v2, %s4901_s29  ;;  %2551 = vrot.lane.b32.xlu1 %v2532_v5, %s4901_s29 }
 0x4d3   : > { %v6618_v52 = vpop.permute.xlu0 %3890 }
 0x4d5   : > { %v6620_v63 = vpop.permute.xlu1 %3892 }
 0x4d6   : > { %2557 = vrot.lane.b32.xlu0 %v2535_v9, %s4901_s29  ;;  %2555 = vrot.lane.b32.xlu1 %v2534_v60, %s4901_s29 }
 0x4d7   : > { %v6629_v43 = vpop.permute.xlu0 %3894 }
 0x4d9   : > { %v6631_v32 = vpop.permute.xlu1 %3896 }
 0x4da   : > { %2664 = vrot.lane.b32.xlu0 %v2645_v61, %s4902_s12  ;;  %2666 = vrot.lane.b32.xlu1 %v2646_v28, %s4902_s12 }
 0x4db   : > { %v6640_v13 = vpop.permute.xlu0 %3886 }
 0x4dc   : > { %v3904_v40 = vsel %vm363_vm0, %v6640_v13, %v6607_v50 }
 0x4dd   : > { %v6642_v36 = vpop.permute.xlu1 %3770 }
 0x4de   : > { %2668 = vrot.lane.b32.xlu0 %v2647_v54, %s4902_s12  ;;  %2670 = vrot.lane.b32.xlu1 %v2648_v57, %s4902_s12  ;;  %v6769_v54 = vld [vmem:[#allocation2 + $0x1c] sm:$0xff] }
 0x4df   : > { %v6651_v10 = vpop.permute.xlu0 %3772 }
 0x4e1   : > { %v6653_v37 = vpop.permute.xlu1 %3774 }
 0x4e2   : > { %2672 = vrot.lane.b32.xlu0 %v2649_v41, %s4902_s12  ;;  %2780 = vrot.lane.b32.xlu1 %v2759_v22, %s4903_s13  ;;  %v3649_v41 = vcombine.low %v6793_v55, %v6793_v55  ;;  %v3531_v22 = vcombine.low %v6795_v15, %v6795_v15 }
 0x4e3   : > { %v6662_v39 = vpop.permute.xlu0 %3776 }
 0x4e5   : > { %v6664_v35 = vpop.permute.xlu1 %3778 }
 0x4e6   : > { %2782 = vrot.lane.b32.xlu0 %v2760_v12, %s4903_s13  ;;  %3432 = vrot.lane.b32.xlu1 %v6401_v62, %s4882_s23 }
 0x4e7   : > { %v6671_v7 = vpop.permute.xlu0 %3768 }
 0x4e9   : > { %v6673_v18 = vpop.permute.xlu1 %3652 }
 0x4ea   : > { %3430 = vrot.lane.b32.xlu0 %v6494_v20, %s4882_s23  ;;  %3318 = vrot.lane.b32.xlu1 %v6363_v49, %s4883_s15 }
 0x4eb   : > { %v6679_v1 = vpop.permute.xlu0 %3654 }
 0x4ed   : > { %v6681_v47 = vpop.permute.xlu1 %3656 }
 0x4ee   : > { %3422 = vrot.lane.b32.xlu0 %v6502_v38, %s4882_s23  ;;  %3322 = vrot.lane.b32.xlu1 %v6398_v23, %s4883_s15 }
 0x4ef   : > { %v6687_v8 = vpop.permute.xlu0 %3658 }
 0x4f1   : > { %v6689_v4 = vpop.permute.xlu1 %3660 }
 0x4f2   : > { %3320 = vrot.lane.b32.xlu0 %v6488_v46, %s4883_s15  ;;  %3326 = vrot.lane.b32.xlu1 %v6401_v62, %s4883_s15 }
 0x4f3   : > { %v6695_v29 = vpop.permute.xlu0 %3650 }
 0x4f5   : > { %v6697_v56 = vpop.permute.xlu1 %3534 }
 0x4f6   : > { %3324 = vrot.lane.b32.xlu0 %v6494_v20, %s4883_s15  ;;  %3203 = vrot.lane.b32.xlu1 %v6502_v38, %s4882_s23 }
 0x4f7   : > { %v6703_v2 = vpop.permute.xlu0 %3536 }
 0x4f9   : > { %v6705_v5 = vpop.permute.xlu1 %3538 }
 0x4fa   : > { %3316 = vrot.lane.b32.xlu0 %v6502_v38, %s4883_s15  ;;  %3207 = vrot.lane.b32.xlu1 %v6488_v46, %s4882_s23 }
 0x4fb   : > { %v6711_v59 = vpop.permute.xlu0 %3540 }
 0x4fd   : > { %v6713_v44 = vpop.permute.xlu1 %3542 }
 0x4fe   : > { %3205 = vrot.lane.b32.xlu0 %v6363_v49, %s4882_s23  ;;  %3211 = vrot.lane.b32.xlu1 %v6494_v20, %s4882_s23 }
 0x4ff   : > { %v6719_v21 = vpop.permute.xlu0 %3532 }
 0x501   : > { %v6721_v9 = vpop.permute.xlu1 %3424 }
 0x502   : > { %3209 = vrot.lane.b32.xlu0 %v6398_v23, %s4882_s23  ;;  %3082 = vrot.lane.b32.xlu1 %v6410_v51, %s4882_s23 }
 0x503   : > { %v2546_v46 = vpop.permute.xlu0 %2545 }
 0x505   : > { %v2548_v38 = vpop.permute.xlu1 %2547 }
 0x506   : > { %v2562_v60 = vsel %vm2561_vm5, %v2546_v46, %v2548_v38  ;;  %3080 = vrot.lane.b32.xlu0 %v6366_v17, %s4882_s23  ;;  %3086 = vrot.lane.b32.xlu1 %v6426_v34, %s4882_s23 }
 0x507   : > { %2577 = vst [vmem:[#allocation3] sm:$0xff] %v2562_v60  ;;  %v6732_v20 = vpop.permute.xlu0 %2549 }
 0x508   : > { %v2563_v48 = vsel %vm2561_vm5, %v2548_v38, %v6732_v20 }
 0x509   : > { %2578 = vst [vmem:[#allocation3 + $0x8] sm:$0xff] %v2563_v48  ;;  %v2659_v14 = vpop.permute.xlu1 %2658 }
 0x50a   : > { %3084 = vrot.lane.b32.xlu0 %v6404_v31, %s4882_s23  ;;  %3078 = vrot.lane.b32.xlu1 %v6370_v24, %s4882_s23 }
 0x50b   : > { %v2661_v61 = vpop.permute.xlu0 %2660 }
 0x50c   : > { %v2675_v28 = vsel %vm2674_vm11, %v2659_v14, %v2661_v61 }
 0x50d   : > { %2690 = vst [vmem:[#allocation3 + $0x40] sm:$0xff] %v2675_v28  ;;  %v6741_v26 = vpop.permute.xlu1 %2662 }
 0x50e   : > { %v2676_v0 = vsel %vm2674_vm11, %v2661_v61, %v6741_v26  ;;  %3088 = vrot.lane.b32.xlu0 %v6418_v19, %s4882_s23  ;;  %2963 = vrot.lane.b32.xlu1 %v6410_v51, %s4888_s21 }
 0x50f   : > { %2691 = vst [vmem:[#allocation3 + $0x48] sm:$0xff] %v2676_v0 }
 0x512   : > { %2961 = vrot.lane.b32.xlu0 %v6366_v17, %s4888_s21  ;;  %2967 = vrot.lane.b32.xlu1 %v6426_v34, %s4888_s21 }
 0x516   : > { %2965 = vrot.lane.b32.xlu0 %v6404_v31, %s4888_s21  ;;  %2959 = vrot.lane.b32.xlu1 %v6370_v24, %s4888_s21 }
 0x51a   : > { %2969 = vrot.lane.b32.xlu0 %v6418_v19, %s4888_s21  ;;  %2844 = vrot.lane.b32.xlu1 %v6410_v51, %s4882_s23  ;;  %v6775_v51 = vld [vmem:[#allocation2 + $0x24] sm:$0xf] }
 0x51e   : > { %2842 = vrot.lane.b32.xlu0 %v6366_v17, %s4882_s23  ;;  %2848 = vrot.lane.b32.xlu1 %v6426_v34, %s4882_s23  ;;  %v6777_v17 = vld [vmem:[#allocation2 + $0x24] sm:$0xf]  ;;  %v3884_v34 = vcombine.low %v6769_v54, %v6769_v54 }
 0x51f   : > { %v3767_v57 = vcombine.low %v6777_v17, %v6777_v17 }
 0x522   : > { %2846 = vrot.lane.b32.xlu0 %v6404_v31, %s4882_s23  ;;  %2840 = vrot.lane.b32.xlu1 %v6370_v24, %s4882_s23  ;;  %v3885_v24 = vcombine.low %v6775_v51, %v6775_v51 }
 0x526   : > { %2850 = vrot.lane.b32.xlu0 %v6418_v19, %s4882_s23  ;;  %3900 = vrot.lane.b32.xlu1 %v6769_v54, %s4882_s23 }
 0x52a   : > { %3898 = vrot.lane.b32.xlu0 %v3884_v34, %s4882_s23  ;;  %3780 = vrot.lane.b32.xlu1 %v3884_v34, %s4882_s23 }
 0x52e   : > { %3902 = vrot.lane.b32.xlu0 %v3885_v24, %s4882_s23  ;;  %3784 = vrot.lane.b32.xlu1 %v3767_v57, %s4882_s23 }
 0x532   : > { %3782 = vrot.lane.b32.xlu0 %v6769_v54, %s4882_s23  ;;  %3664 = vrot.lane.b32.xlu1 %v6769_v54, %s4883_s15 }
 0x536   : > { %3662 = vrot.lane.b32.xlu0 %v3884_v34, %s4883_s15  ;;  %3544 = vrot.lane.b32.xlu1 %v3884_v34, %s4882_s23 }
 0x538   : > { %v2775_v3 = vpop.permute.xlu0 %2774  ;;  %v2777_v12 = vpop.permute.xlu1 %2776 }
 0x539   : > { %v2793_v46 = vsel %vm2792_vm12, %v2775_v3, %v2777_v12 }
 0x53a   : > { %2809 = vst [vmem:[#allocation3 + $0x80] sm:$0xff] %v2793_v46  ;;  %3666 = vrot.lane.b32.xlu0 %v3649_v41, %s4883_s15  ;;  %3548 = vrot.lane.b32.xlu1 %v3531_v22, %s4882_s23 }
 0x53c   : > { %v2779_v38 = vpop.permute.xlu0 %2778  ;;  %v6806_v60 = vpop.permute.xlu1 %3428 }
 0x53d   : > { %v2794_v48 = vsel %vm2792_vm12, %v2777_v12, %v2779_v38 }
 0x53e   : > { %2810 = vst [vmem:[#allocation3 + $0x88] sm:$0xff] %v2794_v48  ;;  %3546 = vrot.lane.b32.xlu0 %v6769_v54, %s4882_s23  ;;  %3436 = vrot.lane.b32.xlu1 %v6769_v54, %s4882_s23  ;;  %v6827_v48 = vld [vmem:[#allocation2 + $0x20] sm:$0xf] }
 0x540   : > { %v6813_v14 = vpop.permute.xlu0 %3426  ;;  %v2560_v61 = vpop.permute.xlu1 %2559 }
 0x541   : > { %2584 = vst.msk [vmem:[#allocation3 + $0x38] sm:$0xff] %vm442_vm4, %v2560_v61 }
 0x542   : > { %3434 = vrot.lane.b32.xlu0 %v3884_v34, %s4882_s23  ;;  %3330 = vrot.lane.b32.xlu1 %v6769_v54, %s4883_s15 }
 0x544   : > { %v2554_v28 = vpop.permute.xlu0 %2553  ;;  %v2552_v0 = vpop.permute.xlu1 %2551 }
 0x545   : > { %v2564_v24 = vsel %vm2561_vm5, %v6732_v20, %v2552_v0  ;;  %v2565_v57 = vsel %vm2561_vm5, %v2552_v0, %v2554_v28 }
 0x546   : > { %2579 = vst [vmem:[#allocation3 + $0x10] sm:$0xff] %v2564_v24  ;;  %2580 = vst [vmem:[#allocation3 + $0x18] sm:$0xff] %v2565_v57  ;;  %3328 = vrot.lane.b32.xlu0 %v3884_v34, %s4883_s15  ;;  %3215 = vrot.lane.b32.xlu1 %v3884_v34, %s4882_s23  ;;  %s7814_s15 = smov 19  }
 0x548   : > { %v2558_v41 = vpop.permute.xlu0 %2557  ;;  %v2556_v22 = vpop.permute.xlu1 %2555 }
 0x549   : > { %v2568_v3 = vsel %vm2561_vm5, %v2558_v41, %v2560_v61  ;;  %v2566_v12 = vsel %vm2561_vm5, %v2554_v28, %v2556_v22  ;;  %v2567_v46 = vsel %vm2561_vm5, %v2556_v22, %v2558_v41  ;;  %v3077_v61 = vcombine.low %v6827_v48, %v6827_v48  ;;  %vm7823_vm5 = vmmov %vm7822_vm6 }
 0x54a   : > { %2583 = vst [vmem:[#allocation3 + $0x30] sm:$0xff] %v2568_v3  ;;  %2581 = vst [vmem:[#allocation3 + $0x20] sm:$0xff] %v2566_v12  ;;  %3213 = vrot.lane.b32.xlu0 %v6401_v62, %s4882_s23  ;;  %3090 = vrot.lane.b32.xlu1 %v6454_v6, %s4882_s23 }
 0x54b   : > { %2582 = vst [vmem:[#allocation3 + $0x28] sm:$0xff] %v2567_v46 }
 0x54c   : > { %v2665_v20 = vpop.permute.xlu0 %2664  ;;  %v2667_v34 = vpop.permute.xlu1 %2666 }
 0x54d   : > { %v2677_v28 = vsel %vm2674_vm11, %v6741_v26, %v2665_v20  ;;  %v2678_v0 = vsel %vm2674_vm11, %v2665_v20, %v2667_v34  ;;  %v6850_v20 = vld [vmem:[#allocation2 + $0x20] sm:$0xf] }
 0x54e   : > { %2692 = vst [vmem:[#allocation3 + $0x50] sm:$0xff] %v2677_v28  ;;  %2693 = vst [vmem:[#allocation3 + $0x58] sm:$0xff] %v2678_v0  ;;  %3217 = vrot.lane.b32.xlu0 %v6769_v54, %s4882_s23  ;;  %3094 = vrot.lane.b32.xlu1 %v3077_v61, %s4882_s23  ;;  %v2958_v0 = vcombine.low %v6850_v20, %v6850_v20 }
 0x550   : > { %v2669_v24 = vpop.permute.xlu0 %2668  ;;  %v2671_v57 = vpop.permute.xlu1 %2670 }
 0x551   : > { %v2679_v41 = vsel %vm2674_vm11, %v2667_v34, %v2669_v24  ;;  %v2680_v22 = vsel %vm2674_vm11, %v2669_v24, %v2671_v57  ;;  %v6852_v34 = vld [vmem:[#allocation2 + $0x20] sm:$0xf] }
 0x552   : > { %2694 = vst [vmem:[#allocation3 + $0x60] sm:$0xff] %v2679_v41  ;;  %2695 = vst [vmem:[#allocation3 + $0x68] sm:$0xff] %v2680_v22  ;;  %3092 = vrot.lane.b32.xlu0 %v6448_v33, %s4882_s23  ;;  %2973 = vrot.lane.b32.xlu1 %v6448_v33, %s4888_s21  ;;  %v3981_v41 = vld [vmem:[#allocation2 + $0x4] sm:$0xff] }
 0x553   : > { %7812 = vst [vmem:[#allocation15_spill] sm:$0xff] %v6852_v34 }
 0x554   : > { %v2673_v26 = vpop.permute.xlu0 %2672  ;;  %v2781_v3 = vpop.permute.xlu1 %2780 }
 0x555   : > { %v2681_v12 = vsel %vm2674_vm11, %v2671_v57, %v2673_v26  ;;  %2697 = vst.msk [vmem:[#allocation3 + $0x78] sm:$0xff] %vm442_vm4, %v2673_v26  ;;  %v2795_v46 = vsel %vm2792_vm12, %v2779_v38, %v2781_v3  ;;  %v2839_v38 = vcombine.low %v6852_v34, %v6852_v34  ;;  %vm7824_vm11 = vmmov %vm7823_vm5 }
 0x556   : > { %2696 = vst [vmem:[#allocation3 + $0x70] sm:$0xff] %v2681_v12  ;;  %2811 = vst [vmem:[#allocation3 + $0x90] sm:$0xff] %v2795_v46  ;;  %2971 = vrot.lane.b32.xlu0 %v6454_v6, %s4888_s21  ;;  %2852 = vrot.lane.b32.xlu1 %v6454_v6, %s4882_s23  ;;  %v3905_v12 = vsel %vm363_vm0, %v6607_v50, %v6618_v52  ;;  %v6894_v46 = vcombine.low %v6392_v42, %v6392_v42 }
 0x557   : > { %v3788_v50 = vsel %vm363_vm0, %v6651_v10, %v6653_v37 }
 0x558   : > { %v6858_v61 = vpop.permute.xlu0 %2782  ;;  %v6860_v28 = vpop.permute.xlu1 %3432 }
 0x559   : > { %7813 = vst [vmem:[#allocation16_spill] sm:$0xff] %v6858_v61  ;;  %v2796_v24 = vsel %vm2792_vm12, %v2781_v3, %v6858_v61  ;;  %v3991_v3 = vcombine.high %v3981_v41, %v3981_v41 }
 0x55a   : > { %2812 = vst [vmem:[#allocation3 + $0x98] sm:$0xff] %v2796_v24  ;;  %2975 = vrot.lane.b32.xlu0 %v2958_v0, %s4888_s21  ;;  %2856 = vrot.lane.b32.xlu1 %v2839_v38, %s4882_s23  ;;  %s7815_s21 = smov 28  }
 0x55c   : > { %v6870_v57 = vpop.permute.xlu0 %3430  ;;  %v6872_v6 = vpop.permute.xlu1 %3318 }
 0x55e   : > { %2854 = vrot.lane.b32.xlu0 %v6448_v33, %s4882_s23  ;;  %3999 = vrot.lane.b32.xlu1 %v6398_v23, %s4889_s22  ;;  %v6890_v33 = vcombine.low %v6359_v27, %v6359_v27 }
 0x560   : > { %v6878_v22 = vpop.permute.xlu0 %3422  ;;  %v6880_v26 = vpop.permute.xlu1 %3322  ;;  %v3922_v24 = vsel %vm381_vm1, %v6890_v33, %v3905_v12  ;;  %v3906_v12 = vsel %vm363_vm0, %v6618_v52, %v6620_v63  ;;  %v3908_v52 = vsel %vm363_vm0, %v6629_v43, %v6631_v32 }
 0x561   : > { %v3923_v34 = vsel %vm381_vm1, %v6398_v23, %v3906_v12  ;;  %v3925_v13 = vsel %vm381_vm1, %v6401_v62, %v3908_v52 }
 0x562   : > { %3997 = vrot.lane.b32.xlu0 %v3991_v3, %s4889_s22  ;;  %4003 = vrot.lane.b32.xlu1 %v6401_v62, %s4889_s22  ;;  %v3907_v3 = vsel %vm363_vm0, %v6620_v63, %v6629_v43  ;;  %v3787_v43 = vsel %vm363_vm0, %v6642_v36, %v6651_v10  ;;  %v3789_v10 = vsel %vm363_vm0, %v6653_v37, %v6662_v39 }
 0x563   : > { %v3924_v25 = vsel %vm381_vm1, %v6894_v46, %v3907_v3  ;;  %v3921_v3 = vsel %vm381_vm1, %v6363_v49, %v3904_v40  ;;  %v3805_v40 = vsel %vm381_vm1, %v6398_v23, %v3788_v50  ;;  %v3669_v50 = vsel %vm485_vm2, %v6673_v18, %v6679_v1 }
 0x564   : > { %v6896_v0 = vpop.permute.xlu0 %3320  ;;  %v6898_v38 = vpop.permute.xlu1 %3326  ;;  %v3786_v37 = vsel %vm363_vm0, %v6671_v7, %v6642_v36  ;;  %v3670_v36 = vsel %vm485_vm2, %v6679_v1, %v6681_v47  ;;  %v3668_v7 = vsel %vm485_vm2, %v6695_v29, %v6673_v18  ;;  %v3672_v1 = vsel %vm485_vm2, %v6687_v8, %v6689_v4 }
 0x565   : > { %v3552_v18 = vsel %vm363_vm0, %v6703_v2, %v6705_v5 }
 0x566   : > { %4001 = vrot.lane.b32.xlu0 %v6894_v46, %s4889_s22  ;;  %3941 = vrot.lane.b32.xlu1 %v3922_v24, %s7814_s15 }
 0x568   : > { %v6908_v27 = vpop.permute.xlu0 %3324  ;;  %v6910_v42 = vpop.permute.xlu1 %3203 }
 0x56a   : > { %3995 = vrot.lane.b32.xlu0 %v3981_v41, %s4889_s22  ;;  %3945 = vrot.lane.b32.xlu1 %v3924_v25, %s7814_s15 }
 0x56c   : > { %v6922_v24 = vpop.permute.xlu0 %3316  ;;  %v6924_v61 = vpop.permute.xlu1 %3207 }
 0x56e   : > { %3943 = vrot.lane.b32.xlu0 %v3923_v34, %s7814_s15  ;;  %3939 = vrot.lane.b32.xlu1 %v3921_v3, %s7814_s15  ;;  %v3790_v34 = vsel %vm363_vm0, %v6662_v39, %v6664_v35  ;;  %v3804_v3 = vsel %vm381_vm1, %v6890_v33, %v3787_v43  ;;  %v3806_v43 = vsel %vm381_vm1, %v6894_v46, %v3789_v10 }
 0x56f   : > { %v3807_v52 = vsel %vm381_vm1, %v6401_v62, %v3790_v34  ;;  %v3686_v34 = vsel %vm381_vm1, %v6890_v33, %v3669_v50  ;;  %v3671_v39 = vsel %vm485_vm2, %v6681_v47, %v6687_v8  ;;  %v3803_v10 = vsel %vm381_vm1, %v6363_v49, %v3786_v37 }
 0x570   : > { %v6938_v25 = vpop.permute.xlu0 %3205  ;;  %v6940_v63 = vpop.permute.xlu1 %3211  ;;  %v3688_v50 = vsel %vm381_vm1, %v6894_v46, %v3671_v39  ;;  %v3687_v37 = vsel %vm381_vm1, %v6398_v23, %v3670_v36  ;;  %v3685_v39 = vsel %vm381_vm1, %v6363_v49, %v3668_v7  ;;  %v3551_v8 = vsel %vm363_vm0, %v6697_v56, %v6703_v2 }
 0x571   : > { %v3554_v36 = vsel %vm363_vm0, %v6711_v59, %v6713_v44  ;;  %v3553_v2 = vsel %vm363_vm0, %v6705_v5, %v6711_v59  ;;  %v3550_v5 = vsel %vm363_vm0, %v6719_v21, %v6697_v56  ;;  %v3441_v59 = vsel %vm363_vm0, %v6806_v60, %v6870_v57 }
 0x572   : > { %3947 = vrot.lane.b32.xlu0 %v3925_v13, %s7814_s15  ;;  %3825 = vrot.lane.b32.xlu1 %v3805_v40, %s7815_s21  ;;  %v3440_v56 = vsel %vm363_vm0, %v6813_v14, %v6806_v60  ;;  %v3438_v21 = vsel %vm363_vm0, %v6878_v22, %v6721_v9  ;;  %v3442_v60 = vsel %vm363_vm0, %v6870_v57, %v6860_v28 }
 0x573   : > { %v3333_v57 = vsel %vm485_vm2, %v6872_v6, %v6896_v0 }
 0x574   : > { %v6954_v41 = vpop.permute.xlu0 %3209  ;;  %v6956_v12 = vpop.permute.xlu1 %3082 }
 0x576   : > { %3823 = vrot.lane.b32.xlu0 %v3804_v3, %s7815_s21  ;;  %3829 = vrot.lane.b32.xlu1 %v3807_v52, %s7815_s21 }
 0x578   : > { %v6970_v13 = vpop.permute.xlu0 %3080  ;;  %v6972_v40 = vpop.permute.xlu1 %3086 }
 0x57a   : > { %3827 = vrot.lane.b32.xlu0 %v3806_v43, %s7815_s21  ;;  %3705 = vrot.lane.b32.xlu1 %v3686_v34, %s7816_s24 }
 0x57c   : > { %v6986_v3 = vpop.permute.xlu0 %3084  ;;  %v6988_v52 = vpop.permute.xlu1 %3078 }
 0x57e   : > { %3821 = vrot.lane.b32.xlu0 %v3803_v10, %s7815_s21  ;;  %3709 = vrot.lane.b32.xlu1 %v3688_v50, %s7816_s24  ;;  %v3689_v10 = vsel %vm381_vm1, %v6401_v62, %v3672_v1  ;;  %v3569_v50 = vsel %vm381_vm1, %v6398_v23, %v3552_v18  ;;  %v3571_v1 = vsel %vm381_vm1, %v6401_v62, %v3554_v36 }
 0x57f   : > { %v3439_v18 = vsel %vm363_vm0, %v6721_v9, %v6813_v14  ;;  %v3334_v9 = vsel %vm485_vm2, %v6896_v0, %v6880_v26  ;;  %v3335_v0 = vsel %vm485_vm2, %v6880_v26, %v6908_v27  ;;  %v3332_v26 = vsel %vm485_vm2, %v6922_v24, %v6872_v6 }
 0x580   : > { %v7002_v43 = vpop.permute.xlu0 %3088  ;;  %v7004_v34 = vpop.permute.xlu1 %2963  ;;  %v3454_v36 = vsel %vm381_vm1, %v6890_v33, %v3439_v18  ;;  %v3456_v18 = vsel %vm381_vm1, %v6894_v46, %v3441_v59  ;;  %v3453_v59 = vsel %vm381_vm1, %v6363_v49, %v3438_v21  ;;  %v3220_v6 = vsel %vm363_vm0, %v6938_v25, %v6924_v61 }
 0x582   : > { %3707 = vrot.lane.b32.xlu0 %v3687_v37, %s7816_s24  ;;  %3703 = vrot.lane.b32.xlu1 %v3685_v39, %s7816_s24  ;;  %v3568_v39 = vsel %vm381_vm1, %v6890_v33, %v3551_v8  ;;  %v3570_v8 = vsel %vm381_vm1, %v6894_v46, %v3553_v2  ;;  %v3567_v2 = vsel %vm381_vm1, %v6363_v49, %v3550_v5 }
 0x583   : > { %v3455_v5 = vsel %vm381_vm1, %v6398_v23, %v3440_v56  ;;  %v3349_v49 = vsel %vm381_vm1, %v6398_v23, %v3334_v9  ;;  %v3348_v23 = vsel %vm381_vm1, %v6890_v33, %v3333_v57  ;;  %v3175_v33 = vld [vmem:[#allocation2 + $0x8] sm:$0xff] }
 0x584   : > { %v7018_v47 = vpop.permute.xlu0 %2961  ;;  %v7020_v29 = vpop.permute.xlu1 %2967 }
 0x586   : > { %3711 = vrot.lane.b32.xlu0 %v3689_v10, %s7816_s24  ;;  %3589 = vrot.lane.b32.xlu1 %v3569_v50, %s7817_s26 }
 0x588   : > { %v7034_v7 = vpop.permute.xlu0 %2965  ;;  %v7036_v37 = vpop.permute.xlu1 %2959 }
 0x58a   : > { %3587 = vrot.lane.b32.xlu0 %v3568_v39, %s7817_s26  ;;  %3593 = vrot.lane.b32.xlu1 %v3571_v1, %s7817_s26 }
 0x58c   : > { %v7050_v10 = vpop.permute.xlu0 %2969  ;;  %v7052_v50 = vpop.permute.xlu1 %2844 }
 0x58e   : > { %3591 = vrot.lane.b32.xlu0 %v3570_v8, %s7817_s26  ;;  %3471 = vrot.lane.b32.xlu1 %v3454_v36, %s4904_s10 }
 0x590   : > { %v7066_v39 = vpop.permute.xlu0 %2842  ;;  %v7068_v1 = vpop.permute.xlu1 %2848 }
 0x592   : > { %3585 = vrot.lane.b32.xlu0 %v3567_v2, %s7817_s26  ;;  %3475 = vrot.lane.b32.xlu1 %v3456_v18, %s4904_s10  ;;  %v3457_v2 = vsel %vm381_vm1, %v6401_v62, %v3442_v60  ;;  %v3336_v18 = vsel %vm485_vm2, %v6908_v27, %v6898_v38  ;;  %v3219_v60 = vsel %vm363_vm0, %v6910_v42, %v6938_v25 }
 0x593   : > { %v3221_v27 = vsel %vm363_vm0, %v6924_v61, %v6954_v41  ;;  %v3098_v61 = vsel %vm363_vm0, %v6956_v12, %v6986_v3 }
 0x594   : > { %v7082_v8 = vpop.permute.xlu0 %2846  ;;  %v7084_v36 = vpop.permute.xlu1 %2840 }
 0x596   : > { %3473 = vrot.lane.b32.xlu0 %v3455_v5, %s4904_s10  ;;  %3469 = vrot.lane.b32.xlu1 %v3453_v59, %s4904_s10  ;;  %v3174_v5 = vld [vmem:[#allocation2] sm:$0xff]  ;;  %v3351_v59 = vsel %vm381_vm1, %v6401_v62, %v3336_v18  ;;  %v3350_v62 = vsel %vm381_vm1, %v6894_v46, %v3335_v0  ;;  %v3188_v18 = vcombine.high %v3175_v33, %v3175_v33 }
 0x597   : > { %v3187_v9 = vcombine.high %v3174_v5, %v3174_v5  ;;  %v4775_v46 = vld [vmem:[#allocation2 + $0x4] sm:$0xff] }
 0x598   : > { %v7098_v14 = vpop.permute.xlu0 %2850  ;;  %v7100_v22 = vpop.permute.xlu1 %3900  ;;  %v3347_v0 = vsel %vm381_vm1, %v4775_v46, %v3332_v26  ;;  %v3222_v26 = vsel %vm363_vm0, %v6954_v41, %v6940_v63  ;;  %v3115_v41 = vsel %vm381_vm1, %v6404_v31, %v3098_v61 }
 0x599   : > { %v3236_v57 = vsel %vm381_vm1, %v3187_v9, %v3219_v60  ;;  %v3238_v60 = vsel %vm381_vm1, %v3188_v18, %v3221_v27  ;;  %v7175_v18 = vld [vmem:[#allocation2 + $0x10] sm:$0xff] }
 0x59a   : > { %3477 = vrot.lane.b32.xlu0 %v3457_v2, %s4904_s10  ;;  %3367 = vrot.lane.b32.xlu1 %v3349_v49, %s4882_s23 }
 0x59c   : > { %v7114_v56 = vpop.permute.xlu0 %3898  ;;  %v7116_v21 = vpop.permute.xlu1 %3780 }
 0x59e   : > { %3365 = vrot.lane.b32.xlu0 %v3348_v23, %s4882_s23  ;;  %3371 = vrot.lane.b32.xlu1 %v3351_v59, %s4882_s23 }
 0x5a0   : > { %v7130_v2 = vpop.permute.xlu0 %3902  ;;  %v7132_v49 = vpop.permute.xlu1 %3784 }
 0x5a2   : > { %3369 = vrot.lane.b32.xlu0 %v3350_v62, %s4882_s23  ;;  %3255 = vrot.lane.b32.xlu1 %v3236_v57, %s4905_s19  ;;  %v3235_v62 = vsel %vm381_vm1, %v3174_v5, %v6910_v42  ;;  %v3237_v57 = vsel %vm381_vm1, %v3175_v33, %v3220_v6  ;;  %v3239_v42 = vsel %vm381_vm1, %v7175_v18, %v3222_v26 }
 0x5a3   : > { %v3097_v5 = vsel %vm363_vm0, %v6970_v13, %v6956_v12  ;;  %v3100_v33 = vsel %vm363_vm0, %v6972_v40, %v7002_v43  ;;  %v3099_v12 = vsel %vm363_vm0, %v6986_v3, %v6972_v40  ;;  %v2978_v6 = vsel %vm852_vm8, %v7018_v47, %v7004_v34 }
 0x5a4   : > { %v7145_v23 = vpop.permute.xlu0 %3782  ;;  %v7147_v59 = vpop.permute.xlu1 %3664  ;;  %v3114_v31 = vsel %vm381_vm1, %v6548_v53, %v3097_v5  ;;  %v3096_v40 = vsel %vm363_vm0, %v6988_v52, %v6970_v13  ;;  %v2980_v3 = vsel %vm852_vm8, %v7034_v7, %v7020_v29  ;;  %v2979_v13 = vsel %vm852_vm8, %v7004_v34, %v7034_v7 }
 0x5a5   : > { %v2977_v52 = vsel %vm852_vm8, %v7036_v37, %v7018_v47  ;;  %v2981_v34 = vsel %vm852_vm8, %v7020_v29, %v7050_v10  ;;  %v2860_v47 = vsel %vm363_vm0, %v7052_v50, %v7082_v8  ;;  %v2859_v29 = vsel %vm363_vm0, %v7066_v39, %v7052_v50 }
 0x5a6   : > { %3363 = vrot.lane.b32.xlu0 %v3347_v0, %s4882_s23  ;;  %3259 = vrot.lane.b32.xlu1 %v3238_v60, %s4905_s19  ;;  %v3117_v60 = vsel %vm381_vm1, %v6418_v19, %v3100_v33  ;;  %v4777_v33 = vld [vmem:[#allocation2] sm:$0xff]  ;;  %v2861_v50 = vsel %vm363_vm0, %v7082_v8, %v7068_v1 }
 0x5a8   : > { %v7156_v24 = vpop.permute.xlu0 %3662  ;;  %v7158_v9 = vpop.permute.xlu1 %3544 }
 0x5aa   : > { %3253 = vrot.lane.b32.xlu1 %v3235_v62, %s4905_s19  ;;  %3257 = vrot.lane.b32.xlu0 %v3237_v57, %s4905_s19  ;;  %v4776_v62 = vld [vmem:[#allocation2 + $0x8] sm:$0xff] }
 0x5ab   : > { %v3066_v57 = vcombine.high %v4776_v62, %v4776_v62 }
 0x5ac   : > { %v7171_v25 = vpop.permute.xlu0 %3666  ;;  %v7173_v27 = vpop.permute.xlu1 %3548 }
 0x5ad   : > { %v3116_v19 = vsel %vm381_vm1, %v3066_v57, %v3099_v12 }
 0x5ae   : > { %3261 = vrot.lane.b32.xlu0 %v3239_v42, %s4905_s19  ;;  %3135 = vrot.lane.b32.xlu1 %v3115_v41, %s4906_s20  ;;  %v2995_v42 = vsel %vm381_vm1, %v6548_v53, %v2978_v6 }
 0x5b0   : > { %v7189_v46 = vpop.permute.xlu0 %3546  ;;  %v7191_v0 = vpop.permute.xlu1 %3436 }
 0x5b2   : > { %3133 = vrot.lane.b32.xlu0 %v3114_v31, %s4906_s20  ;;  %3139 = vrot.lane.b32.xlu1 %v3117_v60, %s4906_s20  ;;  %v3113_v31 = vsel %vm381_vm1, %v4777_v33, %v3096_v40  ;;  %v2997_v60 = vsel %vm381_vm1, %v3066_v57, %v2980_v3  ;;  %v7252_v40 = vld [vmem:[#allocation2 + $0x10] sm:$0xff] }
 0x5b3   : > { %v2998_v3 = vsel %vm381_vm1, %v7252_v40, %v2981_v34 }
 0x5b4   : > { %v7205_v26 = vpop.permute.xlu0 %3434  ;;  %v7207_v61 = vpop.permute.xlu1 %3330 }
 0x5b6   : > { %3137 = vrot.lane.b32.xlu0 %v3116_v19, %s4906_s20  ;;  %3014 = vrot.lane.b32.xlu1 %v2995_v42, %s4907_s18  ;;  %v2996_v19 = vsel %vm381_vm1, %v4776_v62, %v2979_v13  ;;  %v2994_v42 = vsel %vm381_vm1, %v4777_v33, %v2977_v52 }
 0x5b8   : > { %v7220_v41 = vpop.permute.xlu0 %3328  ;;  %v7222_v5 = vpop.permute.xlu1 %3215 }
 0x5ba   : > { %3131 = vrot.lane.b32.xlu0 %v3113_v31, %s4906_s20  ;;  %3018 = vrot.lane.b32.xlu1 %v2997_v60, %s4907_s18  ;;  %v2877_v31 = vsel %vm381_vm1, %v4776_v62, %v2860_v47  ;;  %v2862_v60 = vsel %vm363_vm0, %v7068_v1, %v7098_v14  ;;  %v2876_v62 = vsel %vm381_vm1, %v6548_v53, %v2859_v29 }
 0x5bb   : > { %v2878_v53 = vsel %vm381_vm1, %v3066_v57, %v2861_v50  ;;  %v7293_v1 = vcombine.high %v6769_v54, %v6769_v54  ;;  %v3909_v57 = vsel %vm363_vm0, %v6631_v32, %v7114_v56  ;;  %v3985_v32 = vld [vmem:[#allocation2 + $0x24] sm:$0xf] }
 0x5bc   : > { %v7234_v12 = vpop.permute.xlu0 %3213  ;;  %v7236_v6 = vpop.permute.xlu1 %3090 }
 0x5be   : > { %3016 = vrot.lane.b32.xlu0 %v2996_v19, %s4907_s18  ;;  %3012 = vrot.lane.b32.xlu1 %v2994_v42, %s4907_s18  ;;  %v2879_v19 = vsel %vm381_vm1, %v7252_v40, %v2862_v60  ;;  %v4779_v42 = vld [vmem:[#allocation2 + $0x14] sm:$0xff] }
 0x5bf   : > { %v7278_v34 = vcombine.high %v4779_v42, %v4779_v42 }
 0x5c0   : > { %v7248_v7 = vpop.permute.xlu0 %3217  ;;  %v7250_v37 = vpop.permute.xlu1 %3094 }
 0x5c2   : > { %3020 = vrot.lane.b32.xlu0 %v2998_v3, %s4907_s18  ;;  %2897 = vrot.lane.b32.xlu1 %v2877_v31, %s4908_s25  ;;  %v2858_v31 = vsel %vm363_vm0, %v7084_v36, %v7066_v39 }
 0x5c3   : > { %v2875_v60 = vsel %vm381_vm1, %v4777_v33, %v2858_v31  ;;  %v3910_v31 = vsel %vm363_vm0, %v7114_v56, %v7100_v22 }
 0x5c4   : > { %v7265_v13 = vpop.permute.xlu0 %3092  ;;  %v7267_v52 = vpop.permute.xlu1 %2973  ;;  %v3927_v30 = vsel %vm381_vm1, %v6769_v54, %v3910_v31 }
 0x5c6   : > { %2895 = vrot.lane.b32.xlu0 %v2876_v62, %s4908_s25  ;;  %2901 = vrot.lane.b32.xlu1 %v2879_v19, %s4908_s25  ;;  %v3926_v62 = vsel %vm381_vm1, %v7278_v34, %v3909_v57  ;;  %v3911_v19 = vsel %vm363_vm0, %v7100_v22, %v7130_v2 }
 0x5c8   : > { %v7280_v47 = vpop.permute.xlu0 %2971  ;;  %v7282_v3 = vpop.permute.xlu1 %2852 }
 0x5ca   : > { %4005 = vrot.lane.b32.xlu1 %v7278_v34, %s4889_s22  ;;  %2899 = vrot.lane.b32.xlu0 %v2878_v53, %s4908_s25  ;;  %v3928_v53 = vsel %vm381_vm1, %v7293_v1, %v3911_v19 }
 0x5cc   : > { %v7295_v8 = vpop.permute.xlu0 %2975  ;;  %v7297_v29 = vpop.permute.xlu1 %2856 }
 0x5ce   : > { %4009 = vrot.lane.b32.xlu1 %v7293_v1, %s4889_s22  ;;  %2893 = vrot.lane.b32.xlu0 %v2875_v60, %s4908_s25  ;;  %v3791_v60 = vsel %vm363_vm0, %v6664_v35, %v7116_v21  ;;  %v3793_v35 = vsel %vm363_vm0, %v7145_v23, %v7132_v49 }
 0x5cf   : > { %v3808_v22 = vsel %vm381_vm1, %v7278_v34, %v3791_v60 }
 0x5d0   : > { %v7306_v39 = vpop.permute.xlu0 %2854  ;;  %v4000_v36 = vpop.permute.xlu1 %3999 }
 0x5d2   : > { %3949 = vrot.lane.b32.xlu1 %v3926_v62, %s7814_s15  ;;  %4007 = vrot.lane.b32.xlu0 %v6769_v54, %s4889_s22 }
 0x5d4   : > { %v3998_v33 = vpop.permute.xlu0 %3997  ;;  %v7316_v50 = vpop.permute.xlu1 %4003 }
 0x5d5   : > { %v4014_v42 = vsel %vm7818_vm13, %v3998_v33, %v4000_v36  ;;  %vm7825_vm13 = vmmov %vm7823_vm5 }
 0x5d6   : > { %4030 = vst [vmem:[#allocation3 + $0x348] sm:$0xf] %v4014_v42  ;;  %4011 = vrot.lane.b32.xlu0 %v3985_v32, %s4889_s22  ;;  %3953 = vrot.lane.b32.xlu1 %v3928_v53, %s7814_s15  ;;  %v3792_v32 = vsel %vm363_vm0, %v7116_v21, %v7145_v23  ;;  %v3929_v53 = vsel %vm381_vm1, %v6775_v51, %v7130_v2  ;;  %s4909_s22 = smov [#allocation7]  }
 0x5d7   : > { %v3809_v51 = vsel %vm381_vm1, %v6769_v54, %v3792_v32  ;;  %v3811_v32 = vsel %vm381_vm1, %v6777_v17, %v7132_v49 }
 0x5d8   : > { %v4002_v57 = vpop.permute.xlu0 %4001  ;;  %v3942_v62 = vpop.permute.xlu1 %3941 }
 0x5d9   : > { %v4015_v16 = vsel %vm7819_vm14, %v4000_v36, %v4002_v57  ;;  %v4016_v19 = vsel %vm7820_vm15, %v4002_v57, %v7316_v50  ;;  %vm7826_vm14 = vcmask 228352  }
 0x5da   : > { %4031 = vst [vmem:[#allocation3 + $0x350] sm:$0xf] %v4015_v16  ;;  %4032 = vst [vmem:[#allocation3 + $0x358] sm:$0xf] %v4016_v19  ;;  %3951 = vrot.lane.b32.xlu0 %v3927_v30, %s7814_s15  ;;  %3831 = vrot.lane.b32.xlu1 %v3808_v22, %s7815_s21  ;;  %v3810_v16 = vsel %vm381_vm1, %v7293_v1, %v3793_v35  ;;  %v3673_v30 = vsel %vm485_vm2, %v6689_v4, %v7156_v24 }
 0x5db   : > { %v3690_v4 = vsel %vm381_vm1, %v7278_v34, %v3673_v30  ;;  %v3675_v22 = vsel %vm485_vm2, %v7147_v59, %v7171_v25  ;;  %vm7827_vm15 = vmmov %vm7826_vm14 }
 0x5dc   : > { %v3996_v56 = vpop.permute.xlu0 %3995  ;;  %v3946_v36 = vpop.permute.xlu1 %3945 }
 0x5dd   : > { %v4013_v42 = vsel %vm7821_vm3, %v3996_v56, %v3998_v33  ;;  %v4143_v31 = vld [vmem:[#allocation3 + $0x348] sm:$0xf]  ;;  %vm7828_vm3 = vmmov %vm7826_vm14 }
 0x5de   : > { %4029 = vst [vmem:[#allocation3 + $0x340] sm:$0xf] %v4013_v42  ;;  %3955 = vrot.lane.b32.xlu0 %v3929_v53, %s7814_s15  ;;  %3835 = vrot.lane.b32.xlu1 %v3810_v16, %s7815_s21  ;;  %v3692_v42 = vsel %vm381_vm1, %v7293_v1, %v3675_v22  ;;  %v3674_v16 = vsel %vm485_vm2, %v7156_v24, %v7147_v59 }
 0x5df   : > { %4620 = vmatprep.subr.msk.mxu0 %vm381_vm1, %v4143_v31  ;;  %v3555_v31 = vsel %vm363_vm0, %v6713_v44, %v7158_v9  ;;  %v3691_v59 = vsel %vm381_vm1, %v6769_v54, %v3674_v16  ;;  %v3557_v24 = vsel %vm363_vm0, %v7189_v46, %v7173_v27  ;;  %v3575_v22 = vsel %vm381_vm1, %v6795_v15, %v7173_v27 }
 0x5e0   : > { %v3944_v21 = vpop.permute.xlu0 %3943  ;;  %v3940_v23 = vpop.permute.xlu1 %3939  ;;  %v3572_v44 = vsel %vm381_vm1, %v7278_v34, %v3555_v31  ;;  %v3338_v16 = vsel %vm485_vm2, %v7220_v41, %v7207_v61 }
 0x5e1   : > { %v3958_v2 = vsel %vm7822_vm6, %v3942_v62, %v3944_v21  ;;  %v3959_v33 = vsel %vm7823_vm5, %v3944_v21, %v3946_v36  ;;  %v3957_v60 = vsel %vm7824_vm11, %v3940_v23, %v3942_v62  ;;  %v4145_v57 = vld [vmem:[#allocation3 + $0x358] sm:$0xf]  ;;  %v4144_v19 = vld [vmem:[#allocation3 + $0x350] sm:$0xf]  ;;  %vm7829_vm6 = vmmov %vm7828_vm3  ;;  %vm7830_vm5 = vcmask 302080  }
 0x5e2   : > { %3833 = vrot.lane.b32.xlu0 %v3809_v51, %s7815_s21  ;;  %3713 = vrot.lane.b32.xlu1 %v3690_v4, %s7816_s24  ;;  %v3443_v4 = vsel %vm363_vm0, %v6860_v28, %v7205_v26  ;;  %vm7831_vm11 = vmmov %vm7830_vm5 }
 0x5e3   : > { %4623 = vmatprep.subr.msk.mxu1 %vm381_vm1, %v4145_v57 }
 0x5e4   : > { %4624 = vmatpush1.msk.msra.mxu1 %vm381_vm1, %v4144_v19  ;;  %v7370_v35 = vpop.permute.xlu0 %3947  ;;  %v3826_v62 = vpop.permute.xlu1 %3825 }
 0x5e5   : > { %v3960_v56 = vsel %vm7825_vm13, %v3946_v36, %v7370_v35  ;;  %v4142_v53 = vld [vmem:[#allocation3 + $0x340] sm:$0xf]  ;;  %vm7832_vm13 = vmmov %vm7830_vm5 }
 0x5e6   : > { %3837 = vrot.lane.b32.xlu0 %v3811_v32, %s7815_s21  ;;  %3717 = vrot.lane.b32.xlu1 %v3692_v42, %s7816_s24  ;;  %v3460_v42 = vsel %vm381_vm1, %v7293_v1, %v7191_v0  ;;  %s4607_s21 = sshll.u32 %s5041_s14, 5 }
 0x5e7   : > { %4621 = vmatpush1.msk.msra.mxu0 %vm381_vm1, %v4142_v53  ;;  %4260 = vmatprep.subr.mxu1 %v3960_v56  ;;  %v3444_v53 = vsel %vm363_vm0, %v7205_v26, %v7191_v0  ;;  %v3353_v0 = vsel %vm381_vm1, %v6769_v54, %v3338_v16  ;;  %v3337_v26 = vsel %vm485_vm2, %v6898_v38, %v7220_v41 }
 0x5e8   : > { %v3824_v17 = vpop.permute.xlu0 %3823  ;;  %v7388_v49 = vpop.permute.xlu1 %3829  ;;  %4189 = vmatprep.subr.mxu0 %v3958_v2  ;;  %4261 = vmatpush1.msra.mxu1 %v3959_v33  ;;  %v3693_v2 = vsel %vm381_vm1, %v6793_v55, %v7171_v25  ;;  %v3574_v33 = vsel %vm381_vm1, %v7293_v1, %v3557_v24  ;;  %v3352_v38 = vsel %vm381_vm1, %v7278_v34, %v3337_v26 }
 0x5e9   : > { %v3840_v36 = vsel %vm7826_vm14, %v3824_v17, %v3826_v62  ;;  %4190 = vmatpush1.msra.mxu0 %v3957_v60  ;;  %v3556_v60 = vsel %vm363_vm0, %v7158_v9, %v7189_v46  ;;  %v3458_v9 = vsel %vm381_vm1, %v7278_v34, %v3443_v4  ;;  %vm7833_vm14 = vmmov %vm7830_vm5  ;;  %v3225_v41 = vsel %vm363_vm0, %v7222_v5, %v7248_v7 }
 0x5ea   : > { %3715 = vrot.lane.b32.xlu0 %v3691_v59, %s7816_s24  ;;  %3595 = vrot.lane.b32.xlu1 %v3572_v44, %s7817_s26  ;;  %v3573_v25 = vsel %vm381_vm1, %v6769_v54, %v3556_v60  ;;  %v3189_v59 = vcombine.high %v7175_v18, %v7175_v18  ;;  %v3354_v34 = vsel %vm381_vm1, %v7293_v1, %v7207_v61 }
 0x5eb   : > { %4191 = vmatprep.subr.mxu0 %v3840_v36  ;;  %v3223_v36 = vsel %vm363_vm0, %v6940_v63, %v7234_v12  ;;  %v3224_v60 = vsel %vm363_vm0, %v7234_v12, %v7222_v5  ;;  %v3101_v4 = vsel %vm363_vm0, %v7002_v43, %v7236_v6  ;;  %v3103_v43 = vsel %vm363_vm0, %v7265_v13, %v7250_v37 }
 0x5ec   : > { %v3828_v30 = vpop.permute.xlu0 %3827  ;;  %v3706_v21 = vpop.permute.xlu1 %3705  ;;  %v3240_v63 = vsel %vm381_vm1, %v3189_v59, %v3223_v36  ;;  %v3121_v26 = vsel %vm381_vm1, %v6827_v48, %v7250_v37  ;;  %v2983_v59 = vsel %vm852_vm8, %v7280_v47, %v7267_v52 }
 0x5ed   : > { %v3841_v23 = vsel %vm7827_vm15, %v3826_v62, %v3828_v30  ;;  %v3842_v51 = vsel %vm7828_vm3, %v3828_v30, %v7388_v49  ;;  %vm7834_vm15 = vcmask 318464  }
 0x5ee   : > { %3719 = vrot.lane.b32.xlu0 %v3693_v2, %s7816_s24  ;;  %3599 = vrot.lane.b32.xlu1 %v3574_v33, %s7817_s26  ;;  %vm7835_vm2 = vmmov %vm7834_vm15  ;;  %s7722_s24 = scalar_lea.vmem [#allocation7], %s4607_s21 }
 0x5ef   : > { %4262 = vmatprep.subr.mxu1 %v3842_v51  ;;  %vm7836_vm3 = vmmov %vm7835_vm2 }
 0x5f0   : > { %v3822_v57 = vpop.permute.xlu0 %3821  ;;  %v3710_v19 = vpop.permute.xlu1 %3709  ;;  %4263 = vmatpush1.msra.mxu1 %v3841_v23 }
 0x5f1   : > { %v3839_v55 = vsel %vm7829_vm6, %v3822_v57, %v3824_v17  ;;  %v3459_v17 = vsel %vm381_vm1, %v6769_v54, %v3444_v53  ;;  %v3177_v54 = vld [vmem:[#allocation2 + $0x18] sm:$0xff]  ;;  %v7486_v57 = vcombine.high %v7252_v40, %v7252_v40  ;;  %vm7837_vm6 = vmmov %vm7835_vm2  ;;  %v3178_v40 = vld [vmem:[#allocation2 + $0x20] sm:$0xf]  ;;  %v2982_v53 = vsel %vm852_vm8, %v7050_v10, %v7280_v47 }
 0x5f2   : > { %3597 = vrot.lane.b32.xlu0 %v3573_v25, %s7817_s26  ;;  %3479 = vrot.lane.b32.xlu1 %v3458_v9, %s4904_s10  ;;  %v3190_v18 = vcombine.high %v3177_v54, %v3177_v54  ;;  %v3241_v5 = vsel %vm381_vm1, %v3177_v54, %v3224_v60  ;;  %v2984_v10 = vsel %vm852_vm8, %v7267_v52, %v7295_v8  ;;  %vm3271_vm8 = vcmask 7168  }
 0x5f3   : > { %4192 = vmatpush1.msra.mxu0 %v3839_v55  ;;  %v3118_v12 = vsel %vm381_vm1, %v7486_v57, %v3101_v4  ;;  %v7497_v55 = vld [vmem:[#allocation2 + $0x18] sm:$0xff]  ;;  %v3001_v36 = vsel %vm381_vm1, %v6590_v11, %v2984_v10 }
 0x5f4   : > { %v3708_v28 = vpop.permute.xlu0 %3707  ;;  %v3704_v46 = vpop.permute.xlu1 %3703  ;;  %v3242_v33 = vsel %vm381_vm1, %v3190_v18, %v3225_v41  ;;  %v7501_v25 = vcombine.high %v7497_v55, %v7497_v55  ;;  %v3000_v37 = vsel %vm381_vm1, %v7497_v55, %v2983_v59  ;;  %v3002_v18 = vsel %vm381_vm1, %v6850_v20, %v7295_v8 }
 0x5f5   : > { %v3722_v62 = vsel %vm7830_vm5, %v3706_v21, %v3708_v28  ;;  %v3723_v56 = vsel %vm7831_vm11, %v3708_v28, %v3710_v19  ;;  %v3721_v32 = vsel %vm7832_vm13, %v3704_v46, %v3706_v21  ;;  %vm3485_vm5 = vcmask 965632  }
 0x5f6   : > { %3601 = vrot.lane.b32.xlu0 %v3575_v22, %s7817_s26  ;;  %3483 = vrot.lane.b32.xlu1 %v3460_v42, %s4904_s10  ;;  %v3243_v46 = vsel %vm381_vm1, %v3178_v40, %v7248_v7  ;;  %v3102_v42 = vsel %vm363_vm0, %v7236_v6, %v7265_v13  ;;  %v2999_v6 = vsel %vm381_vm1, %v7486_v57, %v2982_v53  ;;  %vm3149_vm11 = vcmask 80896   ;;  %s4637_s26 = sshll.u32 %s4976_s9, 9  ;;  %s4819_s9 = sshll.u32 %s4909_s22, 4  ;;  %s4820_s9 = int_to_ptr.vmem [resolvable:$false] %s4819_s9 }
 0x5f7   : > { %4193 = vmatprep.subr.mxu0 %v3722_v62  ;;  %vm3030_vm13 = vcmask 728064   ;;  %s4821_s29 = scalar_lea.vmem %s4820_s9, 1024 }
 0x5f8   : > { %v7440_v15 = vpop.permute.xlu0 %3711  ;;  %v3590_v27 = vpop.permute.xlu1 %3589  ;;  %4194 = vmatpush1.msra.mxu0 %v3721_v32  ;;  %v3120_v32 = vsel %vm381_vm1, %v7501_v25, %v3103_v43  ;;  %v4150_v43 = vld [vmem:[%s7771_s5] sm:$0xf] }
 0x5f9   : > { %v3724_v31 = vsel %vm7833_vm14, %v3710_v19, %v7440_v15  ;;  %vm2911_vm14 = vcmask 744448  }
 0x5fa   : > { %3481 = vrot.lane.b32.xlu0 %v3459_v17, %s4904_s10  ;;  %3375 = vrot.lane.b32.xlu1 %v3353_v0, %s4882_s23  ;;  %s4532_s10 = sshll.u32 %s7722_s24, 4  ;;  %s4533_s10 = int_to_ptr.vmem [resolvable:$true] %s4532_s10 }
 0x5fb   : > { %4264 = vmatprep.subr.mxu1 %v3724_v31  ;;  %v3119_v31 = vsel %vm381_vm1, %v7497_v55, %v3102_v42  ;;  %p4822_p1 = scmp.lt.s32.totalorder %s4533_s10, %s4820_s9 }
 0x5fc   : > { %v3588_v44 = vpop.permute.xlu0 %3587  ;;  %v7458_v24 = vpop.permute.xlu1 %3593  ;;  %4265 = vmatpush1.msra.mxu1 %v3723_v56 }
 0x5fd   : > { %v3604_v30 = vsel %vm7834_vm15, %v3588_v44, %v3590_v27  ;;  %vm7841_vm15 = vcmask 138240  }
 0x5fe   : > { %3373 = vrot.lane.b32.xlu0 %v3352_v38, %s4882_s23  ;;  %3263 = vrot.lane.b32.xlu1 %v3240_v63, %s4905_s19  ;;  %v2744_v63 = vsel %vm363_vm0, %v6592_v58, %v6581_v45 }
 0x5ff   : > { %4195 = vmatprep.subr.mxu0 %v3604_v30 }
 0x600   : > { %v3592_v21 = vpop.permute.xlu0 %3591  ;;  %v3472_v23 = vpop.permute.xlu1 %3471 }
 0x601   : > { %v3605_v51 = vsel %vm7835_vm2, %v3590_v27, %v3592_v21  ;;  %v3606_v2 = vsel %vm7836_vm3, %v3592_v21, %v7458_v24  ;;  %vm7842_vm2 = vmmov %vm7841_vm15 }
 0x602   : > { %3377 = vrot.lane.b32.xlu0 %v3354_v34, %s4882_s23  ;;  %3267 = vrot.lane.b32.xlu1 %v3242_v33, %s4905_s19  ;;  %v7839_v33 = vld [vmem:[#allocation14_spill] sm:$0xff]  ;;  %vm7843_vm3 = vmmov %vm7842_vm2  ;;  %s4815_s23 = scalar_lea.vmem %s4533_s10, 512 }
 0x603   : > { %4266 = vmatprep.subr.mxu1 %v3606_v2  ;;  %v2761_v2 = vsel %vm381_vm1, %v7486_v57, %v2744_v63  ;;  %p4816_p11 = scmp.ne.s32.totalorder %s4533_s10, %s4815_s23  ;;  %p4823_p3 = scmp.lt.s32.totalorder %s4821_s29, %s4815_s23 }
 0x604   : > { %v3586_v61 = vpop.permute.xlu0 %3585  ;;  %v3476_v1 = vpop.permute.xlu1 %3475  ;;  %4267 = vmatpush1.msra.mxu1 %v3605_v51 }
 0x605   : > { %v3603_v19 = vsel %vm7837_vm6, %v3586_v61, %v3588_v44  ;;  %v2863_v44 = vsel %vm363_vm0, %v7098_v14, %v7282_v3  ;;  %v2865_v14 = vsel %vm363_vm0, %v7306_v39, %v7297_v29  ;;  %vm7844_vm6 = vcmask 154624   ;;  %p4817_p13 = pnand %p4816_p11, %p7864_p12  ;;  %p4824_p8 = por %p4823_p3, %p4822_p1 }
 0x606   : > { %3265 = vrot.lane.b32.xlu0 %v3241_v5, %s4905_s19  ;;  %3141 = vrot.lane.b32.xlu1 %v3118_v12, %s4906_s20  ;;  %v2880_v52 = vsel %vm381_vm1, %v7486_v57, %v2863_v44  ;;  %v2882_v21 = vsel %vm381_vm1, %v7501_v25, %v2865_v14  ;;  %v2745_v12 = vsel %vm363_vm0, %v6581_v45, %v7839_v33 }
 0x607   : > { %4196 = vmatpush1.msra.mxu0 %v3603_v19  ;;  %p4818_p0 = pneg %p4817_p13 }
 0x608   : > { %v3474_v9 = vpop.permute.xlu0 %3473  ;;  %v3470_v28 = vpop.permute.xlu1 %3469 }
 0x609   : > { %v3487_v22 = vsel %vm3485_vm5, %v3472_v23, %v3474_v9  ;;  %v3488_v62 = vsel %vm3485_vm5, %v3474_v9, %v3476_v1  ;;  %v3486_v56 = vsel %vm3485_vm5, %v3470_v28, %v3472_v23  ;;  %v2864_v23 = vsel %vm363_vm0, %v7282_v3, %v7306_v39  ;;  %v7838_v39 = vld [vmem:[#allocation13_spill] sm:$0xff]  ;;  %p4825_p10 = pnand %p4824_p8, %p4818_p0 }
 0x60a   : > { %3269 = vrot.lane.b32.xlu0 %v3243_v46, %s4905_s19  ;;  %3145 = vrot.lane.b32.xlu1 %v3120_v32, %s4906_s20  ;;  %v2881_v3 = vsel %vm381_vm1, %v7497_v55, %v2864_v23  ;;  %v2746_v60 = vsel %vm363_vm0, %v7839_v33, %v7838_v39  ;;  %v4041_v23 = vld [vmem:[#allocation3 + $0x18] sm:$0xff]  ;;  %v4046_v33 = vld [vmem:[#allocation3 + $0x40] sm:$0xff] }
 0x60b   : > { %4197 = vmatprep.subr.mxu0 %v3487_v22  ;;  %v2763_v5 = vsel %vm381_vm1, %v7501_v25, %v2746_v60  ;;  %v2762_v25 = vsel %vm381_vm1, %v7497_v55, %v2745_v12  ;;  %v4475_v55 = vld [vmem:[%s7772_s6] sm:$0xf]  ;;  %v4039_v60 = vld [vmem:[#allocation3 + $0x8] sm:$0xff] }
 0x60c   : > { %v7518_v7 = vpop.permute.xlu0 %3477  ;;  %v3368_v16 = vpop.permute.xlu1 %3367  ;;  %4198 = vmatpush1.msra.mxu0 %v3486_v56 }
 0x60d   : > { %v3489_v27 = vsel %vm3485_vm5, %v3476_v1, %v7518_v7  ;;  %v7840_v1 = vld [vmem:[#allocation15_spill] sm:$0xff] }
 0x60e   : > { %3143 = vrot.lane.b32.xlu0 %v3119_v31, %s4906_s20  ;;  %3022 = vrot.lane.b32.xlu1 %v2999_v6, %s4907_s18  ;;  %v2883_v19 = vsel %vm381_vm1, %v7840_v1, %v7297_v29 }
 0x60f   : > { %4268 = vmatprep.subr.mxu1 %v3489_v27 }
 0x610   : > { %v3366_v13 = vpop.permute.xlu0 %3365  ;;  %v7531_v17 = vpop.permute.xlu1 %3371  ;;  %4269 = vmatpush1.msra.mxu1 %v3488_v62  ;;  %v4781_v62 = vld [vmem:[#allocation2 + $0x20] sm:$0xf] }
 0x611   : > { %v3380_v0 = vsel %vm363_vm0, %v3366_v13, %v3368_v16  ;;  %v2764_v56 = vsel %vm381_vm1, %v4781_v62, %v7838_v39 }
 0x612   : > { %3147 = vrot.lane.b32.xlu0 %v3121_v26, %s4906_s20  ;;  %3026 = vrot.lane.b32.xlu1 %v3001_v36, %s4907_s18 }
 0x613   : > { %4199 = vmatprep.subr.mxu0 %v3380_v0 }
 0x614   : > { %v3370_v54 = vpop.permute.xlu0 %3369  ;;  %v3256_v30 = vpop.permute.xlu1 %3255 }
 0x615   : > { %v3381_v48 = vsel %vm363_vm0, %v3368_v16, %v3370_v54  ;;  %v3382_v11 = vsel %vm363_vm0, %v3370_v54, %v7531_v17 }
 0x616   : > { %3024 = vrot.lane.b32.xlu0 %v3000_v37, %s4907_s18  ;;  %2903 = vrot.lane.b32.xlu1 %v2880_v52, %s4908_s25  ;;  %v4057_v52 = vld [vmem:[#allocation3 + $0x98] sm:$0xff] }
 0x617   : > { %4270 = vmatprep.subr.mxu1 %v3382_v11 }
 0x618   : > { %v3364_v47 = vpop.permute.xlu0 %3363  ;;  %v3260_v38 = vpop.permute.xlu1 %3259  ;;  %4271 = vmatpush1.msra.mxu1 %v3381_v48 }
 0x619   : > { %v3379_v41 = vsel %vm363_vm0, %v3364_v47, %v3366_v13 }
 0x61a   : > { %3028 = vrot.lane.b32.xlu0 %v3002_v18, %s4907_s18  ;;  %2907 = vrot.lane.b32.xlu1 %v2882_v21, %s4908_s25  ;;  %v4055_v18 = vld [vmem:[#allocation3 + $0x88] sm:$0xff]  ;;  %v4048_v21 = vld [vmem:[#allocation3 + $0x50] sm:$0xff]  ;;  %s4530_s18 = scalar_lea.hbm %s7774_s8, %s4637_s26 }
 0x61b   : > { %4200 = vmatpush1.msra.mxu0 %v3379_v41  ;;  %v4049_v41 = vld [vmem:[#allocation3 + $0x58] sm:$0xff] }
 0x61c   : > { %v3258_v58 = vpop.permute.xlu0 %3257  ;;  %v3254_v51 = vpop.permute.xlu1 %3253 }
 0x61d   : > { %v3273_v20 = vsel %vm3271_vm8, %v3256_v30, %v3258_v58  ;;  %v3274_v8 = vsel %vm3271_vm8, %v3258_v58, %v3260_v38  ;;  %v3272_v34 = vsel %vm3271_vm8, %v3254_v51, %v3256_v30  ;;  %v7637_v58 = vld [vmem:[%s7770_s4] sm:$0xf] }
 0x61e   : > { %2905 = vrot.lane.b32.xlu0 %v2881_v3, %s4908_s25  ;;  %2784 = vrot.lane.b32.xlu1 %v2761_v2, %s4903_s13 }
 0x61f   : > { %4201 = vmatprep.subr.mxu0 %v3273_v20  ;;  %v4047_v20 = vld [vmem:[#allocation3 + $0x48] sm:$0xff] }
 0x620   : > { %v7585_v4 = vpop.permute.xlu0 %3261  ;;  %v3136_v57 = vpop.permute.xlu1 %3135  ;;  %4202 = vmatpush1.msra.mxu0 %v3272_v34 }
 0x621   : > { %v3275_v61 = vsel %vm3271_vm8, %v3260_v38, %v7585_v4  ;;  %v4056_v38 = vld [vmem:[#allocation3 + $0x90] sm:$0xff] }
 0x622   : > { %2909 = vrot.lane.b32.xlu0 %v2883_v19, %s4908_s25  ;;  %2788 = vrot.lane.b32.xlu1 %v2763_v5, %s4903_s13  ;;  %s4518_s25 = scalar_lea.sflag [#allocation6], %s5041_s14 }
 0x623   : > { %4272 = vmatprep.subr.mxu1 %v3275_v61  ;;  %v7845_v61 = vmov 0.0  }
 0x624   : > { %v3134_v40 = vpop.permute.xlu0 %3133  ;;  %v7602_v9 = vpop.permute.xlu1 %3139  ;;  %4273 = vmatpush1.msra.mxu1 %v3274_v8  ;;  %v4040_v8 = vld [vmem:[#allocation3 + $0x10] sm:$0xff] }
 0x625   : > { %v3151_v29 = vsel %vm3149_vm11, %v3134_v40, %v3136_v57 }
 0x626   : > { %2786 = vrot.lane.b32.xlu0 %v2762_v25, %s4903_s13  ;;  %4153 = vperm.xlu1 %4714, %v4150_v43  }
 0x627   : > { %4203 = vmatprep.subr.mxu0 %v3151_v29 }
 0x628   : > { %v3138_v45 = vpop.permute.xlu0 %3137  ;;  %v3015_v28 = vpop.permute.xlu1 %3014 }
 0x629   : > { %v3152_v46 = vsel %vm3149_vm11, %v3136_v57, %v3138_v45  ;;  %v3153_v22 = vsel %vm3149_vm11, %v3138_v45, %v7602_v9  ;;  %v4038_v57 = vld [vmem:[#allocation3] sm:$0xff] }
 0x62a   : > { %2790 = vrot.lane.b32.xlu0 %v2764_v56, %s4903_s13  ;;  %4274 = vmatprep.subr.mxu1 %v3153_v22 }
 0x62b   : > { %4275 = vmatpush1.msra.mxu1 %v3152_v46 }
 0x62c   : > { %v3132_v32 = vpop.permute.xlu0 %3131  ;;  %v3019_v42 = vpop.permute.xlu1 %3018 }
 0x62d   : > { %v3150_v53 = vsel %vm3149_vm11, %v3132_v32, %v3134_v40 }
 0x62e   : > { %4478 = vperm.xlu0 %4715, %v4475_v55   ;;  %4204 = vmatpush1.msra.mxu0 %v3150_v53 }
 0x630   : > { %v3017_v16 = vpop.permute.xlu0 %3016  ;;  %v3013_v27 = vpop.permute.xlu1 %3012 }
 0x631   : > { %v3032_v31 = vsel %vm3030_vm13, %v3015_v28, %v3017_v16  ;;  %v3033_v6 = vsel %vm3030_vm13, %v3017_v16, %v3019_v42  ;;  %v3031_v10 = vsel %vm3030_vm13, %v3013_v27, %v3015_v28 }
 0x632   : > { %3048 = vst [vmem:[#allocation3 + $0x108] sm:$0xff] %v3032_v31  ;;  %3049 = vst [vmem:[#allocation3 + $0x110] sm:$0xff] %v3033_v6  ;;  %4205 = vmatprep.subr.mxu0 %v3032_v31 }
 0x633   : > { %3047 = vst [vmem:[#allocation3 + $0x100] sm:$0xff] %v3031_v10  ;;  %4206 = vmatpush1.msra.mxu0 %v3031_v10 }
 0x634   : > { %v7621_v13 = vpop.permute.xlu0 %3020  ;;  %v2898_v0 = vpop.permute.xlu1 %2897 }
 0x635   : > { %v3034_v26 = vsel %vm3030_vm13, %v3019_v42, %v7621_v13 }
 0x636   : > { %3050 = vst [vmem:[#allocation3 + $0x118] sm:$0xff] %v3034_v26  ;;  %4276 = vmatprep.subr.mxu1 %v3034_v26 }
 0x637   : > { %4277 = vmatpush1.msra.mxu1 %v3033_v6 }
 0x638   : > { %v2896_v36 = vpop.permute.xlu0 %2895  ;;  %v7625_v59 = vpop.permute.xlu1 %2901 }
 0x639   : > { %v2913_v44 = vsel %vm2911_vm14, %v2896_v36, %v2898_v0 }
 0x63a   : > { %2929 = vst [vmem:[#allocation3 + $0xc8] sm:$0xff] %v2913_v44  ;;  %4207 = vmatprep.subr.mxu0 %v2913_v44 }
 0x63c   : > { %v2900_v54 = vpop.permute.xlu0 %2899  ;;  %v4006_v30 = vpop.permute.xlu1 %4005 }
 0x63d   : > { %v2914_v48 = vsel %vm2911_vm14, %v2898_v0, %v2900_v54  ;;  %v2915_v11 = vsel %vm2911_vm14, %v2900_v54, %v7625_v59  ;;  %v4017_v37 = vsel %vm7841_vm15, %v7316_v50, %v4006_v30  ;;  %v4054_v50 = vld [vmem:[#allocation3 + $0x80] sm:$0xff]  ;;  %vm7846_vm15 = vmmov %vm7842_vm2 }
 0x63e   : > { %2930 = vst [vmem:[#allocation3 + $0xd0] sm:$0xff] %v2914_v48  ;;  %2931 = vst [vmem:[#allocation3 + $0xd8] sm:$0xff] %v2915_v11  ;;  %4278 = vmatprep.subr.mxu1 %v2915_v11 }
 0x63f   : > { %4033 = vst [vmem:[#allocation3 + $0x360] sm:$0xf] %v4017_v37  ;;  %4279 = vmatpush1.msra.mxu1 %v2914_v48 }
 0x640   : > { %v2894_v14 = vpop.permute.xlu0 %2893  ;;  %v4010_v47 = vpop.permute.xlu1 %4009  ;;  %4280 = vmatprep.subr.mxu1 %v4057_v52 }
 0x641   : > { %v2912_v63 = vsel %vm2911_vm14, %v2894_v14, %v2896_v36  ;;  %4281 = vmatpush1.msra.mxu1 %v4056_v38 }
 0x642   : > { %2928 = vst [vmem:[#allocation3 + $0xc0] sm:$0xff] %v2912_v63  ;;  %4208 = vmatpush1.msra.mxu0 %v2912_v63  ;;  %4282 = vmatprep.subr.mxu1 %v4049_v41 }
 0x643   : > { %4209 = vmatprep.subr.mxu0 %v4055_v18  ;;  %4283 = vmatpush1.msra.mxu1 %v4048_v21 }
 0x644   : > { %v4008_v51 = vpop.permute.xlu0 %4007  ;;  %v3950_v2 = vpop.permute.xlu1 %3949  ;;  %4210 = vmatpush1.msra.mxu0 %v4054_v50  ;;  %4284 = vmatprep.subr.mxu1 %v4041_v23 }
 0x645   : > { %v4018_v34 = vsel %vm7842_vm2, %v4006_v30, %v4008_v51  ;;  %v4019_v3 = vsel %vm7843_vm3, %v4008_v51, %v4010_v47  ;;  %v3961_v39 = vsel %vm7844_vm6, %v7370_v35, %v3950_v2  ;;  %4211 = vmatprep.subr.mxu0 %v4047_v20  ;;  %4285 = vmatpush1.msra.mxu1 %v4040_v8  ;;  %vm7847_vm2 = vmmov %vm7844_vm6  ;;  %vm7849_vm6 = vcmask 228352  }
 0x646   : > { %4034 = vst [vmem:[#allocation3 + $0x368] sm:$0xf] %v4018_v34  ;;  %4035 = vst [vmem:[#allocation3 + $0x370] sm:$0xf] %v4019_v3  ;;  %4212 = vmatpush1.msra.mxu0 %v4046_v33  ;;  %4625 = vmatmul.mubr.msk.f32.vlgmr.msra.gmra.mxu1 %vm2060_vm7, %v7637_v58  ;;  %v4146_v45 = vld [vmem:[#allocation3 + $0x360] sm:$0xf] }
 0x647   : > { %4213 = vmatprep.subr.mxu0 %v4039_v60  ;;  %4460 = vmatprep.mubr.f32.mxu1 %v7845_v61  ;;  %vm7848_vm3 = vmmov %vm7847_vm2 }
 0x648   : > { %v4012_v1 = vpop.permute.xlu0 %4011  ;;  %v3954_v19 = vpop.permute.xlu1 %3953  ;;  %4214 = vmatpush1.msra.mxu0 %v4038_v57 }
 0x649   : > { %v4020_v5 = vsel %vm7846_vm15, %v4010_v47, %v4012_v1  ;;  %4622 = vmatmul.mubr.msk.f32.vlgmr.msra.gmra.mxu0 %vm2060_vm7, %v7637_v58  ;;  %vm7851_vm15 = vmmov %vm7849_vm6 }
 0x64a   : > { %4036 = vst.msk [vmem:[#allocation3 + $0x378] sm:$0xf] %vm1939_vm9, %v4020_v5  ;;  %4389 = vmatprep.mubr.f32.mxu0 %v7845_v61  ;;  %vm7850_vm9 = vmmov %vm7847_vm2 }
 0x64c   : > { %v3952_v35 = vpop.permute.xlu0 %3951  ;;  %v3832_v12 = vpop.permute.xlu1 %3831 }
 0x64d   : > { %v3962_v43 = vsel %vm7847_vm2, %v3950_v2, %v3952_v35  ;;  %v3963_v40 = vsel %vm7848_vm3, %v3952_v35, %v3954_v19  ;;  %v3843_v29 = vsel %vm7849_vm6, %v7388_v49, %v3832_v12  ;;  %v4147_v25 = vld [vmem:[#allocation3 + $0x368] sm:$0xf]  ;;  %v4148_v56 = vld [vmem:[#allocation3 + $0x370] sm:$0xf]  ;;  %vm7852_vm2 = vmmov %vm7849_vm6  ;;  %vm7853_vm3 = vcmask 302080  }
 0x64e   : > { %4626 = vmatprep.subr.msk.mxu0 %vm381_vm1, %v4147_v25  ;;  %vm7854_vm6 = vmmov %vm7852_vm2 }
 0x64f   : > { %4627 = vmatpush1.msk.msra.mxu0 %vm381_vm1, %v4146_v45 }
 0x650   : > { %v3956_v28 = vpop.permute.xlu0 %3955  ;;  %v3836_v46 = vpop.permute.xlu1 %3835  ;;  %4331 = vmatprep.subr.mxu0 %v3962_v43 }
 0x651   : > { %v3964_v22 = vsel %vm7850_vm9, %v3954_v19, %v3956_v28  ;;  %v4149_v62 = vld [vmem:[#allocation3 + $0x378] sm:$0xf]  ;;  %4332 = vmatpush1.msra.mxu0 %v3961_v39 }
 0x652   : > { %3980 = vst.msk [vmem:[#allocation3 + $0x338] sm:$0xff] %vm442_vm4, %v3964_v22  ;;  %4629 = vmatprep.subr.msk.mxu1 %vm381_vm1, %v4149_v62 }
 0x653   : > { %4630 = vmatpush1.msk.msra.mxu1 %vm381_vm1, %v4148_v56  ;;  %vm7855_vm1 = vmmov %vm7853_vm3 }
 0x654   : > { %v3834_v49 = vpop.permute.xlu0 %3833  ;;  %v3714_v55 = vpop.permute.xlu1 %3713  ;;  %vm7856_vm9 = vmmov %vm7855_vm1 }
 0x655   : > { %v3844_v32 = vsel %vm7851_vm15, %v3832_v12, %v3834_v49  ;;  %v3845_v42 = vsel %vm7852_vm2, %v3834_v49, %v3836_v46  ;;  %v3725_v53 = vsel %vm7853_vm3, %v7440_v15, %v3714_v55  ;;  %vm7857_vm15 = vcmask 318464   ;;  %vm7858_vm2 = vmmov %vm7855_vm1 }
 0x656   : > { %4333 = vmatprep.subr.mxu0 %v3844_v32  ;;  %vm7859_vm3 = vmmov %vm7857_vm15 }
 0x657   : > { %4334 = vmatpush1.msra.mxu0 %v3843_v29 }
 0x658   : > { %v3838_v16 = vpop.permute.xlu0 %3837  ;;  %v3718_v27 = vpop.permute.xlu1 %3717 }
 0x659   : > { %v3846_v31 = vsel %vm7854_vm6, %v3836_v46, %v3838_v16  ;;  %v4141_v6 = vld [vmem:[#allocation3 + $0x338] sm:$0xff]  ;;  %vm7860_vm6 = vmmov %vm7859_vm3 }
 0x65a   : > { %3862 = vst.msk [vmem:[#allocation3 + $0x2f8] sm:$0xff] %vm442_vm4, %v3846_v31  ;;  %4402 = vmatprep.subr.mxu1 %v4141_v6 }
 0x65b   : > { %4403 = vmatpush1.msra.mxu1 %v3963_v40 }
 0x65c   : > { %v3716_v10 = vpop.permute.xlu0 %3715  ;;  %v3596_v0 = vpop.permute.xlu1 %3595 }
 0x65d   : > { %v3726_v26 = vsel %vm7855_vm1, %v3714_v55, %v3716_v10  ;;  %v3727_v36 = vsel %vm7856_vm9, %v3716_v10, %v3718_v27  ;;  %v3607_v15 = vsel %vm7857_vm15, %v7458_v24, %v3596_v0  ;;  %vm7861_vm1 = vmmov %vm7859_vm3  ;;  %v7862_v10 = vld [vmem:[#allocation16_spill] sm:$0xff] }
 0x65e   : > { %4335 = vmatprep.subr.mxu0 %v3726_v26 }
 0x65f   : > { %4336 = vmatpush1.msra.mxu0 %v3725_v53 }
 0x660   : > { %v3720_v44 = vpop.permute.xlu0 %3719  ;;  %v3600_v54 = vpop.permute.xlu1 %3599 }
 0x661   : > { %v3728_v30 = vsel %vm7858_vm2, %v3718_v27, %v3720_v44  ;;  %v4133_v48 = vld [vmem:[#allocation3 + $0x2f8] sm:$0xff] }
 0x662   : > { %3744 = vst.msk [vmem:[#allocation3 + $0x2b8] sm:$0xff] %vm442_vm4, %v3728_v30  ;;  %4404 = vmatprep.subr.mxu1 %v4133_v48 }
 0x663   : > { %4405 = vmatpush1.msra.mxu1 %v3845_v42 }
 0x664   : > { %v3598_v11 = vpop.permute.xlu0 %3597  ;;  %v3480_v37 = vpop.permute.xlu1 %3479 }
 0x665   : > { %v3608_v52 = vsel %vm7859_vm3, %v3596_v0, %v3598_v11  ;;  %v3609_v14 = vsel %vm7860_vm6, %v3598_v11, %v3600_v54  ;;  %v3490_v24 = vsel %vm3485_vm5, %v7518_v7, %v3480_v37  ;;  %v4051_v11 = vld [vmem:[#allocation3 + $0x68] sm:$0xff] }
 0x666   : > { %4337 = vmatprep.subr.mxu0 %v3608_v52  ;;  %v4050_v52 = vld [vmem:[#allocation3 + $0x60] sm:$0xff] }
 0x667   : > { %4338 = vmatpush1.msra.mxu0 %v3607_v15 }
 0x668   : > { %v3602_v47 = vpop.permute.xlu0 %3601  ;;  %v3484_v38 = vpop.permute.xlu1 %3483 }
 0x669   : > { %v3610_v63 = vsel %vm7861_vm1, %v3600_v54, %v3602_v47  ;;  %3508 = vst.msk [vmem:[#allocation3 + $0x238] sm:$0xff] %vm442_vm4, %v3484_v38  ;;  %v4125_v41 = vld [vmem:[#allocation3 + $0x2b8] sm:$0xff]  ;;  %v4043_v47 = vld [vmem:[#allocation3 + $0x28] sm:$0xff] }
 0x66a   : > { %3626 = vst.msk [vmem:[#allocation3 + $0x278] sm:$0xff] %vm442_vm4, %v3610_v63  ;;  %4406 = vmatprep.subr.mxu1 %v4125_v41  ;;  %v4053_v41 = vld [vmem:[#allocation3 + $0x78] sm:$0xff] }
 0x66b   : > { %4407 = vmatpush1.msra.mxu1 %v3727_v36 }
 0x66c   : > { %v3482_v18 = vpop.permute.xlu0 %3481  ;;  %v3376_v21 = vpop.permute.xlu1 %3375 }
 0x66d   : > { %v3491_v50 = vsel %vm3485_vm5, %v3480_v37, %v3482_v18  ;;  %v3492_v23 = vsel %vm3485_vm5, %v3482_v18, %v3484_v38  ;;  %v4042_v38 = vld [vmem:[#allocation3 + $0x20] sm:$0xff]  ;;  %v4052_v18 = vld [vmem:[#allocation3 + $0x70] sm:$0xff] }
 0x66e   : > { %4339 = vmatprep.subr.mxu0 %v3491_v50  ;;  %v4044_v50 = vld [vmem:[#allocation3 + $0x30] sm:$0xff] }
 0x66f   : > { %4340 = vmatpush1.msra.mxu0 %v3490_v24 }
 0x670   : > { %v3374_v7 = vpop.permute.xlu0 %3373  ;;  %v3264_v51 = vpop.permute.xlu1 %3263  ;;  %v4109_v3 = vld [vmem:[#allocation3 + $0x238] sm:$0xff] }
 0x671   : > { %v3383_v2 = vsel %vm363_vm0, %v7531_v17, %v3374_v7  ;;  %v3384_v20 = vsel %vm363_vm0, %v3374_v7, %v3376_v21  ;;  %v3276_v8 = vsel %vm3271_vm8, %v7585_v4, %v3264_v51  ;;  %v4117_v34 = vld [vmem:[#allocation3 + $0x278] sm:$0xff] }
 0x672   : > { %4408 = vmatprep.subr.mxu1 %v4117_v34  ;;  %4341 = vmatprep.subr.mxu0 %v3384_v20 }
 0x673   : > { %4409 = vmatpush1.msra.mxu1 %v3609_v14  ;;  %4342 = vmatpush1.msra.mxu0 %v3383_v2 }
 0x674   : > { %v3378_v39 = vpop.permute.xlu0 %3377  ;;  %4410 = vmatprep.subr.mxu1 %v4109_v3  ;;  %v3268_v33 = vpop.permute.xlu1 %3267 }
 0x675   : > { %v3385_v60 = vsel %vm363_vm0, %v3376_v21, %v3378_v39  ;;  %3401 = vst.msk [vmem:[#allocation3 + $0x1f8] sm:$0xff] %vm442_vm4, %v3378_v39  ;;  %4411 = vmatpush1.msra.mxu1 %v3492_v23  ;;  %v4045_v21 = vld [vmem:[#allocation3 + $0x38] sm:$0xff] }
 0x678   : > { %v3266_v17 = vpop.permute.xlu0 %3265  ;;  %v3142_v57 = vpop.permute.xlu1 %3141 }
 0x679   : > { %v3277_v61 = vsel %vm3271_vm8, %v3264_v51, %v3266_v17  ;;  %v3278_v4 = vsel %vm3271_vm8, %v3266_v17, %v3268_v33  ;;  %v3154_v1 = vsel %vm3149_vm11, %v7602_v9, %v3142_v57 }
 0x67a   : > { %4343 = vmatprep.subr.mxu0 %v3277_v61 }
 0x67b   : > { %4344 = vmatpush1.msra.mxu0 %v3276_v8 }
 0x67c   : > { %v3270_v19 = vpop.permute.xlu0 %3269  ;;  %v3146_v5 = vpop.permute.xlu1 %3145  ;;  %v4101_v35 = vld [vmem:[#allocation3 + $0x1f8] sm:$0xff] }
 0x67d   : > { %v3279_v12 = vsel %vm3271_vm8, %v3268_v33, %v3270_v19  ;;  %4412 = vmatprep.subr.mxu1 %v4101_v35 }
 0x67e   : > { %3295 = vst.msk [vmem:[#allocation3 + $0x1b8] sm:$0xff] %vm442_vm4, %v3279_v12  ;;  %4413 = vmatpush1.msra.mxu1 %v3385_v60 }
 0x680   : > { %v3144_v43 = vpop.permute.xlu0 %3143  ;;  %v3023_v40 = vpop.permute.xlu1 %3022 }
 0x681   : > { %v3155_v29 = vsel %vm3149_vm11, %v3142_v57, %v3144_v43  ;;  %v3156_v25 = vsel %vm3149_vm11, %v3144_v43, %v3146_v5  ;;  %v3035_v9 = vsel %vm3030_vm13, %v7621_v13, %v3023_v40 }
 0x682   : > { %3051 = vst [vmem:[#allocation3 + $0x120] sm:$0xff] %v3035_v9  ;;  %4345 = vmatprep.subr.mxu0 %v3155_v29 }
 0x683   : > { %4346 = vmatpush1.msra.mxu0 %v3154_v1 }
 0x684   : > { %v3148_v45 = vpop.permute.xlu0 %3147  ;;  %v3027_v28 = vpop.permute.xlu1 %3026 }
 0x685   : > { %v3157_v46 = vsel %vm3149_vm11, %v3146_v5, %v3148_v45  ;;  %v4093_v22 = vld [vmem:[#allocation3 + $0x1b8] sm:$0xff] }
 0x686   : > { %3173 = vst.msk [vmem:[#allocation3 + $0x178] sm:$0xff] %vm442_vm4, %v3157_v46  ;;  %4414 = vmatprep.subr.mxu1 %v4093_v22 }
 0x687   : > { %4415 = vmatpush1.msra.mxu1 %v3278_v4 }
 0x688   : > { %v3025_v62 = vpop.permute.xlu0 %3024  ;;  %v2904_v56 = vpop.permute.xlu1 %2903 }
 0x689   : > { %v3036_v49 = vsel %vm3030_vm13, %v3023_v40, %v3025_v62  ;;  %v3037_v55 = vsel %vm3030_vm13, %v3025_v62, %v3027_v28  ;;  %v2916_v13 = vsel %vm2911_vm14, %v7625_v59, %v2904_v56 }
 0x68a   : > { %3052 = vst [vmem:[#allocation3 + $0x128] sm:$0xff] %v3036_v49  ;;  %3053 = vst [vmem:[#allocation3 + $0x130] sm:$0xff] %v3037_v55  ;;  %4347 = vmatprep.subr.mxu0 %v3036_v49 }
 0x68b   : > { %2932 = vst [vmem:[#allocation3 + $0xe0] sm:$0xff] %v2916_v13  ;;  %4348 = vmatpush1.msra.mxu0 %v3035_v9 }
 0x68c   : > { %v3029_v32 = vpop.permute.xlu0 %3028  ;;  %v2908_v42 = vpop.permute.xlu1 %2907 }
 0x68d   : > { %v3038_v53 = vsel %vm3030_vm13, %v3027_v28, %v3029_v32  ;;  %v4085_v16 = vld [vmem:[#allocation3 + $0x178] sm:$0xff] }
 0x68e   : > { %3054 = vst.msk [vmem:[#allocation3 + $0x138] sm:$0xff] %vm442_vm4, %v3038_v53  ;;  %4416 = vmatprep.subr.mxu1 %v4085_v16 }
 0x68f   : > { %4417 = vmatpush1.msra.mxu1 %v3156_v25 }
 0x690   : > { %v2906_v27 = vpop.permute.xlu0 %2905  ;;  %v2785_v31 = vpop.permute.xlu1 %2784 }
 0x691   : > { %v2917_v6 = vsel %vm2911_vm14, %v2904_v56, %v2906_v27  ;;  %v2918_v59 = vsel %vm2911_vm14, %v2906_v27, %v2908_v42  ;;  %v2797_v0 = vsel %vm2792_vm12, %v7862_v10, %v2785_v31 }
 0x692   : > { %2933 = vst [vmem:[#allocation3 + $0xe8] sm:$0xff] %v2917_v6  ;;  %2934 = vst [vmem:[#allocation3 + $0xf0] sm:$0xff] %v2918_v59  ;;  %4349 = vmatprep.subr.mxu0 %v2917_v6 }
 0x693   : > { %2813 = vst [vmem:[#allocation3 + $0xa0] sm:$0xff] %v2797_v0  ;;  %4350 = vmatpush1.msra.mxu0 %v2916_v13 }
 0x694   : > { %v2910_v26 = vpop.permute.xlu0 %2909  ;;  %v2789_v44 = vpop.permute.xlu1 %2788 }
 0x695   : > { %v2919_v36 = vsel %vm2911_vm14, %v2908_v42, %v2910_v26  ;;  %v4077_v15 = vld [vmem:[#allocation3 + $0x138] sm:$0xff] }
 0x696   : > { %2935 = vst.msk [vmem:[#allocation3 + $0xf8] sm:$0xff] %vm442_vm4, %v2919_v36  ;;  %4418 = vmatprep.subr.mxu1 %v4077_v15 }
 0x697   : > { %4419 = vmatpush1.msra.mxu1 %v3037_v55 }
 0x698   : > { %v2787_v54 = vpop.permute.xlu0 %2786 }
 0x699   : > { %v2798_v30 = vsel %vm2792_vm12, %v2785_v31, %v2787_v54  ;;  %v2799_v48 = vsel %vm2792_vm12, %v2787_v54, %v2789_v44 }
 0x69a   : > { %2814 = vst [vmem:[#allocation3 + $0xa8] sm:$0xff] %v2798_v30  ;;  %2815 = vst [vmem:[#allocation3 + $0xb0] sm:$0xff] %v2799_v48  ;;  %4351 = vmatprep.subr.mxu0 %v2798_v30 }
 0x69b   : > { %4352 = vmatpush1.msra.mxu0 %v2797_v0 }
 0x69c   : > { %v2791_v37 = vpop.permute.xlu0 %2790  ;;  %4353 = vmatprep.subr.mxu0 %v4051_v11 }
 0x69d   : > { %v2800_v14 = vsel %vm2792_vm12, %v2789_v44, %v2791_v37  ;;  %v4069_v24 = vld [vmem:[#allocation3 + $0xf8] sm:$0xff]  ;;  %4354 = vmatpush1.msra.mxu0 %v4050_v52 }
 0x69e   : > { %2816 = vst.msk [vmem:[#allocation3 + $0xb8] sm:$0xff] %vm442_vm4, %v2800_v14  ;;  %4420 = vmatprep.subr.mxu1 %v4069_v24  ;;  %4355 = vmatprep.subr.mxu0 %v4043_v47 }
 0x69f   : > { %4421 = vmatpush1.msra.mxu1 %v2918_v59  ;;  %4356 = vmatpush1.msra.mxu0 %v4042_v38 }
 0x6a0   : > { %4628 = vmatmul.mubr.msk.f32.vlgmr.msra.gmra.mxu0 %vm2060_vm7, %v7637_v58 }
 0x6a1   : > { %v4154_v23 = vpop.permute.xlu1 %4153 }
 0x6a5   : > { %v4061_v63 = vld [vmem:[#allocation3 + $0xb8] sm:$0xff] }
 0x6a6   : > { %4422 = vmatprep.subr.mxu1 %v4061_v63 }
 0x6a7   : > { %4423 = vmatpush1.msra.mxu1 %v2799_v48 }
 0x6a8   : > { %4424 = vmatprep.subr.mxu1 %v4053_v41 }
 0x6a9   : > { %4425 = vmatpush1.msra.mxu1 %v4052_v18  ;;  %v4479_v2 = vpop.permute.xlu0 %4478 }
 0x6aa   : > { %4426 = vmatprep.subr.mxu1 %v4045_v21 }
 0x6ab   : > { %4427 = vmatpush1.msra.mxu1 %v4044_v50 }
 0x6ac   : > { %4631 = vmatmul.mubr.msk.f32.vlgmr.msra.gmra.mxu1 %vm2060_vm7, %v7637_v58 }
 0x706   : > { %v4320_v7 = vpop.f32.mrf.mxu1 }
 0x707   : > { %v4321_v51 = vadd.f32 %v4320_v7, %v4154_v23 }
 0x708   : > { %v4322_v20 = vpop.f32.mrf.mxu1 }
 0x709   : > { %v4483_v8 = vmul.f32 %v4479_v2, %v4321_v51  ;;  %v4323_v34 = vadd.f32 %v4322_v20, %v4154_v23  ;;  %v4249_v3 = vpop.f32.mrf.mxu0  ;;  %vm4469_vm0 = vcmp.ge.f32.partialorder %v4321_v51, 0.0 }
 0x70a   : > { %v4250_v39 = vadd.f32 %v4249_v3, %v4154_v23 }
 0x70b   : > { %vm4470_vm4 = vcmp.ge.f32.partialorder %v4323_v34, 0.0  ;;  %v4484_v33 = vmul.f32 %v4479_v2, %v4323_v34  ;;  %v4251_v60 = vpop.f32.mrf.mxu0  ;;  %v4491_v61 = vsel %vm4469_vm0, %v4321_v51, %v4483_v8 }
 0x70c   : > { %v4481_v17 = vmul.f32 %v4479_v2, %v4250_v39  ;;  %v4252_v57 = vadd.f32 %v4251_v60, %v4154_v23  ;;  %vm4467_vm12 = vcmp.ge.f32.partialorder %v4250_v39, 0.0 }
 0x70d   : > { %v4492_v4 = vsel %vm4470_vm4, %v4323_v34, %v4484_v33 }
 0x70e   : > { %v4506_v58 = vcombine.low %v4491_v61, %v4492_v4  ;;  %vm4468_vm7 = vcmp.ge.f32.partialorder %v4252_v57, 0.0  ;;  %v4482_v1 = vmul.f32 %v4479_v2, %v4252_v57  ;;  %v4489_v19 = vsel %vm4467_vm12, %v4250_v39, %v4481_v17 }
 0x710   : > { %4514 = vst [vmem:[%s7722_s24 + $0x8] sm:$0xff] %v4506_v58  ;;  %v4490_v5 = vsel %vm4468_vm7, %v4252_v57, %v4482_v1 }
 0x711   : > { %v4505_v35 = vcombine.low %v4489_v19, %v4490_v5 }
 0x713   : > { %4513 = vst [vmem:[%s7722_s24] sm:$0xff] %v4505_v35 }
 0x760   : > { %v4391_v12 = vpop.f32.mrf.mxu0 }
 0x761   : > { %v4392_v43 = vadd.f32 %v4391_v12, %v4154_v23 }
 0x762   : > { %v4393_v40 = vpop.f32.mrf.mxu0 }
 0x763   : > { %v4485_v29 = vmul.f32 %v4479_v2, %v4392_v43  ;;  %v4394_v25 = vadd.f32 %v4393_v40, %v4154_v23  ;;  %vm4471_vm5 = vcmp.ge.f32.partialorder %v4392_v43, 0.0 }
 0x765   : > { %vm4472_vm8 = vcmp.ge.f32.partialorder %v4394_v25, 0.0  ;;  %v4486_v9 = vmul.f32 %v4479_v2, %v4394_v25  ;;  %v4493_v45 = vsel %vm4471_vm5, %v4392_v43, %v4485_v29 }
 0x767   : > { %v4494_v28 = vsel %vm4472_vm8, %v4394_v25, %v4486_v9 }
 0x768   : > { %v4507_v46 = vcombine.low %v4493_v45, %v4494_v28 }
 0x76a   : > { %4515 = vst [vmem:[%s7722_s24 + $0x10] sm:$0xff] %v4507_v46 }
 0x76c   : > { %v4462_v22 = vpop.f32.mrf.mxu1 }
 0x76d   : > { %v4463_v62 = vadd.f32 %v4462_v22, %v4154_v23 }
 0x76e   : > { %v4464_v56 = vpop.f32.mrf.mxu1 }
 0x76f   : > { %v4487_v49 = vmul.f32 %v4479_v2, %v4463_v62  ;;  %v4465_v55 = vadd.f32 %v4464_v56, %v4154_v23  ;;  %vm4473_vm11 = vcmp.ge.f32.partialorder %v4463_v62, 0.0 }
 0x771   : > { %vm4474_vm13 = vcmp.ge.f32.partialorder %v4465_v55, 0.0  ;;  %v4488_v13 = vmul.f32 %v4479_v2, %v4465_v55  ;;  %v4495_v32 = vsel %vm4473_vm11, %v4463_v62, %v4487_v49 }
 0x773   : > { %v4496_v42 = vsel %vm4474_vm13, %v4465_v55, %v4488_v13 }
 0x774   : > { %v4508_v53 = vcombine.low %v4495_v32, %v4496_v42 }
 0x776   : > { %4516 = vst.msk [vmem:[%s7722_s24 + $0x18] sm:$0xff] %vm6442_vm10, %v4508_v53 }
 0x777   : > { %4828 = shalt.err (!%p4825_p10)
}
 0x778   : > { %s4829_s12 = scalar_lea.hbm %s4530_s18, 512  ;;  %s4833_s15 = scalar_lea.hbm %s7774_s8, 1024 }
 0x779   : > { %p4830_p2 = scmp.ne.s32.totalorder %s4530_s18, %s4829_s12  ;;  %p4834_p7 = scmp.lt.s32.totalorder %s4530_s18, %s7774_s8 }
 0x77a   : > { %p4835_p5 = scmp.lt.s32.totalorder %s4833_s15, %s4829_s12 }
 0x77b   : > { %p4831_p4 = pnand %p4830_p2, %p7864_p12 }
 0x77c   : > { %p4836_p6 = por %p4835_p5, %p4834_p7 }
 0x77d   : > { %p4832_p9 = pneg %p4831_p4 }
 0x77f   : > { %p4837_p11 = pnand %p4836_p6, %p4832_p9 }
 0x781   : > { %4840 = shalt.err (!%p4837_p11)
}
 0x782   : > { %4643 = dma.vmem_to_hbm [thread:$0]  (%p7864_p12), %s4533_s10, 512, %s4530_s18, %s4518_s25  }
 0x783 PF: > { %s4544_s26 = sand.u32 1, %s4867_s27   ;;  %p7865_p13 = scmp.ne.s32.totalorder %s7802_s17, 0 }
 0x784   : > { %p7866_p0 = scmp.ge.s32.totalorder %s4879_s30, 2  ;;  %s4545_s19 = scalar_lea.sflag [#allocation6], %s4544_s26 }
 0x786   : > { %p4650_p1 = pnand %p7866_p0, %p7865_p13 }
 0x788   : > { %p4651_p3 = pneg %p4650_p1 }
 0x78a   : > { %4862 = dma.done.wait (%p4651_p3), %s4545_s19, 512  }
 0x78b   : > { %4864 = vsyncadd (%p4651_p3), %s4545_s19, 4294966784  ;;  %s7867_s20 = sld [smem:[#allocation10_spill]]  ;;  %p21_p8 = scmp.ge.s32.totalorder %s4980_s11, 4  }
 0x78c   : > { %s7868_s29 = sld [smem:[#allocation11_spill]]  ;;  %s7869_s27 = smov %s4871_s28 }
 0x78d   : > { %s7871_s30 = smov %s4980_s11  ;;  %23 = sbr.rel (!%p21_p8) target bundleno = 5 (0x5), region = 97 }
 0x791   : > { %s7870_s28 = smov %s7867_s20 }
 0x792   :  { %4550 = vsyncpa [#allocation5], 1 }
 0x793   :  { %4552 = vsyncpa [#allocation5 + $0x1], 1 }
 0x794   :  { %4553 = vsyncpa [#allocation6], 1 }
 0x795   :  { %4555 = vsyncpa [#allocation6 + $0x1], 1 }

</bundles_post_ra>
